<compile_context>
chip_gen: v7x
topology: tpu7x:2x2x1
jax: 0.10.0
libtpu: 0.0.40
codegen_flags: <defaults>
</compile_context>

<pallas_src>
import functools

import jax
import jax.numpy as jnp
from jax.experimental import pallas as pl
from jax.experimental.pallas import tpu as pltpu


# ----------------------------------------------------------------------------
# One-time weight preprocessing (NOT in the per-call hot path).
# ----------------------------------------------------------------------------
def _unfold_conv1_weight(wgt, wo):
    """(k, k, cin, cout) -> (k*cin*wp, wo*cout) width-unfolded matmul weight.

    Row order (kh, cin, w_in) matches the per-channel-plane L1 buffer; column
    order (w_out, cout) gives the merged (x, c) activation layout.  Entries
    outside each output column's sliding window are zero.
    """
    k, _, cin, cout = wgt.shape
    wp = wo + k - 1
    w_t = jnp.transpose(wgt, (0, 2, 1, 3))                # (kh, cin, kw, cout)
    out = jnp.zeros((k, cin, wp, wo, cout), wgt.dtype)
    for x in range(wo):
        out = out.at[:, :, x:x + k, x, :].set(w_t)
    return out.reshape(k * cin * wp, wo * cout)


def _unfold_conv3_weight(wgt, wo):
    """(k, k, cin, cout) -> (k*wp*cin, cout*wo) width-unfolded matmul weight.

    Row order (kh, w_in, cin) matches the merged (w, c) lane layout of the
    conv3 input; column order (cout, w_out) makes each output channel a
    contiguous lane block so the kernel can store NCHW directly.
    """
    k, _, cin, cout = wgt.shape
    wp = wo + k - 1
    w_f = wgt.reshape(k, k * cin, cout)                    # (kh, kw*cin, cout)
    out = jnp.zeros((k, wp * cin, wo, cout), wgt.dtype)
    for x in range(wo):
        out = out.at[:, x * cin:x * cin + k * cin, x, :].set(w_f)
    return jnp.transpose(out, (0, 1, 3, 2)).reshape(k * wp * cin, cout * wo)


def prepare_params(params, h, w, pad=2):
    """Build the matmul-form weights for a fixed input resolution (one-time)."""
    w1, b1 = params["w1"], params["b1"]     # (9, 9, 3, 64) HWIO, (64,)
    w2, b2 = params["w2"], params["b2"]     # (1, 1, 64, 32), (32,)
    w3, b3 = params["w3"], params["b3"]     # (5, 5, 32, 3), (3,)
    k1, k3 = w1.shape[0], w3.shape[0]
    c1, c2, c3 = w1.shape[3], w2.shape[3], w3.shape[3]
    w1o = w + 2 * pad - k1 + 1              # conv1 output width (12)
    w3o = w1o + 2 * (2 * pad) - k3 + 1      # conv3 output width (16)
    return dict(
        w1p=_unfold_conv1_weight(w1, w1o),                        # (540, 768)
        b1p=jnp.tile(b1, w1o).reshape(1, w1o * c1),               # (1, 768)
        w2r=w2.reshape(w2.shape[2], c2),                          # (64, 32)
        b2r=b2.reshape(1, c2),                                    # (1, 32)
        w3p=_unfold_conv3_weight(w3, w3o),                        # (3200, 48)
        b3p=jnp.repeat(b3, w3o).reshape(1, c3 * w3o),             # (1, 48)
    )


# ----------------------------------------------------------------------------
# Fused kernel: conv1+ReLU -> conv2+ReLU -> conv3, one batch element per step.
# ----------------------------------------------------------------------------
def _srcnn_kernel(x_ref, w1_ref, b1_ref, w2_ref, b2_ref, w3_ref, b3_ref,
                  o_ref, xp1_ref, l1_ref, a1_ref, xp3_ref, l3_ref,
                  *, cin, h, w, pad, k1, c1, k3, c2, c3):
    hp1, wp1 = h + 2 * pad, w + 2 * pad
    h1, w1o = hp1 - k1 + 1, wp1 - k1 + 1          # conv1 output spatial (12,12)
    pad3 = 2 * pad                                # conv2 pad folded into conv3
    hp3, wp3 = h1 + 2 * pad3, w1o + 2 * pad3      # (20, 20)
    h3, w3o = hp3 - k3 + 1, wp3 - k3 + 1          # (16, 16)

    # ---- conv1: replicate-pad each input channel plane into xp1 -----------
    # x_ref is (1, cin*h, w): channel c lives in rows [c*h, (c+1)*h).
    # xp1 is (cin*hp1, wp1):  channel c lives in rows [c*hp1, (c+1)*hp1).
    for c in range(cin):
        src, dst = c * h, c * hp1
        xp1_ref[dst + pad:dst + pad + h, pad:pad + w] = x_ref[0, src:src + h, :]
        top = x_ref[0, src:src + 1, :]
        bot = x_ref[0, src + h - 1:src + h, :]
        xp1_ref[dst:dst + pad, pad:pad + w] = jnp.broadcast_to(top, (pad, w))
        xp1_ref[dst + pad + h:dst + hp1, pad:pad + w] = jnp.broadcast_to(bot, (pad, w))
    # Left / right column replication for all planes at once (corners follow
    # because rows were replicated first).
    edge_l = xp1_ref[:, pad:pad + 1]
    xp1_ref[:, 0:pad] = jnp.concatenate([edge_l] * pad, axis=1)
    edge_r = xp1_ref[:, pad + w - 1:pad + w]
    xp1_ref[:, pad + w:wp1] = jnp.concatenate([edge_r] * pad, axis=1)

    # ---- conv1 as ONE 2D MXU matmul (width-unfolded weights) --------------
    # L1[y, (kh*cin + c)*wp1 + m] = xp1_plane_c[y + kh, m]  -> k1*cin row copies.
    for i in range(k1):
        for c in range(cin):
            q = (i * cin + c) * wp1
            l1_ref[:, q:q + wp1] = xp1_ref[c * hp1 + i:c * hp1 + i + h1, :]
    a1_ref[...] = jnp.maximum(
        jnp.dot(l1_ref[...], w1_ref[...], preferred_element_type=jnp.float32)
        + b1_ref[...], 0.0)                       # (h1, w1o*c1), lanes = (x, c)

    # ---- conv2 (1x1) fused with its replicate padding ----------------------
    # Replicate-pad commutes with the pointwise conv2+bias+ReLU, so compute on
    # the unpadded (h1, w1o) grid and write straight into conv3's padded
    # buffer xp3 (hp3, wp3*c2) with an effective pad of 2*pad rows/cols.
    w2 = w2_ref[...]
    b2 = b2_ref[...]
    for xc in range(w1o):
        blk = jnp.dot(a1_ref[:, xc * c1:(xc + 1) * c1], w2,
                      preferred_element_type=jnp.float32)
        col = (pad3 + xc) * c2
        xp3_ref[pad3:pad3 + h1, col:col + c2] = jnp.maximum(blk + b2, 0.0)
    # Replicate rows, then columns, of xp3 (rows first -> corners correct).
    int_lo, int_hi = pad3 * c2, (pad3 + w1o) * c2
    row_t = xp3_ref[pad3:pad3 + 1, int_lo:int_hi]
    xp3_ref[0:pad3, int_lo:int_hi] = jnp.broadcast_to(row_t, (pad3, int_hi - int_lo))
    row_b = xp3_ref[pad3 + h1 - 1:pad3 + h1, int_lo:int_hi]
    xp3_ref[pad3 + h1:hp3, int_lo:int_hi] = jnp.broadcast_to(row_b, (pad3, int_hi - int_lo))
    col_l = xp3_ref[:, int_lo:int_lo + c2]
    xp3_ref[:, 0:int_lo] = jnp.concatenate([col_l] * pad3, axis=1)
    col_r = xp3_ref[:, int_hi - c2:int_hi]
    xp3_ref[:, int_hi:wp3 * c2] = jnp.concatenate([col_r] * pad3, axis=1)

    # ---- conv3 as ONE 2D MXU matmul (merged (w, c) lanes) -------------------
    for i in range(k3):
        l3_ref[:, i * wp3 * c2:(i + 1) * wp3 * c2] = xp3_ref[i:i + h3, :]
    a3 = jnp.dot(l3_ref[...], w3_ref[...],
                 preferred_element_type=jnp.float32) + b3_ref[...]  # (h3, c3*w3o)
    # Columns are (out_channel, x) blocks -> store NCHW directly, no transpose.
    for o in range(c3):
        o_ref[0, o, :, :] = a3[:, o * w3o:(o + 1) * w3o].astype(o_ref.dtype)


def srcnn_forward(prepped, x_nchw, *, k1=9, k3=5, pad=2):
    """SRCNN forward. Input/output are NCHW float32 (torch convention)."""
    n, cin, h, w = x_nchw.shape
    c1, c2 = prepped["w2r"].shape
    h1, w1o = h + 2 * pad - k1 + 1, w + 2 * pad - k1 + 1
    pad3 = 2 * pad
    h3, w3o = h1 + 2 * pad3 - k3 + 1, w1o + 2 * pad3 - k3 + 1
    c3 = prepped["b3p"].shape[1] // w3o
    hp1, wp1 = h + 2 * pad, w + 2 * pad
    hp3, wp3 = h1 + 2 * pad3, w1o + 2 * pad3

    # Free reshape: NCHW is already (c, h)-major, so no XLA transpose needed.
    x2d = x_nchw.reshape(n, cin * h, w)

    kernel = functools.partial(_srcnn_kernel, cin=cin, h=h, w=w, pad=pad,
                               k1=k1, c1=c1, k3=k3, c2=c2, c3=c3)
    out = pl.pallas_call(
        kernel,
        out_shape=jax.ShapeDtypeStruct((n, c3, h3, w3o), jnp.float32),
        grid=(n,),
        in_specs=[
            pl.BlockSpec((1, cin * h, w), lambda i: (i, 0, 0)),
            pl.BlockSpec(prepped["w1p"].shape, lambda i: (0, 0)),
            pl.BlockSpec(prepped["b1p"].shape, lambda i: (0, 0)),
            pl.BlockSpec(prepped["w2r"].shape, lambda i: (0, 0)),
            pl.BlockSpec(prepped["b2r"].shape, lambda i: (0, 0)),
            pl.BlockSpec(prepped["w3p"].shape, lambda i: (0, 0)),
            pl.BlockSpec(prepped["b3p"].shape, lambda i: (0, 0)),
        ],
        out_specs=pl.BlockSpec((1, c3, h3, w3o), lambda i: (i, 0, 0, 0)),
        scratch_shapes=[
            pltpu.VMEM((cin * hp1, wp1), jnp.float32),          # xp1 planes
            pltpu.VMEM((h1, k1 * cin * wp1), jnp.float32),      # L1 (12, 540)
            pltpu.VMEM((h1, w1o * c1), jnp.float32),            # a1 (12, 768)
            pltpu.VMEM((hp3, wp3 * c2), jnp.float32),           # xp3 (20, 640)
            pltpu.VMEM((h3, k3 * wp3 * c2), jnp.float32),       # L3 (16, 3200)
        ],
        compiler_params=pltpu.CompilerParams(
            dimension_semantics=("parallel",),
            vmem_limit_bytes=32 * 1024 * 1024),
    )(x2d, prepped["w1p"], prepped["b1p"], prepped["w2r"], prepped["b2r"],
      prepped["w3p"], prepped["b3p"])
    return out


# ----------------------------------------------------------------------------
# Deterministic parameters + pure-JAX reference (replicate padding, like the
# torch module which sets padding_mode='replicate').
# ----------------------------------------------------------------------------
def init_srcnn_params(key):
    ks = jax.random.split(key, 6)

    def conv_params(kw_key, b_key, kh, kwid, cin, cout):
        fan_in = cin * kh * kwid
        bound = 1.0 / jnp.sqrt(fan_in)
        wgt = jax.random.uniform(kw_key, (kh, kwid, cin, cout), jnp.float32,
                                 minval=-bound, maxval=bound)
        b = jax.random.uniform(b_key, (cout,), jnp.float32,
                               minval=-bound, maxval=bound)
        return wgt, b

    w1, b1 = conv_params(ks[0], ks[1], 9, 9, 3, 64)
    w2, b2 = conv_params(ks[2], ks[3], 1, 1, 64, 32)
    w3, b3 = conv_params(ks[4], ks[5], 5, 5, 32, 3)
    return dict(w1=w1, b1=b1, w2=w2, b2=b2, w3=w3, b3=b3)


def _reference_forward(params, x_nchw):
    def conv(x, wgt, b, pad, relu):
        xp = jnp.pad(x, ((0, 0), (pad, pad), (pad, pad), (0, 0)), mode="edge")
        y = jax.lax.conv_general_dilated(
            xp, wgt, window_strides=(1, 1), padding="VALID",
            dimension_numbers=("NHWC", "HWIO", "NHWC"))
        y = y + b
        return jnp.maximum(y, 0.0) if relu else y

    x = jnp.transpose(x_nchw, (0, 2, 3, 1))
    x = conv(x, params["w1"], params["b1"], 2, True)
    x = conv(x, params["w2"], params["b2"], 2, True)
    x = conv(x, params["w3"], params["b3"], 2, False)
    return jnp.transpose(x, (0, 3, 1, 2))


if __name__ == "__main__":
    key = jax.random.PRNGKey(0)
    pkey, xkey = jax.random.split(key)
    params = init_srcnn_params(pkey)

    # Small deterministic input, NCHW like torch: (batch=2, channels=3, 16, 16)
    x = jax.random.normal(xkey, (2, 3, 16, 16), dtype=jnp.float32)

    prepped = prepare_params(params, h=16, w=16)      # one-time preprocessing
    out = jax.block_until_ready(jax.jit(srcnn_forward)(prepped, x))
    assert out.shape == (2, 3, 16, 16), out.shape

    ref = jax.block_until_ready(_reference_forward(params, x))
    assert jnp.allclose(out, ref, atol=1e-4, rtol=1e-4), \
        float(jnp.max(jnp.abs(out - ref)))

    print("KERNEL_OK")
</pallas_src>

<mosaic_0001>
module attributes {stable_mosaic.version = 11 : i64} {
  func.func @_srcnn_kernel(%arg0: i32, %arg1: memref<1x48x16xf32, #tpu.memory_space<vmem>>, %arg2: memref<540x768xf32, #tpu.memory_space<vmem>>, %arg3: memref<1x768xf32, #tpu.memory_space<vmem>>, %arg4: memref<64x32xf32, #tpu.memory_space<vmem>>, %arg5: memref<1x32xf32, #tpu.memory_space<vmem>>, %arg6: memref<3200x48xf32, #tpu.memory_space<vmem>>, %arg7: memref<1x48xf32, #tpu.memory_space<vmem>>, %arg8: memref<1x3x16x16xf32, #tpu.memory_space<vmem>>, %arg9: memref<60x20xf32, #tpu.memory_space<vmem>>, %arg10: memref<12x540xf32, #tpu.memory_space<vmem>>, %arg11: memref<12x768xf32, #tpu.memory_space<vmem>>, %arg12: memref<20x640xf32, #tpu.memory_space<vmem>>, %arg13: memref<16x3200xf32, #tpu.memory_space<vmem>>) attributes {dimension_semantics = [#tpu.dimension_semantics<parallel>], iteration_bounds = array<i64: 2>, scalar_prefetch = 0 : i64, scratch_operands = 5 : i64, tpu.core_type = #tpu.core_type<tc>, window_params = [{transform_indices = @transform_0, window_bounds = array<i64: 1, 48, 16>}, {pipeline_mode = #tpu.pipeline_mode<synchronous>, transform_indices = @transform_1, window_bounds = array<i64: 540, 768>}, {pipeline_mode = #tpu.pipeline_mode<synchronous>, transform_indices = @transform_2, window_bounds = array<i64: 1, 768>}, {pipeline_mode = #tpu.pipeline_mode<synchronous>, transform_indices = @transform_3, window_bounds = array<i64: 64, 32>}, {pipeline_mode = #tpu.pipeline_mode<synchronous>, transform_indices = @transform_4, window_bounds = array<i64: 1, 32>}, {pipeline_mode = #tpu.pipeline_mode<synchronous>, transform_indices = @transform_5, window_bounds = array<i64: 3200, 48>}, {pipeline_mode = #tpu.pipeline_mode<synchronous>, transform_indices = @transform_6, window_bounds = array<i64: 1, 48>}, {transform_indices = @transform_7, window_bounds = array<i64: 1, 3, 16, 16>}]} {
    %c0 = arith.constant 0 : index
    %c0_0 = arith.constant 0 : index
    %c0_1 = arith.constant 0 : index
    %0 = vector.load %arg1[%c0, %c0_0, %c0_1] : memref<1x48x16xf32, #tpu.memory_space<vmem>>, vector<1x16x16xf32>
    %1 = vector.shape_cast %0 : vector<1x16x16xf32> to vector<16x16xf32>
    %c2 = arith.constant 2 : index
    %c2_2 = arith.constant 2 : index
    %2 = vector.load %arg9[%c2, %c2_2] : memref<60x20xf32, #tpu.memory_space<vmem>>, vector<16x16xf32>
    tpu.vector_store %arg9[%c2, %c2_2], %1 {strides = array<i32>} : memref<60x20xf32, #tpu.memory_space<vmem>>, vector<16x16xf32>,
    %c0_3 = arith.constant 0 : index
    %c0_4 = arith.constant 0 : index
    %c0_5 = arith.constant 0 : index
    %3 = vector.load %arg1[%c0_3, %c0_4, %c0_5] : memref<1x48x16xf32, #tpu.memory_space<vmem>>, vector<1x1x16xf32>
    %4 = vector.shape_cast %3 : vector<1x1x16xf32> to vector<1x16xf32>
    %c0_6 = arith.constant 0 : index
    %c15 = arith.constant 15 : index
    %c0_7 = arith.constant 0 : index
    %5 = vector.load %arg1[%c0_6, %c15, %c0_7] : memref<1x48x16xf32, #tpu.memory_space<vmem>>, vector<1x1x16xf32>
    %6 = vector.shape_cast %5 : vector<1x1x16xf32> to vector<1x16xf32>
    %7 = vector.shape_cast %4 : vector<1x16xf32> to vector<1x16xf32>
    %8 = vector.broadcast %7 : vector<1x16xf32> to vector<2x16xf32>
    %c0_8 = arith.constant 0 : index
    %c2_9 = arith.constant 2 : index
    %9 = vector.load %arg9[%c0_8, %c2_9] : memref<60x20xf32, #tpu.memory_space<vmem>>, vector<2x16xf32>
    tpu.vector_store %arg9[%c0_8, %c2_9], %8 {strides = array<i32>} : memref<60x20xf32, #tpu.memory_space<vmem>>, vector<2x16xf32>,
    %10 = vector.shape_cast %6 : vector<1x16xf32> to vector<1x16xf32>
    %11 = vector.broadcast %10 : vector<1x16xf32> to vector<2x16xf32>
    %c18 = arith.constant 18 : index
    %c2_10 = arith.constant 2 : index
    %12 = vector.load %arg9[%c18, %c2_10] : memref<60x20xf32, #tpu.memory_space<vmem>>, vector<2x16xf32>
    tpu.vector_store %arg9[%c18, %c2_10], %11 {strides = array<i32>} : memref<60x20xf32, #tpu.memory_space<vmem>>, vector<2x16xf32>,
    %c0_11 = arith.constant 0 : index
    %c16 = arith.constant 16 : index
    %c0_12 = arith.constant 0 : index
    %13 = vector.load %arg1[%c0_11, %c16, %c0_12] : memref<1x48x16xf32, #tpu.memory_space<vmem>>, vector<1x16x16xf32>
    %14 = vector.shape_cast %13 : vector<1x16x16xf32> to vector<16x16xf32>
    %c22 = arith.constant 22 : index
    %c2_13 = arith.constant 2 : index
    %15 = vector.load %arg9[%c22, %c2_13] : memref<60x20xf32, #tpu.memory_space<vmem>>, vector<16x16xf32>
    tpu.vector_store %arg9[%c22, %c2_13], %14 {strides = array<i32>} : memref<60x20xf32, #tpu.memory_space<vmem>>, vector<16x16xf32>,
    %c0_14 = arith.constant 0 : index
    %c16_15 = arith.constant 16 : index
    %c0_16 = arith.constant 0 : index
    %16 = vector.load %arg1[%c0_14, %c16_15, %c0_16] : memref<1x48x16xf32, #tpu.memory_space<vmem>>, vector<1x1x16xf32>
    %17 = vector.shape_cast %16 : vector<1x1x16xf32> to vector<1x16xf32>
    %c0_17 = arith.constant 0 : index
    %c31 = arith.constant 31 : index
    %c0_18 = arith.constant 0 : index
    %18 = vector.load %arg1[%c0_17, %c31, %c0_18] : memref<1x48x16xf32, #tpu.memory_space<vmem>>, vector<1x1x16xf32>
    %19 = vector.shape_cast %18 : vector<1x1x16xf32> to vector<1x16xf32>
    %20 = vector.shape_cast %17 : vector<1x16xf32> to vector<1x16xf32>
    %21 = vector.broadcast %20 : vector<1x16xf32> to vector<2x16xf32>
    %c20 = arith.constant 20 : index
    %c2_19 = arith.constant 2 : index
    %22 = vector.load %arg9[%c20, %c2_19] : memref<60x20xf32, #tpu.memory_space<vmem>>, vector<2x16xf32>
    tpu.vector_store %arg9[%c20, %c2_19], %21 {strides = array<i32>} : memref<60x20xf32, #tpu.memory_space<vmem>>, vector<2x16xf32>,
    %23 = vector.shape_cast %19 : vector<1x16xf32> to vector<1x16xf32>
    %24 = vector.broadcast %23 : vector<1x16xf32> to vector<2x16xf32>
    %c38 = arith.constant 38 : index
    %c2_20 = arith.constant 2 : index
    %25 = vector.load %arg9[%c38, %c2_20] : memref<60x20xf32, #tpu.memory_space<vmem>>, vector<2x16xf32>
    tpu.vector_store %arg9[%c38, %c2_20], %24 {strides = array<i32>} : memref<60x20xf32, #tpu.memory_space<vmem>>, vector<2x16xf32>,
    %c0_21 = arith.constant 0 : index
    %c32 = arith.constant 32 : index
    %c0_22 = arith.constant 0 : index
    %26 = vector.load %arg1[%c0_21, %c32, %c0_22] : memref<1x48x16xf32, #tpu.memory_space<vmem>>, vector<1x16x16xf32>
    %27 = vector.shape_cast %26 : vector<1x16x16xf32> to vector<16x16xf32>
    %c42 = arith.constant 42 : index
    %c2_23 = arith.constant 2 : index
    %28 = vector.load %arg9[%c42, %c2_23] : memref<60x20xf32, #tpu.memory_space<vmem>>, vector<16x16xf32>
    tpu.vector_store %arg9[%c42, %c2_23], %27 {strides = array<i32>} : memref<60x20xf32, #tpu.memory_space<vmem>>, vector<16x16xf32>,
    %c0_24 = arith.constant 0 : index
    %c32_25 = arith.constant 32 : index
    %c0_26 = arith.constant 0 : index
    %29 = vector.load %arg1[%c0_24, %c32_25, %c0_26] : memref<1x48x16xf32, #tpu.memory_space<vmem>>, vector<1x1x16xf32>
    %30 = vector.shape_cast %29 : vector<1x1x16xf32> to vector<1x16xf32>
    %c0_27 = arith.constant 0 : index
    %c47 = arith.constant 47 : index
    %c0_28 = arith.constant 0 : index
    %31 = vector.load %arg1[%c0_27, %c47, %c0_28] : memref<1x48x16xf32, #tpu.memory_space<vmem>>, vector<1x1x16xf32>
    %32 = vector.shape_cast %31 : vector<1x1x16xf32> to vector<1x16xf32>
    %33 = vector.shape_cast %30 : vector<1x16xf32> to vector<1x16xf32>
    %34 = vector.broadcast %33 : vector<1x16xf32> to vector<2x16xf32>
    %c40 = arith.constant 40 : index
    %c2_29 = arith.constant 2 : index
    %35 = vector.load %arg9[%c40, %c2_29] : memref<60x20xf32, #tpu.memory_space<vmem>>, vector<2x16xf32>
    tpu.vector_store %arg9[%c40, %c2_29], %34 {strides = array<i32>} : memref<60x20xf32, #tpu.memory_space<vmem>>, vector<2x16xf32>,
    %36 = vector.shape_cast %32 : vector<1x16xf32> to vector<1x16xf32>
    %37 = vector.broadcast %36 : vector<1x16xf32> to vector<2x16xf32>
    %c58 = arith.constant 58 : index
    %c2_30 = arith.constant 2 : index
    %38 = vector.load %arg9[%c58, %c2_30] : memref<60x20xf32, #tpu.memory_space<vmem>>, vector<2x16xf32>
    tpu.vector_store %arg9[%c58, %c2_30], %37 {strides = array<i32>} : memref<60x20xf32, #tpu.memory_space<vmem>>, vector<2x16xf32>,
    %c0_31 = arith.constant 0 : index
    %c2_32 = arith.constant 2 : index
    %39 = vector.load %arg9[%c0_31, %c2_32] : memref<60x20xf32, #tpu.memory_space<vmem>>, vector<60x1xf32>
    %40 = tpu.concatenate %39, %39 in 1 : vector<60x1xf32>, vector<60x1xf32> -> vector<60x2xf32>
    %c0_33 = arith.constant 0 : index
    %c0_34 = arith.constant 0 : index
    %41 = vector.load %arg9[%c0_33, %c0_34] : memref<60x20xf32, #tpu.memory_space<vmem>>, vector<60x2xf32>
    tpu.vector_store %arg9[%c0_33, %c0_34], %40 {strides = array<i32>} : memref<60x20xf32, #tpu.memory_space<vmem>>, vector<60x2xf32>,
    %c0_35 = arith.constant 0 : index
    %c17 = arith.constant 17 : index
    %42 = vector.load %arg9[%c0_35, %c17] : memref<60x20xf32, #tpu.memory_space<vmem>>, vector<60x1xf32>
    %43 = tpu.concatenate %42, %42 in 1 : vector<60x1xf32>, vector<60x1xf32> -> vector<60x2xf32>
    %c0_36 = arith.constant 0 : index
    %c18_37 = arith.constant 18 : index
    %44 = vector.load %arg9[%c0_36, %c18_37] : memref<60x20xf32, #tpu.memory_space<vmem>>, vector<60x2xf32>
    tpu.vector_store %arg9[%c0_36, %c18_37], %43 {strides = array<i32>} : memref<60x20xf32, #tpu.memory_space<vmem>>, vector<60x2xf32>,
    %c0_38 = arith.constant 0 : index
    %c0_39 = arith.constant 0 : index
    %45 = vector.load %arg9[%c0_38, %c0_39] : memref<60x20xf32, #tpu.memory_space<vmem>>, vector<12x20xf32>
    %c0_40 = arith.constant 0 : index
    %c0_41 = arith.constant 0 : index
    %46 = vector.load %arg10[%c0_40, %c0_41] : memref<12x540xf32, #tpu.memory_space<vmem>>, vector<12x20xf32>
    tpu.vector_store %arg10[%c0_40, %c0_41], %45 {strides = array<i32>} : memref<12x540xf32, #tpu.memory_space<vmem>>, vector<12x20xf32>,
    %c20_42 = arith.constant 20 : index
    %c0_43 = arith.constant 0 : index
    %47 = vector.load %arg9[%c20_42, %c0_43] : memref<60x20xf32, #tpu.memory_space<vmem>>, vector<12x20xf32>
    %c0_44 = arith.constant 0 : index
    %c20_45 = arith.constant 20 : index
    %48 = vector.load %arg10[%c0_44, %c20_45] : memref<12x540xf32, #tpu.memory_space<vmem>>, vector<12x20xf32>
    tpu.vector_store %arg10[%c0_44, %c20_45], %47 {strides = array<i32>} : memref<12x540xf32, #tpu.memory_space<vmem>>, vector<12x20xf32>,
    %c40_46 = arith.constant 40 : index
    %c0_47 = arith.constant 0 : index
    %49 = vector.load %arg9[%c40_46, %c0_47] : memref<60x20xf32, #tpu.memory_space<vmem>>, vector<12x20xf32>
    %c0_48 = arith.constant 0 : index
    %c40_49 = arith.constant 40 : index
    %50 = vector.load %arg10[%c0_48, %c40_49] : memref<12x540xf32, #tpu.memory_space<vmem>>, vector<12x20xf32>
    tpu.vector_store %arg10[%c0_48, %c40_49], %49 {strides = array<i32>} : memref<12x540xf32, #tpu.memory_space<vmem>>, vector<12x20xf32>,
    %c1 = arith.constant 1 : index
    %c0_50 = arith.constant 0 : index
    %51 = vector.load %arg9[%c1, %c0_50] : memref<60x20xf32, #tpu.memory_space<vmem>>, vector<12x20xf32>
    %c0_51 = arith.constant 0 : index
    %c60 = arith.constant 60 : index
    %52 = vector.load %arg10[%c0_51, %c60] : memref<12x540xf32, #tpu.memory_space<vmem>>, vector<12x20xf32>
    tpu.vector_store %arg10[%c0_51, %c60], %51 {strides = array<i32>} : memref<12x540xf32, #tpu.memory_space<vmem>>, vector<12x20xf32>,
    %c21 = arith.constant 21 : index
    %c0_52 = arith.constant 0 : index
    %53 = vector.load %arg9[%c21, %c0_52] : memref<60x20xf32, #tpu.memory_space<vmem>>, vector<12x20xf32>
    %c0_53 = arith.constant 0 : index
    %c80 = arith.constant 80 : index
    %54 = vector.load %arg10[%c0_53, %c80] : memref<12x540xf32, #tpu.memory_space<vmem>>, vector<12x20xf32>
    tpu.vector_store %arg10[%c0_53, %c80], %53 {strides = array<i32>} : memref<12x540xf32, #tpu.memory_space<vmem>>, vector<12x20xf32>,
    %c41 = arith.constant 41 : index
    %c0_54 = arith.constant 0 : index
    %55 = vector.load %arg9[%c41, %c0_54] : memref<60x20xf32, #tpu.memory_space<vmem>>, vector<12x20xf32>
    %c0_55 = arith.constant 0 : index
    %c100 = arith.constant 100 : index
    %56 = vector.load %arg10[%c0_55, %c100] : memref<12x540xf32, #tpu.memory_space<vmem>>, vector<12x20xf32>
    tpu.vector_store %arg10[%c0_55, %c100], %55 {strides = array<i32>} : memref<12x540xf32, #tpu.memory_space<vmem>>, vector<12x20xf32>,
    %c2_56 = arith.constant 2 : index
    %c0_57 = arith.constant 0 : index
    %57 = vector.load %arg9[%c2_56, %c0_57] : memref<60x20xf32, #tpu.memory_space<vmem>>, vector<12x20xf32>
    %c0_58 = arith.constant 0 : index
    %c120 = arith.constant 120 : index
    %58 = vector.load %arg10[%c0_58, %c120] : memref<12x540xf32, #tpu.memory_space<vmem>>, vector<12x20xf32>
    tpu.vector_store %arg10[%c0_58, %c120], %57 {strides = array<i32>} : memref<12x540xf32, #tpu.memory_space<vmem>>, vector<12x20xf32>,
    %c22_59 = arith.constant 22 : index
    %c0_60 = arith.constant 0 : index
    %59 = vector.load %arg9[%c22_59, %c0_60] : memref<60x20xf32, #tpu.memory_space<vmem>>, vector<12x20xf32>
    %c0_61 = arith.constant 0 : index
    %c140 = arith.constant 140 : index
    %60 = vector.load %arg10[%c0_61, %c140] : memref<12x540xf32, #tpu.memory_space<vmem>>, vector<12x20xf32>
    tpu.vector_store %arg10[%c0_61, %c140], %59 {strides = array<i32>} : memref<12x540xf32, #tpu.memory_space<vmem>>, vector<12x20xf32>,
    %c42_62 = arith.constant 42 : index
    %c0_63 = arith.constant 0 : index
    %61 = vector.load %arg9[%c42_62, %c0_63] : memref<60x20xf32, #tpu.memory_space<vmem>>, vector<12x20xf32>
    %c0_64 = arith.constant 0 : index
    %c160 = arith.constant 160 : index
    %62 = vector.load %arg10[%c0_64, %c160] : memref<12x540xf32, #tpu.memory_space<vmem>>, vector<12x20xf32>
    tpu.vector_store %arg10[%c0_64, %c160], %61 {strides = array<i32>} : memref<12x540xf32, #tpu.memory_space<vmem>>, vector<12x20xf32>,
    %c3 = arith.constant 3 : index
    %c0_65 = arith.constant 0 : index
    %63 = vector.load %arg9[%c3, %c0_65] : memref<60x20xf32, #tpu.memory_space<vmem>>, vector<12x20xf32>
    %c0_66 = arith.constant 0 : index
    %c180 = arith.constant 180 : index
    %64 = vector.load %arg10[%c0_66, %c180] : memref<12x540xf32, #tpu.memory_space<vmem>>, vector<12x20xf32>
    tpu.vector_store %arg10[%c0_66, %c180], %63 {strides = array<i32>} : memref<12x540xf32, #tpu.memory_space<vmem>>, vector<12x20xf32>,
    %c23 = arith.constant 23 : index
    %c0_67 = arith.constant 0 : index
    %65 = vector.load %arg9[%c23, %c0_67] : memref<60x20xf32, #tpu.memory_space<vmem>>, vector<12x20xf32>
    %c0_68 = arith.constant 0 : index
    %c200 = arith.constant 200 : index
    %66 = vector.load %arg10[%c0_68, %c200] : memref<12x540xf32, #tpu.memory_space<vmem>>, vector<12x20xf32>
    tpu.vector_store %arg10[%c0_68, %c200], %65 {strides = array<i32>} : memref<12x540xf32, #tpu.memory_space<vmem>>, vector<12x20xf32>,
    %c43 = arith.constant 43 : index
    %c0_69 = arith.constant 0 : index
    %67 = vector.load %arg9[%c43, %c0_69] : memref<60x20xf32, #tpu.memory_space<vmem>>, vector<12x20xf32>
    %c0_70 = arith.constant 0 : index
    %c220 = arith.constant 220 : index
    %68 = vector.load %arg10[%c0_70, %c220] : memref<12x540xf32, #tpu.memory_space<vmem>>, vector<12x20xf32>
    tpu.vector_store %arg10[%c0_70, %c220], %67 {strides = array<i32>} : memref<12x540xf32, #tpu.memory_space<vmem>>, vector<12x20xf32>,
    %c4 = arith.constant 4 : index
    %c0_71 = arith.constant 0 : index
    %69 = vector.load %arg9[%c4, %c0_71] : memref<60x20xf32, #tpu.memory_space<vmem>>, vector<12x20xf32>
    %c0_72 = arith.constant 0 : index
    %c240 = arith.constant 240 : index
    %70 = vector.load %arg10[%c0_72, %c240] : memref<12x540xf32, #tpu.memory_space<vmem>>, vector<12x20xf32>
    tpu.vector_store %arg10[%c0_72, %c240], %69 {strides = array<i32>} : memref<12x540xf32, #tpu.memory_space<vmem>>, vector<12x20xf32>,
    %c24 = arith.constant 24 : index
    %c0_73 = arith.constant 0 : index
    %71 = vector.load %arg9[%c24, %c0_73] : memref<60x20xf32, #tpu.memory_space<vmem>>, vector<12x20xf32>
    %c0_74 = arith.constant 0 : index
    %c260 = arith.constant 260 : index
    %72 = vector.load %arg10[%c0_74, %c260] : memref<12x540xf32, #tpu.memory_space<vmem>>, vector<12x20xf32>
    tpu.vector_store %arg10[%c0_74, %c260], %71 {strides = array<i32>} : memref<12x540xf32, #tpu.memory_space<vmem>>, vector<12x20xf32>,
    %c44 = arith.constant 44 : index
    %c0_75 = arith.constant 0 : index
    %73 = vector.load %arg9[%c44, %c0_75] : memref<60x20xf32, #tpu.memory_space<vmem>>, vector<12x20xf32>
    %c0_76 = arith.constant 0 : index
    %c280 = arith.constant 280 : index
    %74 = vector.load %arg10[%c0_76, %c280] : memref<12x540xf32, #tpu.memory_space<vmem>>, vector<12x20xf32>
    tpu.vector_store %arg10[%c0_76, %c280], %73 {strides = array<i32>} : memref<12x540xf32, #tpu.memory_space<vmem>>, vector<12x20xf32>,
    %c5 = arith.constant 5 : index
    %c0_77 = arith.constant 0 : index
    %75 = vector.load %arg9[%c5, %c0_77] : memref<60x20xf32, #tpu.memory_space<vmem>>, vector<12x20xf32>
    %c0_78 = arith.constant 0 : index
    %c300 = arith.constant 300 : index
    %76 = vector.load %arg10[%c0_78, %c300] : memref<12x540xf32, #tpu.memory_space<vmem>>, vector<12x20xf32>
    tpu.vector_store %arg10[%c0_78, %c300], %75 {strides = array<i32>} : memref<12x540xf32, #tpu.memory_space<vmem>>, vector<12x20xf32>,
    %c25 = arith.constant 25 : index
    %c0_79 = arith.constant 0 : index
    %77 = vector.load %arg9[%c25, %c0_79] : memref<60x20xf32, #tpu.memory_space<vmem>>, vector<12x20xf32>
    %c0_80 = arith.constant 0 : index
    %c320 = arith.constant 320 : index
    %78 = vector.load %arg10[%c0_80, %c320] : memref<12x540xf32, #tpu.memory_space<vmem>>, vector<12x20xf32>
    tpu.vector_store %arg10[%c0_80, %c320], %77 {strides = array<i32>} : memref<12x540xf32, #tpu.memory_space<vmem>>, vector<12x20xf32>,
    %c45 = arith.constant 45 : index
    %c0_81 = arith.constant 0 : index
    %79 = vector.load %arg9[%c45, %c0_81] : memref<60x20xf32, #tpu.memory_space<vmem>>, vector<12x20xf32>
    %c0_82 = arith.constant 0 : index
    %c340 = arith.constant 340 : index
    %80 = vector.load %arg10[%c0_82, %c340] : memref<12x540xf32, #tpu.memory_space<vmem>>, vector<12x20xf32>
    tpu.vector_store %arg10[%c0_82, %c340], %79 {strides = array<i32>} : memref<12x540xf32, #tpu.memory_space<vmem>>, vector<12x20xf32>,
    %c6 = arith.constant 6 : index
    %c0_83 = arith.constant 0 : index
    %81 = vector.load %arg9[%c6, %c0_83] : memref<60x20xf32, #tpu.memory_space<vmem>>, vector<12x20xf32>
    %c0_84 = arith.constant 0 : index
    %c360 = arith.constant 360 : index
    %82 = vector.load %arg10[%c0_84, %c360] : memref<12x540xf32, #tpu.memory_space<vmem>>, vector<12x20xf32>
    tpu.vector_store %arg10[%c0_84, %c360], %81 {strides = array<i32>} : memref<12x540xf32, #tpu.memory_space<vmem>>, vector<12x20xf32>,
    %c26 = arith.constant 26 : index
    %c0_85 = arith.constant 0 : index
    %83 = vector.load %arg9[%c26, %c0_85] : memref<60x20xf32, #tpu.memory_space<vmem>>, vector<12x20xf32>
    %c0_86 = arith.constant 0 : index
    %c380 = arith.constant 380 : index
    %84 = vector.load %arg10[%c0_86, %c380] : memref<12x540xf32, #tpu.memory_space<vmem>>, vector<12x20xf32>
    tpu.vector_store %arg10[%c0_86, %c380], %83 {strides = array<i32>} : memref<12x540xf32, #tpu.memory_space<vmem>>, vector<12x20xf32>,
    %c46 = arith.constant 46 : index
    %c0_87 = arith.constant 0 : index
    %85 = vector.load %arg9[%c46, %c0_87] : memref<60x20xf32, #tpu.memory_space<vmem>>, vector<12x20xf32>
    %c0_88 = arith.constant 0 : index
    %c400 = arith.constant 400 : index
    %86 = vector.load %arg10[%c0_88, %c400] : memref<12x540xf32, #tpu.memory_space<vmem>>, vector<12x20xf32>
    tpu.vector_store %arg10[%c0_88, %c400], %85 {strides = array<i32>} : memref<12x540xf32, #tpu.memory_space<vmem>>, vector<12x20xf32>,
    %c7 = arith.constant 7 : index
    %c0_89 = arith.constant 0 : index
    %87 = vector.load %arg9[%c7, %c0_89] : memref<60x20xf32, #tpu.memory_space<vmem>>, vector<12x20xf32>
    %c0_90 = arith.constant 0 : index
    %c420 = arith.constant 420 : index
    %88 = vector.load %arg10[%c0_90, %c420] : memref<12x540xf32, #tpu.memory_space<vmem>>, vector<12x20xf32>
    tpu.vector_store %arg10[%c0_90, %c420], %87 {strides = array<i32>} : memref<12x540xf32, #tpu.memory_space<vmem>>, vector<12x20xf32>,
    %c27 = arith.constant 27 : index
    %c0_91 = arith.constant 0 : index
    %89 = vector.load %arg9[%c27, %c0_91] : memref<60x20xf32, #tpu.memory_space<vmem>>, vector<12x20xf32>
    %c0_92 = arith.constant 0 : index
    %c440 = arith.constant 440 : index
    %90 = vector.load %arg10[%c0_92, %c440] : memref<12x540xf32, #tpu.memory_space<vmem>>, vector<12x20xf32>
    tpu.vector_store %arg10[%c0_92, %c440], %89 {strides = array<i32>} : memref<12x540xf32, #tpu.memory_space<vmem>>, vector<12x20xf32>,
    %c47_93 = arith.constant 47 : index
    %c0_94 = arith.constant 0 : index
    %91 = vector.load %arg9[%c47_93, %c0_94] : memref<60x20xf32, #tpu.memory_space<vmem>>, vector<12x20xf32>
    %c0_95 = arith.constant 0 : index
    %c460 = arith.constant 460 : index
    %92 = vector.load %arg10[%c0_95, %c460] : memref<12x540xf32, #tpu.memory_space<vmem>>, vector<12x20xf32>
    tpu.vector_store %arg10[%c0_95, %c460], %91 {strides = array<i32>} : memref<12x540xf32, #tpu.memory_space<vmem>>, vector<12x20xf32>,
    %c8 = arith.constant 8 : index
    %c0_96 = arith.constant 0 : index
    %93 = vector.load %arg9[%c8, %c0_96] : memref<60x20xf32, #tpu.memory_space<vmem>>, vector<12x20xf32>
    %c0_97 = arith.constant 0 : index
    %c480 = arith.constant 480 : index
    %94 = vector.load %arg10[%c0_97, %c480] : memref<12x540xf32, #tpu.memory_space<vmem>>, vector<12x20xf32>
    tpu.vector_store %arg10[%c0_97, %c480], %93 {strides = array<i32>} : memref<12x540xf32, #tpu.memory_space<vmem>>, vector<12x20xf32>,
    %c28 = arith.constant 28 : index
    %c0_98 = arith.constant 0 : index
    %95 = vector.load %arg9[%c28, %c0_98] : memref<60x20xf32, #tpu.memory_space<vmem>>, vector<12x20xf32>
    %c0_99 = arith.constant 0 : index
    %c500 = arith.constant 500 : index
    %96 = vector.load %arg10[%c0_99, %c500] : memref<12x540xf32, #tpu.memory_space<vmem>>, vector<12x20xf32>
    tpu.vector_store %arg10[%c0_99, %c500], %95 {strides = array<i32>} : memref<12x540xf32, #tpu.memory_space<vmem>>, vector<12x20xf32>,
    %c48 = arith.constant 48 : index
    %c0_100 = arith.constant 0 : index
    %97 = vector.load %arg9[%c48, %c0_100] : memref<60x20xf32, #tpu.memory_space<vmem>>, vector<12x20xf32>
    %c0_101 = arith.constant 0 : index
    %c520 = arith.constant 520 : index
    %98 = vector.load %arg10[%c0_101, %c520] : memref<12x540xf32, #tpu.memory_space<vmem>>, vector<12x20xf32>
    tpu.vector_store %arg10[%c0_101, %c520], %97 {strides = array<i32>} : memref<12x540xf32, #tpu.memory_space<vmem>>, vector<12x20xf32>,
    %c0_102 = arith.constant 0 : index
    %c0_103 = arith.constant 0 : index
    %99 = vector.load %arg10[%c0_102, %c0_103] : memref<12x540xf32, #tpu.memory_space<vmem>>, vector<12x540xf32>
    %c0_104 = arith.constant 0 : index
    %c0_105 = arith.constant 0 : index
    %100 = vector.load %arg2[%c0_104, %c0_105] : memref<540x768xf32, #tpu.memory_space<vmem>>, vector<540x768xf32>
    %cst = arith.constant dense<0.000000e+00> : vector<12x768xf32>
    %101 = tpu.matmul %99, %100, %cst {dimension_numbers = #tpu.dot_dimension_numbers<[1], [0], [0], [1], [0, 0, 1, 1], [], []>} : vector<12x540xf32>, vector<540x768xf32>, vector<12x768xf32> -> vector<12x768xf32>
    %c0_106 = arith.constant 0 : index
    %c0_107 = arith.constant 0 : index
    %102 = vector.load %arg3[%c0_106, %c0_107] : memref<1x768xf32, #tpu.memory_space<vmem>>, vector<1x768xf32>
    %103 = vector.broadcast %102 : vector<1x768xf32> to vector<12x768xf32>
    %104 = arith.addf %101, %103 : vector<12x768xf32>
    %cst_108 = arith.constant 0.000000e+00 : f32
    %105 = vector.broadcast %cst_108 : f32 to vector<12x768xf32>
    %106 = arith.maximumf %104, %105 : vector<12x768xf32>
    %c0_109 = arith.constant 0 : index
    %c0_110 = arith.constant 0 : index
    %107 = vector.load %arg11[%c0_109, %c0_110] : memref<12x768xf32, #tpu.memory_space<vmem>>, vector<12x768xf32>
    tpu.vector_store %arg11[%c0_109, %c0_110], %106 {strides = array<i32>} : memref<12x768xf32, #tpu.memory_space<vmem>>, vector<12x768xf32>,
    %c0_111 = arith.constant 0 : index
    %c0_112 = arith.constant 0 : index
    %108 = vector.load %arg4[%c0_111, %c0_112] : memref<64x32xf32, #tpu.memory_space<vmem>>, vector<64x32xf32>
    %c0_113 = arith.constant 0 : index
    %c0_114 = arith.constant 0 : index
    %109 = vector.load %arg5[%c0_113, %c0_114] : memref<1x32xf32, #tpu.memory_space<vmem>>, vector<1x32xf32>
    %c0_115 = arith.constant 0 : index
    %c0_116 = arith.constant 0 : index
    %110 = vector.load %arg11[%c0_115, %c0_116] : memref<12x768xf32, #tpu.memory_space<vmem>>, vector<12x64xf32>
    %cst_117 = arith.constant dense<0.000000e+00> : vector<12x32xf32>
    %111 = tpu.matmul %110, %108, %cst_117 {dimension_numbers = #tpu.dot_dimension_numbers<[1], [0], [0], [1], [0, 0, 1, 1], [], []>} : vector<12x64xf32>, vector<64x32xf32>, vector<12x32xf32> -> vector<12x32xf32>
    %112 = vector.broadcast %109 : vector<1x32xf32> to vector<12x32xf32>
    %113 = arith.addf %111, %112 : vector<12x32xf32>
    %cst_118 = arith.constant 0.000000e+00 : f32
    %114 = vector.broadcast %cst_118 : f32 to vector<12x32xf32>
    %115 = arith.maximumf %113, %114 : vector<12x32xf32>
    %c4_119 = arith.constant 4 : index
    %c128 = arith.constant 128 : index
    %116 = vector.load %arg12[%c4_119, %c128] : memref<20x640xf32, #tpu.memory_space<vmem>>, vector<12x32xf32>
    tpu.vector_store %arg12[%c4_119, %c128], %115 {strides = array<i32>} : memref<20x640xf32, #tpu.memory_space<vmem>>, vector<12x32xf32>,
    %c0_120 = arith.constant 0 : index
    %c64 = arith.constant 64 : index
    %117 = vector.load %arg11[%c0_120, %c64] : memref<12x768xf32, #tpu.memory_space<vmem>>, vector<12x64xf32>
    %cst_121 = arith.constant dense<0.000000e+00> : vector<12x32xf32>
    %118 = tpu.matmul %117, %108, %cst_121 {dimension_numbers = #tpu.dot_dimension_numbers<[1], [0], [0], [1], [0, 0, 1, 1], [], []>} : vector<12x64xf32>, vector<64x32xf32>, vector<12x32xf32> -> vector<12x32xf32>
    %119 = vector.broadcast %109 : vector<1x32xf32> to vector<12x32xf32>
    %120 = arith.addf %118, %119 : vector<12x32xf32>
    %cst_122 = arith.constant 0.000000e+00 : f32
    %121 = vector.broadcast %cst_122 : f32 to vector<12x32xf32>
    %122 = arith.maximumf %120, %121 : vector<12x32xf32>
    %c4_123 = arith.constant 4 : index
    %c160_124 = arith.constant 160 : index
    %123 = vector.load %arg12[%c4_123, %c160_124] : memref<20x640xf32, #tpu.memory_space<vmem>>, vector<12x32xf32>
    tpu.vector_store %arg12[%c4_123, %c160_124], %122 {strides = array<i32>} : memref<20x640xf32, #tpu.memory_space<vmem>>, vector<12x32xf32>,
    %c0_125 = arith.constant 0 : index
    %c128_126 = arith.constant 128 : index
    %124 = vector.load %arg11[%c0_125, %c128_126] : memref<12x768xf32, #tpu.memory_space<vmem>>, vector<12x64xf32>
    %cst_127 = arith.constant dense<0.000000e+00> : vector<12x32xf32>
    %125 = tpu.matmul %124, %108, %cst_127 {dimension_numbers = #tpu.dot_dimension_numbers<[1], [0], [0], [1], [0, 0, 1, 1], [], []>} : vector<12x64xf32>, vector<64x32xf32>, vector<12x32xf32> -> vector<12x32xf32>
    %126 = vector.broadcast %109 : vector<1x32xf32> to vector<12x32xf32>
    %127 = arith.addf %125, %126 : vector<12x32xf32>
    %cst_128 = arith.constant 0.000000e+00 : f32
    %128 = vector.broadcast %cst_128 : f32 to vector<12x32xf32>
    %129 = arith.maximumf %127, %128 : vector<12x32xf32>
    %c4_129 = arith.constant 4 : index
    %c192 = arith.constant 192 : index
    %130 = vector.load %arg12[%c4_129, %c192] : memref<20x640xf32, #tpu.memory_space<vmem>>, vector<12x32xf32>
    tpu.vector_store %arg12[%c4_129, %c192], %129 {strides = array<i32>} : memref<20x640xf32, #tpu.memory_space<vmem>>, vector<12x32xf32>,
    %c0_130 = arith.constant 0 : index
    %c192_131 = arith.constant 192 : index
    %131 = vector.load %arg11[%c0_130, %c192_131] : memref<12x768xf32, #tpu.memory_space<vmem>>, vector<12x64xf32>
    %cst_132 = arith.constant dense<0.000000e+00> : vector<12x32xf32>
    %132 = tpu.matmul %131, %108, %cst_132 {dimension_numbers = #tpu.dot_dimension_numbers<[1], [0], [0], [1], [0, 0, 1, 1], [], []>} : vector<12x64xf32>, vector<64x32xf32>, vector<12x32xf32> -> vector<12x32xf32>
    %133 = vector.broadcast %109 : vector<1x32xf32> to vector<12x32xf32>
    %134 = arith.addf %132, %133 : vector<12x32xf32>
    %cst_133 = arith.constant 0.000000e+00 : f32
    %135 = vector.broadcast %cst_133 : f32 to vector<12x32xf32>
    %136 = arith.maximumf %134, %135 : vector<12x32xf32>
    %c4_134 = arith.constant 4 : index
    %c224 = arith.constant 224 : index
    %137 = vector.load %arg12[%c4_134, %c224] : memref<20x640xf32, #tpu.memory_space<vmem>>, vector<12x32xf32>
    tpu.vector_store %arg12[%c4_134, %c224], %136 {strides = array<i32>} : memref<20x640xf32, #tpu.memory_space<vmem>>, vector<12x32xf32>,
    %c0_135 = arith.constant 0 : index
    %c256 = arith.constant 256 : index
    %138 = vector.load %arg11[%c0_135, %c256] : memref<12x768xf32, #tpu.memory_space<vmem>>, vector<12x64xf32>
    %cst_136 = arith.constant dense<0.000000e+00> : vector<12x32xf32>
    %139 = tpu.matmul %138, %108, %cst_136 {dimension_numbers = #tpu.dot_dimension_numbers<[1], [0], [0], [1], [0, 0, 1, 1], [], []>} : vector<12x64xf32>, vector<64x32xf32>, vector<12x32xf32> -> vector<12x32xf32>
    %140 = vector.broadcast %109 : vector<1x32xf32> to vector<12x32xf32>
    %141 = arith.addf %139, %140 : vector<12x32xf32>
    %cst_137 = arith.constant 0.000000e+00 : f32
    %142 = vector.broadcast %cst_137 : f32 to vector<12x32xf32>
    %143 = arith.maximumf %141, %142 : vector<12x32xf32>
    %c4_138 = arith.constant 4 : index
    %c256_139 = arith.constant 256 : index
    %144 = vector.load %arg12[%c4_138, %c256_139] : memref<20x640xf32, #tpu.memory_space<vmem>>, vector<12x32xf32>
    tpu.vector_store %arg12[%c4_138, %c256_139], %143 {strides = array<i32>} : memref<20x640xf32, #tpu.memory_space<vmem>>, vector<12x32xf32>,
    %c0_140 = arith.constant 0 : index
    %c320_141 = arith.constant 320 : index
    %145 = vector.load %arg11[%c0_140, %c320_141] : memref<12x768xf32, #tpu.memory_space<vmem>>, vector<12x64xf32>
    %cst_142 = arith.constant dense<0.000000e+00> : vector<12x32xf32>
    %146 = tpu.matmul %145, %108, %cst_142 {dimension_numbers = #tpu.dot_dimension_numbers<[1], [0], [0], [1], [0, 0, 1, 1], [], []>} : vector<12x64xf32>, vector<64x32xf32>, vector<12x32xf32> -> vector<12x32xf32>
    %147 = vector.broadcast %109 : vector<1x32xf32> to vector<12x32xf32>
    %148 = arith.addf %146, %147 : vector<12x32xf32>
    %cst_143 = arith.constant 0.000000e+00 : f32
    %149 = vector.broadcast %cst_143 : f32 to vector<12x32xf32>
    %150 = arith.maximumf %148, %149 : vector<12x32xf32>
    %c4_144 = arith.constant 4 : index
    %c288 = arith.constant 288 : index
    %151 = vector.load %arg12[%c4_144, %c288] : memref<20x640xf32, #tpu.memory_space<vmem>>, vector<12x32xf32>
    tpu.vector_store %arg12[%c4_144, %c288], %150 {strides = array<i32>} : memref<20x640xf32, #tpu.memory_space<vmem>>, vector<12x32xf32>,
    %c0_145 = arith.constant 0 : index
    %c384 = arith.constant 384 : index
    %152 = vector.load %arg11[%c0_145, %c384] : memref<12x768xf32, #tpu.memory_space<vmem>>, vector<12x64xf32>
    %cst_146 = arith.constant dense<0.000000e+00> : vector<12x32xf32>
    %153 = tpu.matmul %152, %108, %cst_146 {dimension_numbers = #tpu.dot_dimension_numbers<[1], [0], [0], [1], [0, 0, 1, 1], [], []>} : vector<12x64xf32>, vector<64x32xf32>, vector<12x32xf32> -> vector<12x32xf32>
    %154 = vector.broadcast %109 : vector<1x32xf32> to vector<12x32xf32>
    %155 = arith.addf %153, %154 : vector<12x32xf32>
    %cst_147 = arith.constant 0.000000e+00 : f32
    %156 = vector.broadcast %cst_147 : f32 to vector<12x32xf32>
    %157 = arith.maximumf %155, %156 : vector<12x32xf32>
    %c4_148 = arith.constant 4 : index
    %c320_149 = arith.constant 320 : index
    %158 = vector.load %arg12[%c4_148, %c320_149] : memref<20x640xf32, #tpu.memory_space<vmem>>, vector<12x32xf32>
    tpu.vector_store %arg12[%c4_148, %c320_149], %157 {strides = array<i32>} : memref<20x640xf32, #tpu.memory_space<vmem>>, vector<12x32xf32>,
    %c0_150 = arith.constant 0 : index
    %c448 = arith.constant 448 : index
    %159 = vector.load %arg11[%c0_150, %c448] : memref<12x768xf32, #tpu.memory_space<vmem>>, vector<12x64xf32>
    %cst_151 = arith.constant dense<0.000000e+00> : vector<12x32xf32>
    %160 = tpu.matmul %159, %108, %cst_151 {dimension_numbers = #tpu.dot_dimension_numbers<[1], [0], [0], [1], [0, 0, 1, 1], [], []>} : vector<12x64xf32>, vector<64x32xf32>, vector<12x32xf32> -> vector<12x32xf32>
    %161 = vector.broadcast %109 : vector<1x32xf32> to vector<12x32xf32>
    %162 = arith.addf %160, %161 : vector<12x32xf32>
    %cst_152 = arith.constant 0.000000e+00 : f32
    %163 = vector.broadcast %cst_152 : f32 to vector<12x32xf32>
    %164 = arith.maximumf %162, %163 : vector<12x32xf32>
    %c4_153 = arith.constant 4 : index
    %c352 = arith.constant 352 : index
    %165 = vector.load %arg12[%c4_153, %c352] : memref<20x640xf32, #tpu.memory_space<vmem>>, vector<12x32xf32>
    tpu.vector_store %arg12[%c4_153, %c352], %164 {strides = array<i32>} : memref<20x640xf32, #tpu.memory_space<vmem>>, vector<12x32xf32>,
    %c0_154 = arith.constant 0 : index
    %c512 = arith.constant 512 : index
    %166 = vector.load %arg11[%c0_154, %c512] : memref<12x768xf32, #tpu.memory_space<vmem>>, vector<12x64xf32>
    %cst_155 = arith.constant dense<0.000000e+00> : vector<12x32xf32>
    %167 = tpu.matmul %166, %108, %cst_155 {dimension_numbers = #tpu.dot_dimension_numbers<[1], [0], [0], [1], [0, 0, 1, 1], [], []>} : vector<12x64xf32>, vector<64x32xf32>, vector<12x32xf32> -> vector<12x32xf32>
    %168 = vector.broadcast %109 : vector<1x32xf32> to vector<12x32xf32>
    %169 = arith.addf %167, %168 : vector<12x32xf32>
    %cst_156 = arith.constant 0.000000e+00 : f32
    %170 = vector.broadcast %cst_156 : f32 to vector<12x32xf32>
    %171 = arith.maximumf %169, %170 : vector<12x32xf32>
    %c4_157 = arith.constant 4 : index
    %c384_158 = arith.constant 384 : index
    %172 = vector.load %arg12[%c4_157, %c384_158] : memref<20x640xf32, #tpu.memory_space<vmem>>, vector<12x32xf32>
    tpu.vector_store %arg12[%c4_157, %c384_158], %171 {strides = array<i32>} : memref<20x640xf32, #tpu.memory_space<vmem>>, vector<12x32xf32>,
    %c0_159 = arith.constant 0 : index
    %c576 = arith.constant 576 : index
    %173 = vector.load %arg11[%c0_159, %c576] : memref<12x768xf32, #tpu.memory_space<vmem>>, vector<12x64xf32>
    %cst_160 = arith.constant dense<0.000000e+00> : vector<12x32xf32>
    %174 = tpu.matmul %173, %108, %cst_160 {dimension_numbers = #tpu.dot_dimension_numbers<[1], [0], [0], [1], [0, 0, 1, 1], [], []>} : vector<12x64xf32>, vector<64x32xf32>, vector<12x32xf32> -> vector<12x32xf32>
    %175 = vector.broadcast %109 : vector<1x32xf32> to vector<12x32xf32>
    %176 = arith.addf %174, %175 : vector<12x32xf32>
    %cst_161 = arith.constant 0.000000e+00 : f32
    %177 = vector.broadcast %cst_161 : f32 to vector<12x32xf32>
    %178 = arith.maximumf %176, %177 : vector<12x32xf32>
    %c4_162 = arith.constant 4 : index
    %c416 = arith.constant 416 : index
    %179 = vector.load %arg12[%c4_162, %c416] : memref<20x640xf32, #tpu.memory_space<vmem>>, vector<12x32xf32>
    tpu.vector_store %arg12[%c4_162, %c416], %178 {strides = array<i32>} : memref<20x640xf32, #tpu.memory_space<vmem>>, vector<12x32xf32>,
    %c0_163 = arith.constant 0 : index
    %c640 = arith.constant 640 : index
    %180 = vector.load %arg11[%c0_163, %c640] : memref<12x768xf32, #tpu.memory_space<vmem>>, vector<12x64xf32>
    %cst_164 = arith.constant dense<0.000000e+00> : vector<12x32xf32>
    %181 = tpu.matmul %180, %108, %cst_164 {dimension_numbers = #tpu.dot_dimension_numbers<[1], [0], [0], [1], [0, 0, 1, 1], [], []>} : vector<12x64xf32>, vector<64x32xf32>, vector<12x32xf32> -> vector<12x32xf32>
    %182 = vector.broadcast %109 : vector<1x32xf32> to vector<12x32xf32>
    %183 = arith.addf %181, %182 : vector<12x32xf32>
    %cst_165 = arith.constant 0.000000e+00 : f32
    %184 = vector.broadcast %cst_165 : f32 to vector<12x32xf32>
    %185 = arith.maximumf %183, %184 : vector<12x32xf32>
    %c4_166 = arith.constant 4 : index
    %c448_167 = arith.constant 448 : index
    %186 = vector.load %arg12[%c4_166, %c448_167] : memref<20x640xf32, #tpu.memory_space<vmem>>, vector<12x32xf32>
    tpu.vector_store %arg12[%c4_166, %c448_167], %185 {strides = array<i32>} : memref<20x640xf32, #tpu.memory_space<vmem>>, vector<12x32xf32>,
    %c0_168 = arith.constant 0 : index
    %c704 = arith.constant 704 : index
    %187 = vector.load %arg11[%c0_168, %c704] : memref<12x768xf32, #tpu.memory_space<vmem>>, vector<12x64xf32>
    %cst_169 = arith.constant dense<0.000000e+00> : vector<12x32xf32>
    %188 = tpu.matmul %187, %108, %cst_169 {dimension_numbers = #tpu.dot_dimension_numbers<[1], [0], [0], [1], [0, 0, 1, 1], [], []>} : vector<12x64xf32>, vector<64x32xf32>, vector<12x32xf32> -> vector<12x32xf32>
    %189 = vector.broadcast %109 : vector<1x32xf32> to vector<12x32xf32>
    %190 = arith.addf %188, %189 : vector<12x32xf32>
    %cst_170 = arith.constant 0.000000e+00 : f32
    %191 = vector.broadcast %cst_170 : f32 to vector<12x32xf32>
    %192 = arith.maximumf %190, %191 : vector<12x32xf32>
    %c4_171 = arith.constant 4 : index
    %c480_172 = arith.constant 480 : index
    %193 = vector.load %arg12[%c4_171, %c480_172] : memref<20x640xf32, #tpu.memory_space<vmem>>, vector<12x32xf32>
    tpu.vector_store %arg12[%c4_171, %c480_172], %192 {strides = array<i32>} : memref<20x640xf32, #tpu.memory_space<vmem>>, vector<12x32xf32>,
    %c4_173 = arith.constant 4 : index
    %c128_174 = arith.constant 128 : index
    %194 = vector.load %arg12[%c4_173, %c128_174] : memref<20x640xf32, #tpu.memory_space<vmem>>, vector<1x384xf32>
    %195 = vector.shape_cast %194 : vector<1x384xf32> to vector<1x384xf32>
    %196 = vector.broadcast %195 : vector<1x384xf32> to vector<4x384xf32>
    %c0_175 = arith.constant 0 : index
    %c128_176 = arith.constant 128 : index
    %197 = vector.load %arg12[%c0_175, %c128_176] : memref<20x640xf32, #tpu.memory_space<vmem>>, vector<4x384xf32>
    tpu.vector_store %arg12[%c0_175, %c128_176], %196 {strides = array<i32>} : memref<20x640xf32, #tpu.memory_space<vmem>>, vector<4x384xf32>,
    %c15_177 = arith.constant 15 : index
    %c128_178 = arith.constant 128 : index
    %198 = vector.load %arg12[%c15_177, %c128_178] : memref<20x640xf32, #tpu.memory_space<vmem>>, vector<1x384xf32>
    %199 = vector.shape_cast %198 : vector<1x384xf32> to vector<1x384xf32>
    %200 = vector.broadcast %199 : vector<1x384xf32> to vector<4x384xf32>
    %c16_179 = arith.constant 16 : index
    %c128_180 = arith.constant 128 : index
    %201 = vector.load %arg12[%c16_179, %c128_180] : memref<20x640xf32, #tpu.memory_space<vmem>>, vector<4x384xf32>
    tpu.vector_store %arg12[%c16_179, %c128_180], %200 {strides = array<i32>} : memref<20x640xf32, #tpu.memory_space<vmem>>, vector<4x384xf32>,
    %c0_181 = arith.constant 0 : index
    %c128_182 = arith.constant 128 : index
    %202 = vector.load %arg12[%c0_181, %c128_182] : memref<20x640xf32, #tpu.memory_space<vmem>>, vector<20x32xf32>
    %203 = tpu.concatenate %202, %202, %202, %202 in 1 : vector<20x32xf32>, vector<20x32xf32>, vector<20x32xf32>, vector<20x32xf32> -> vector<20x128xf32>
    %c0_183 = arith.constant 0 : index
    %c0_184 = arith.constant 0 : index
    %204 = vector.load %arg12[%c0_183, %c0_184] : memref<20x640xf32, #tpu.memory_space<vmem>>, vector<20x128xf32>
    tpu.vector_store %arg12[%c0_183, %c0_184], %203 {strides = array<i32>} : memref<20x640xf32, #tpu.memory_space<vmem>>, vector<20x128xf32>,
    %c0_185 = arith.constant 0 : index
    %c480_186 = arith.constant 480 : index
    %205 = vector.load %arg12[%c0_185, %c480_186] : memref<20x640xf32, #tpu.memory_space<vmem>>, vector<20x32xf32>
    %206 = tpu.concatenate %205, %205, %205, %205 in 1 : vector<20x32xf32>, vector<20x32xf32>, vector<20x32xf32>, vector<20x32xf32> -> vector<20x128xf32>
    %c0_187 = arith.constant 0 : index
    %c512_188 = arith.constant 512 : index
    %207 = vector.load %arg12[%c0_187, %c512_188] : memref<20x640xf32, #tpu.memory_space<vmem>>, vector<20x128xf32>
    tpu.vector_store %arg12[%c0_187, %c512_188], %206 {strides = array<i32>} : memref<20x640xf32, #tpu.memory_space<vmem>>, vector<20x128xf32>,
    %c0_189 = arith.constant 0 : index
    %c0_190 = arith.constant 0 : index
    %208 = vector.load %arg12[%c0_189, %c0_190] : memref<20x640xf32, #tpu.memory_space<vmem>>, vector<16x640xf32>
    %c0_191 = arith.constant 0 : index
    %c0_192 = arith.constant 0 : index
    %209 = vector.load %arg13[%c0_191, %c0_192] : memref<16x3200xf32, #tpu.memory_space<vmem>>, vector<16x640xf32>
    tpu.vector_store %arg13[%c0_191, %c0_192], %208 {strides = array<i32>} : memref<16x3200xf32, #tpu.memory_space<vmem>>, vector<16x640xf32>,
    %c1_193 = arith.constant 1 : index
    %c0_194 = arith.constant 0 : index
    %210 = vector.load %arg12[%c1_193, %c0_194] : memref<20x640xf32, #tpu.memory_space<vmem>>, vector<16x640xf32>
    %c0_195 = arith.constant 0 : index
    %c640_196 = arith.constant 640 : index
    %211 = vector.load %arg13[%c0_195, %c640_196] : memref<16x3200xf32, #tpu.memory_space<vmem>>, vector<16x640xf32>
    tpu.vector_store %arg13[%c0_195, %c640_196], %210 {strides = array<i32>} : memref<16x3200xf32, #tpu.memory_space<vmem>>, vector<16x640xf32>,
    %c2_197 = arith.constant 2 : index
    %c0_198 = arith.constant 0 : index
    %212 = vector.load %arg12[%c2_197, %c0_198] : memref<20x640xf32, #tpu.memory_space<vmem>>, vector<16x640xf32>
    %c0_199 = arith.constant 0 : index
    %c1280 = arith.constant 1280 : index
    %213 = vector.load %arg13[%c0_199, %c1280] : memref<16x3200xf32, #tpu.memory_space<vmem>>, vector<16x640xf32>
    tpu.vector_store %arg13[%c0_199, %c1280], %212 {strides = array<i32>} : memref<16x3200xf32, #tpu.memory_space<vmem>>, vector<16x640xf32>,
    %c3_200 = arith.constant 3 : index
    %c0_201 = arith.constant 0 : index
    %214 = vector.load %arg12[%c3_200, %c0_201] : memref<20x640xf32, #tpu.memory_space<vmem>>, vector<16x640xf32>
    %c0_202 = arith.constant 0 : index
    %c1920 = arith.constant 1920 : index
    %215 = vector.load %arg13[%c0_202, %c1920] : memref<16x3200xf32, #tpu.memory_space<vmem>>, vector<16x640xf32>
    tpu.vector_store %arg13[%c0_202, %c1920], %214 {strides = array<i32>} : memref<16x3200xf32, #tpu.memory_space<vmem>>, vector<16x640xf32>,
    %c4_203 = arith.constant 4 : index
    %c0_204 = arith.constant 0 : index
    %216 = vector.load %arg12[%c4_203, %c0_204] : memref<20x640xf32, #tpu.memory_space<vmem>>, vector<16x640xf32>
    %c0_205 = arith.constant 0 : index
    %c2560 = arith.constant 2560 : index
    %217 = vector.load %arg13[%c0_205, %c2560] : memref<16x3200xf32, #tpu.memory_space<vmem>>, vector<16x640xf32>
    tpu.vector_store %arg13[%c0_205, %c2560], %216 {strides = array<i32>} : memref<16x3200xf32, #tpu.memory_space<vmem>>, vector<16x640xf32>,
    %c0_206 = arith.constant 0 : index
    %c0_207 = arith.constant 0 : index
    %218 = vector.load %arg13[%c0_206, %c0_207] : memref<16x3200xf32, #tpu.memory_space<vmem>>, vector<16x3200xf32>
    %c0_208 = arith.constant 0 : index
    %c0_209 = arith.constant 0 : index
    %219 = vector.load %arg6[%c0_208, %c0_209] : memref<3200x48xf32, #tpu.memory_space<vmem>>, vector<3200x48xf32>
    %cst_210 = arith.constant dense<0.000000e+00> : vector<16x48xf32>
    %220 = tpu.matmul %218, %219, %cst_210 {dimension_numbers = #tpu.dot_dimension_numbers<[1], [0], [0], [1], [0, 0, 1, 1], [], []>} : vector<16x3200xf32>, vector<3200x48xf32>, vector<16x48xf32> -> vector<16x48xf32>
    %c0_211 = arith.constant 0 : index
    %c0_212 = arith.constant 0 : index
    %221 = vector.load %arg7[%c0_211, %c0_212] : memref<1x48xf32, #tpu.memory_space<vmem>>, vector<1x48xf32>
    %222 = vector.broadcast %221 : vector<1x48xf32> to vector<16x48xf32>
    %223 = arith.addf %220, %222 : vector<16x48xf32>
    %224 = vector.extract_strided_slice %223 {offsets = [0, 0], sizes = [16, 16], strides = [1, 1]} : vector<16x48xf32> to vector<16x16xf32>
    %c0_213 = arith.constant 0 : index
    %c0_214 = arith.constant 0 : index
    %c0_215 = arith.constant 0 : index
    %c0_216 = arith.constant 0 : index
    %225 = vector.load %arg8[%c0_213, %c0_214, %c0_215, %c0_216] : memref<1x3x16x16xf32, #tpu.memory_space<vmem>>, vector<1x1x16x16xf32>
    %226 = vector.shape_cast %225 : vector<1x1x16x16xf32> to vector<16x16xf32>
    %227 = vector.shape_cast %224 : vector<16x16xf32> to vector<1x1x16x16xf32>
    tpu.vector_store %arg8[%c0_213, %c0_214, %c0_215, %c0_216], %227 {strides = array<i32>} : memref<1x3x16x16xf32, #tpu.memory_space<vmem>>, vector<1x1x16x16xf32>,
    %228 = vector.extract_strided_slice %223 {offsets = [0, 16], sizes = [16, 16], strides = [1, 1]} : vector<16x48xf32> to vector<16x16xf32>
    %c0_217 = arith.constant 0 : index
    %c1_218 = arith.constant 1 : index
    %c0_219 = arith.constant 0 : index
    %c0_220 = arith.constant 0 : index
    %229 = vector.load %arg8[%c0_217, %c1_218, %c0_219, %c0_220] : memref<1x3x16x16xf32, #tpu.memory_space<vmem>>, vector<1x1x16x16xf32>
    %230 = vector.shape_cast %229 : vector<1x1x16x16xf32> to vector<16x16xf32>
    %231 = vector.shape_cast %228 : vector<16x16xf32> to vector<1x1x16x16xf32>
    tpu.vector_store %arg8[%c0_217, %c1_218, %c0_219, %c0_220], %231 {strides = array<i32>} : memref<1x3x16x16xf32, #tpu.memory_space<vmem>>, vector<1x1x16x16xf32>,
    %232 = vector.extract_strided_slice %223 {offsets = [0, 32], sizes = [16, 16], strides = [1, 1]} : vector<16x48xf32> to vector<16x16xf32>
    %c0_221 = arith.constant 0 : index
    %c2_222 = arith.constant 2 : index
    %c0_223 = arith.constant 0 : index
    %c0_224 = arith.constant 0 : index
    %233 = vector.load %arg8[%c0_221, %c2_222, %c0_223, %c0_224] : memref<1x3x16x16xf32, #tpu.memory_space<vmem>>, vector<1x1x16x16xf32>
    %234 = vector.shape_cast %233 : vector<1x1x16x16xf32> to vector<16x16xf32>
    %235 = vector.shape_cast %232 : vector<16x16xf32> to vector<1x1x16x16xf32>
    tpu.vector_store %arg8[%c0_221, %c2_222, %c0_223, %c0_224], %235 {strides = array<i32>} : memref<1x3x16x16xf32, #tpu.memory_space<vmem>>, vector<1x1x16x16xf32>,
    return
  }
  func.func @transform_0(%arg0: i32) -> (i32, i32, i32) {
    %c0_i32 = arith.constant 0 : i32
    %c0_i32_0 = arith.constant 0 : i32
    %c0_i32_1 = arith.constant 0 : i32
    return %arg0, %c0_i32, %c0_i32_0 : i32, i32, i32
  }
  func.func @transform_1(%arg0: i32) -> (i32, i32) {
    %c0_i32 = arith.constant 0 : i32
    %c0_i32_0 = arith.constant 0 : i32
    %c0_i32_1 = arith.constant 0 : i32
    return %c0_i32, %c0_i32_0 : i32, i32
  }
  func.func @transform_2(%arg0: i32) -> (i32, i32) {
    %c0_i32 = arith.constant 0 : i32
    %c0_i32_0 = arith.constant 0 : i32
    %c0_i32_1 = arith.constant 0 : i32
    return %c0_i32, %c0_i32_0 : i32, i32
  }
  func.func @transform_3(%arg0: i32) -> (i32, i32) {
    %c0_i32 = arith.constant 0 : i32
    %c0_i32_0 = arith.constant 0 : i32
    %c0_i32_1 = arith.constant 0 : i32
    return %c0_i32, %c0_i32_0 : i32, i32
  }
  func.func @transform_4(%arg0: i32) -> (i32, i32) {
    %c0_i32 = arith.constant 0 : i32
    %c0_i32_0 = arith.constant 0 : i32
    %c0_i32_1 = arith.constant 0 : i32
    return %c0_i32, %c0_i32_0 : i32, i32
  }
  func.func @transform_5(%arg0: i32) -> (i32, i32) {
    %c0_i32 = arith.constant 0 : i32
    %c0_i32_0 = arith.constant 0 : i32
    %c0_i32_1 = arith.constant 0 : i32
    return %c0_i32, %c0_i32_0 : i32, i32
  }
  func.func @transform_6(%arg0: i32) -> (i32, i32) {
    %c0_i32 = arith.constant 0 : i32
    %c0_i32_0 = arith.constant 0 : i32
    %c0_i32_1 = arith.constant 0 : i32
    return %c0_i32, %c0_i32_0 : i32, i32
  }
  func.func @transform_7(%arg0: i32) -> (i32, i32, i32, i32) {
    %c0_i32 = arith.constant 0 : i32
    %c0_i32_0 = arith.constant 0 : i32
    %c0_i32_1 = arith.constant 0 : i32
    %c0_i32_2 = arith.constant 0 : i32
    return %arg0, %c0_i32, %c0_i32_0, %c0_i32_1 : i32, i32, i32, i32
  }
}

</mosaic_0001>

<bundles_post_ra>
// kernel: srcnn_forward.1
= control target key start
LH: loop header
LB: loop body
LE: loop exit
PB: predicated region body
PF: predicated region fallthrough
CT: control target
= control target key end

     0   :  { %12 = vsyncpa [#allocation8], 0  ;;  %s10866_s0 = inlined_call_operand.vmem [shape: f32[2,48,16], index: 0, kind: input, shape index: {}]   ;;  %s10867_s1 = inlined_call_operand.vmem [shape: f32[540,768], index: 1, kind: input, shape index: {}]   ;;  %s10868_s2 = inlined_call_operand.vmem [shape: f32[1,768], index: 2, kind: input, shape index: {}]   ;;  %s10869_s3 = inlined_call_operand.vmem [shape: f32[64,32], index: 3, kind: input, shape index: {}]   ;;  %s10870_s4 = inlined_call_operand.vmem [shape: f32[1,32], index: 4, kind: input, shape index: {}]   ;;  %s10871_s5 = inlined_call_operand.vmem [shape: f32[3200,48], index: 5, kind: input, shape index: {}]   ;;  %s10872_s6 = inlined_call_operand.vmem [shape: f32[1,48], index: 6, kind: input, shape index: {}]   ;;  %s10873_s7 = inlined_call_operand.hbm [shape: f32[2,3,16,16], index: 7, kind: output, shape index: {}]  }
   0x1   :  { %14 = vsyncpa [#allocation8 + $0x1], 0  ;;  %s7536_s24 = smov 0   ;;  %s7538_s25 = smov 0  }
   0x2   :  { %s7540_s26 = smov 0   ;;  %s7542_s27 = smov 0  }
   0x3 LB: > { %s7557_s28 = sadd.s32 4294967295, %s7459_s27   ;;  %s5349_s29 = sadd.s32 4294967294, %s7459_s27   ;;  %s7459_s27 = sphi %s7542_s27, %s10909_s27   ;;  %s7455_s26 = sphi %s7540_s26, %s10908_s26   ;;  %s7451_s25 = sphi %s7538_s25, %s10907_s25   ;;  %s7447_s24 = sphi %s7536_s24, %s10906_s24  }
   0x4   : > { %s7561_s30 = sadd.s32 1, %s7459_s27   ;;  %s179_s8 = sadd.s32 1, %s7455_s26 }
   0x5   : > { %s176_s9 = ssub.s32 %s7459_s27, %s7561_s30  ;;  %p189_p0 = scmp.ne.s32.totalorder %s7455_s26, %s7451_s25 }
   0x6   : > { %p177_p1 = scmp.eq.s32.totalorder %s176_s9, 0  ;;  %p190_p2 = scmp.eq.s32.totalorder %s7557_s28, 1 }
   0x7   : > { %p195_p3 = scmp.ne.s32.totalorder %s7451_s25, %s7447_s24  ;;  %p196_p4 = scmp.eq.s32.totalorder %s5349_s29, 1 }
   0x8   : > { %s7572_s10 = scalar_select %p177_p1, %s7455_s26, %s179_s8  }
   0x9   : > { %p7574_p5 = por %p190_p2, %p189_p0  ;;  %p7578_p6 = por %p196_p4, %p195_p3 }
   0xa   : > { %p5352_p7 = scmp.ge.s32.totalorder %s7459_s27, 1  ;;  %p240_p8 = scmp.lt.s32.totalorder %s7459_s27, 3 }
   0xc   : > { %p241_p9 = pnand %p5352_p7, %p240_p8 }
   0xd   : > { %p272_p10 = scmp.lt.s32.totalorder (!%p241_p9), %s7557_s28, 1  ;;  %s7461_s18 = smov (!%p241_p9), 2   ;;  %vm300_vm0 = vcmask (!%p241_p9), 140304   ;;  %vm287_vm1 = vcmask (!%p241_p9), 146448   ;;  %vm439_vm2 = vcmask (!%p241_p9), 7168   ;;  %vm448_vm3 = vcmask (!%p241_p9), 15360  }
   0xe   : > { %244 = sbr.rel (%p241_p9) target bundleno = 2357 (0x935), region = 48  ;;  %s7462_s19 = smov (!%p241_p9), 126   ;;  %vm456_vm4 = vcmask (!%p241_p9), 11264   ;;  %vm562_vm5 = vcmask (!%p241_p9), 162960   ;;  %vm574_vm6 = vcmask (!%p241_p9), 162816   ;;  %vm576_vm7 = vcmask (!%p241_p9), 158720  }
   0xf   : > { %s7463_s20 = smov (!%p241_p9), 127   ;;  %s7464_s21 = smov (!%p241_p9), 111   ;;  %vm570_vm8 = vcmask (!%p241_p9), 158864   ;;  %vm660_vm9 = vcmask (!%p241_p9), 97280   ;;  %vm676_vm10 = vcmask (!%p241_p9), 261216   ;;  %vm690_vm11 = vcmask (!%p241_p9), 425216  }
  0x10   : > { %s10883_s22 = smov (!%p241_p9), 112   ;;  %s7466_s23 = smov (!%p241_p9), 18   ;;  %vm588_vm12 = vcmask (!%p241_p9), 326816   ;;  %vm602_vm13 = vcmask (!%p241_p9), 490816   ;;  %vm616_vm14 = vcmask (!%p241_p9), 654816   ;;  %vm704_vm15 = vcmask (!%p241_p9), 589216  }
  0x11   : > { %s10874_s16 = smov (!%p241_p9), 32   ;;  %s10876_s8 = smov (!%p241_p9), 40  }
  0x12   : > { %s10881_s29 = smov (!%p241_p9), 100   ;;  %s10895_s15 = smov (!%p241_p9), 52  }
  0x13   : > { %s7479_s9 = smov (!%p241_p9), 16  }
  0x15   : > { %s273_s13 = scalar_select %p272_p10, %s7557_s28, 1 }
  0x17   : > { %s7321_s14 = smul.u32 48, %s273_s13  ;;  %s7482_s13 = smov 24  }
  0x19   : > { %s7589_s17 = scalar_lea.vmem %s10866_s0, %s7321_s14  ;;  %s10893_s14 = smov 32  }
  0x1a   : > { %v5354_v0 = vld [vmem:[%s7589_s17] ss:$0 sm:$0xff]  ;;  %v5355_v2 = vld [vmem:[%s7589_s17 + $0xf] ss:$0 sm:$0xff]  ;;  %v312_v4 = vld [vmem:[%s7589_s17 + $0x18] sm:$0xff] }
  0x1b   : > { %v277_v1 = vld [vmem:[%s7589_s17] sm:$0xff]  ;;  %297 = vrot.lane.b32.xlu1 %v5354_v0, %s7461_s18  ;;  %v278_v3 = vld [vmem:[%s7589_s17 + $0x8] sm:$0xff]  ;;  %v311_v5 = vld [vmem:[%s7589_s17 + $0x10] sm:$0xff] }
  0x1c   : > { %281 = vrot.lane.b32.xlu0 %v277_v1, %s7461_s18  ;;  %v343_v6 = vld [vmem:[%s7589_s17 + $0x20] sm:$0xff]  ;;  %v5356_v7 = vld [vmem:[%s7589_s17 + $0x10] ss:$0 sm:$0xff]  ;;  %v344_v9 = vld [vmem:[%s7589_s17 + $0x28] sm:$0xff] }
  0x1d   : > { %v5358_v8 = vld [vmem:[%s7589_s17 + $0x20] ss:$0 sm:$0xff]  ;;  %v5357_v10 = vld [vmem:[%s7589_s17 + $0x1f] ss:$0 sm:$0xff]  ;;  %v5359_v28 = vld [vmem:[%s7589_s17 + $0x2f] ss:$0 sm:$0xff] }
  0x1e   : > { %s7469_s17 = smov 120  }
  0x1f   : > { %307 = vrot.lane.b32.xlu1 %v5355_v2, %s7461_s18 }
  0x20   : > { %283 = vrot.lane.b32.xlu0 %v278_v3, %s7461_s18 }
  0x23   : > { %317 = vrot.lane.b32.xlu1 %v312_v4, %s7461_s18 }
  0x24   : > { %315 = vrot.lane.b32.xlu0 %v311_v5, %s7461_s18 }
  0x27   : > { %347 = vrot.lane.b32.xlu1 %v343_v6, %s7461_s18 }
  0x28   : > { %330 = vrot.lane.b32.xlu0 %v5356_v7, %s7461_s18 }
  0x2b   : > { %362 = vrot.lane.b32.xlu1 %v5358_v8, %s7461_s18 }
  0x2c   : > { %349 = vrot.lane.b32.xlu0 %v344_v9, %s7461_s18 }
  0x30   : > { %339 = vrot.lane.b32.xlu0 %v5357_v10, %s7461_s18 }
  0x8d   : > { %v298_v11 = vpop.permute.xlu1 %297 }
  0x8e   : > { %v282_v12 = vpop.permute.xlu0 %281  ;;  %301 = vst.msk [vmem:[#allocation2] sm:$0x3] %vm300_vm0, %v298_v11 }
  0x8f   : > { %288 = vst.msk [vmem:[#allocation2 + $0x2] sm:$0xff] %vm287_vm1, %v282_v12 }
  0x91   : > { %v308_v13 = vpop.permute.xlu1 %307 }
  0x92   : > { %v284_v14 = vpop.permute.xlu0 %283  ;;  %310 = vst.msk [vmem:[#allocation2 + $0x12] sm:$0x3] %vm300_vm0, %v308_v13 }
  0x93   : > { %289 = vst.msk [vmem:[#allocation2 + $0xa] sm:$0xff] %vm287_vm1, %v284_v14 }
  0x95   : > { %v318_v15 = vpop.permute.xlu1 %317 }
  0x96   : > { %v316_v16 = vpop.permute.xlu0 %315  ;;  %v375_v17 = vld [vmem:[#allocation2] sm:$0xff]  ;;  %322 = vst.msk [vmem:[#allocation2 + $0x1e] sm:$0xff] %vm287_vm1, %v318_v15 }
  0x97   : > { %321 = vst.msk [vmem:[#allocation2 + $0x16] sm:$0xff] %vm287_vm1, %v316_v16  ;;  %391 = vrot.lane.b32.xlu1 %v375_v17, %s7462_s19 }
  0x99   : > { %v348_v18 = vpop.permute.xlu1 %347 }
  0x9a   : > { %v331_v19 = vpop.permute.xlu0 %330  ;;  %v376_v20 = vld [vmem:[#allocation2 + $0x8] sm:$0xff]  ;;  %353 = vst.msk [vmem:[#allocation2 + $0x2a] sm:$0xff] %vm287_vm1, %v348_v18 }
  0x9b   : > { %333 = vst.msk [vmem:[#allocation2 + $0x14] sm:$0x3] %vm300_vm0, %v331_v19  ;;  %415 = vrot.lane.b32.xlu1 %v375_v17, %s7463_s20  ;;  %393 = vrot.lane.b32.xlu0 %v376_v20, %s7462_s19 }
  0x9d   : > { %v363_v21 = vpop.permute.xlu1 %362 }
  0x9e   : > { %v350_v22 = vpop.permute.xlu0 %349  ;;  %365 = vst.msk [vmem:[#allocation2 + $0x28] sm:$0x3] %vm300_vm0, %v363_v21  ;;  %v378_v24 = vld [vmem:[#allocation2 + $0x18] sm:$0xff]  ;;  %v969_v21 = vld [vmem:[%s10867_s1 + $0x8] sm:$0xff] }
  0x9f   : > { %354 = vst.msk [vmem:[#allocation2 + $0x32] sm:$0xff] %vm287_vm1, %v350_v22  ;;  %417 = vrot.lane.b32.xlu0 %v376_v20, %s7463_s20  ;;  %v975_v22 = vld [vmem:[%s10867_s1 + $0x38] sm:$0xff]  ;;  %vm718_vm1 = vcmask 753216  }
  0xa2   : > { %v340_v23 = vpop.permute.xlu0 %339  ;;  %v377_v25 = vld [vmem:[#allocation2 + $0x10] sm:$0xff] }
  0xa3   : > { %342 = vst.msk [vmem:[#allocation2 + $0x26] sm:$0x3] %vm300_vm0, %v340_v23  ;;  %397 = vrot.lane.b32.xlu0 %v378_v24, %s7462_s19  ;;  %395 = vrot.lane.b32.xlu1 %v377_v25, %s7462_s19  ;;  %v971_v23 = vld [vmem:[%s10867_s1 + $0x18] sm:$0xff] }
  0xa5   : > { %v380_v26 = vld [vmem:[#allocation2 + $0x28] sm:$0xff] }
  0xa6   : > { %v381_v27 = vld [vmem:[#allocation2 + $0x30] sm:$0xff] }
  0xa7   : > { %421 = vrot.lane.b32.xlu0 %v378_v24, %s7463_s20  ;;  %419 = vrot.lane.b32.xlu1 %v377_v25, %s7463_s20  ;;  %v6262_v24 = vpack.c.bf16 %v975_v22, %v969_v21  ;;  %v977_v25 = vld [vmem:[%s10867_s1 + $0x48] sm:$0xff]  ;;  %v1028_v22 = vld [vmem:[%s10867_s1 + $0x1e0] sm:$0xff] }
  0xa8   : > { %v1037_v21 = vld [vmem:[%s10867_s1 + $0x228] sm:$0xff] }
  0xa9   : > { %6263 = vmatprep.subr.bf16.mxu0 %v6262_v24 }
  0xaa   : > { %v379_v29 = vld [vmem:[#allocation2 + $0x20] sm:$0xff] }
  0xab   : > { %401 = vrot.lane.b32.xlu1 %v380_v26, %s7462_s19  ;;  %403 = vrot.lane.b32.xlu0 %v381_v27, %s7462_s19 }
  0xaf   : > { %425 = vrot.lane.b32.xlu1 %v380_v26, %s7463_s20  ;;  %427 = vrot.lane.b32.xlu0 %v381_v27, %s7463_s20  ;;  %v968_v26 = vld [vmem:[%s10867_s1] sm:$0xff]  ;;  %v974_v27 = vld [vmem:[%s10867_s1 + $0x30] sm:$0xff] }
  0xb3   : > { %371 = vrot.lane.b32.xlu1 %v5359_v28, %s7461_s18  ;;  %399 = vrot.lane.b32.xlu0 %v379_v29, %s7462_s19  ;;  %v6400_v28 = vpack.c.bf16 %v977_v25, %v971_v23  ;;  %v1034_v23 = vld [vmem:[%s10867_s1 + $0x210] sm:$0xff]  ;;  %s7467_s18 = smov 12  }
  0xb4   : > { %v1030_v25 = vld [vmem:[%s10867_s1 + $0x1f0] sm:$0xff] }
  0xb5   : > { %6401 = vmatprep.subr.bf16.mxu1 %v6400_v28  ;;  %v1047_v28 = vld [vmem:[%s10867_s1 + $0x278] sm:$0xff] }
  0xb7   : > { %423 = vrot.lane.b32.xlu1 %v379_v29, %s7463_s20  ;;  %v6264_v29 = vpack.c.bf16 %v974_v27, %v968_v26  ;;  %v1036_v26 = vld [vmem:[%s10867_s1 + $0x220] sm:$0xff]  ;;  %v1041_v27 = vld [vmem:[%s10867_s1 + $0x248] sm:$0xff] }
  0xb9   : > { %6265 = vmatpush1.bf16.msra.mxu0 %v6264_v29  ;;  %v1043_v29 = vld [vmem:[%s10867_s1 + $0x258] sm:$0xff] }
 0x109   : > { %v392_v30 = vpop.permute.xlu1 %391 }
 0x10d   : > { %v416_v31 = vpop.permute.xlu1 %415  ;;  %v394_v32 = vpop.permute.xlu0 %393 }
 0x10e   : > { %v440_v33 = vsel %vm439_vm2, %v392_v30, %v416_v31  ;;  %v970_v30 = vld [vmem:[%s10867_s1 + $0x10] sm:$0xff]  ;;  %v976_v31 = vld [vmem:[%s10867_s1 + $0x40] sm:$0xff] }
 0x10f   : > { %449 = vst.msk [vmem:[#allocation2] sm:$0xff] %vm448_vm3, %v440_v33  ;;  %v981_v33 = vld [vmem:[%s10867_s1 + $0x68] sm:$0xff] }
 0x111   : > { %v418_v34 = vpop.permute.xlu0 %417 }
 0x112   : > { %v441_v35 = vsel %vm439_vm2, %v394_v32, %v418_v34  ;;  %v6402_v32 = vpack.c.bf16 %v976_v31, %v970_v30  ;;  %v987_v34 = vld [vmem:[%s10867_s1 + $0x98] sm:$0xff]  ;;  %v1049_v30 = vld [vmem:[%s10867_s1 + $0x288] sm:$0xff]  ;;  %v6284_v31 = vpack.c.bf16 %v1034_v23, %v1028_v22 }
 0x113   : > { %450 = vst.msk [vmem:[#allocation2 + $0x8] sm:$0xff] %vm448_vm3, %v441_v35  ;;  %v983_v35 = vld [vmem:[%s10867_s1 + $0x78] sm:$0xff] }
 0x114   : > { %6403 = vmatpush1.bf16.msra.mxu1 %v6402_v32  ;;  %v6422_v32 = vpack.c.bf16 %v1036_v26, %v1030_v25  ;;  %v1091_v25 = vld [vmem:[%s10867_s1 + $0x3d8] sm:$0xff]  ;;  %v1097_v26 = vld [vmem:[%s10867_s1 + $0x408] sm:$0xff] }
 0x115   : > { %v396_v36 = vpop.permute.xlu1 %395  ;;  %v398_v37 = vpop.permute.xlu0 %397 }
 0x116   : > { %v458_v53 = vld [vmem:[#allocation2] sm:$0xff] }
 0x119   : > { %v420_v38 = vpop.permute.xlu1 %419  ;;  %v422_v39 = vpop.permute.xlu0 %421 }
 0x11a   : > { %v442_v40 = vsel %vm439_vm2, %v396_v36, %v420_v38  ;;  %v443_v41 = vsel %vm439_vm2, %v398_v37, %v422_v39  ;;  %v459_v54 = vld [vmem:[#allocation2 + $0x8] sm:$0xff]  ;;  %v6266_v36 = vpack.c.bf16 %v987_v34, %v981_v33  ;;  %v980_v38 = vld [vmem:[%s10867_s1 + $0x60] sm:$0xff]  ;;  %v986_v39 = vld [vmem:[%s10867_s1 + $0x90] sm:$0xff]  ;;  %v6286_v33 = vpack.c.bf16 %v1047_v28, %v1041_v27 }
 0x11b   : > { %451 = vst.msk [vmem:[#allocation2 + $0x10] sm:$0xff] %vm448_vm3, %v442_v40  ;;  %452 = vst.msk [vmem:[#allocation2 + $0x18] sm:$0xff] %vm448_vm3, %v443_v41  ;;  %v989_v37 = vld [vmem:[%s10867_s1 + $0xa8] sm:$0xff]  ;;  %v6268_v41 = vpack.c.bf16 %v986_v39, %v980_v38  ;;  %v1040_v34 = vld [vmem:[%s10867_s1 + $0x240] sm:$0xff] }
 0x11c   : > { %v6404_v40 = vpack.c.bf16 %v989_v37, %v983_v35  ;;  %6267 = vmatprep.subr.bf16.mxu0 %v6266_v36  ;;  %v1046_v35 = vld [vmem:[%s10867_s1 + $0x270] sm:$0xff]  ;;  %v6424_v36 = vpack.c.bf16 %v1049_v30, %v1043_v29  ;;  %v1048_v38 = vld [vmem:[%s10867_s1 + $0x280] sm:$0xff]  ;;  %v6440_v29 = vpack.c.bf16 %v1097_v26, %v1091_v25 }
 0x11d   : > { %v402_v42 = vpop.permute.xlu1 %401  ;;  %v404_v43 = vpop.permute.xlu0 %403  ;;  %6269 = vmatpush1.bf16.msra.mxu0 %v6268_v41  ;;  %v1042_v37 = vld [vmem:[%s10867_s1 + $0x250] sm:$0xff]  ;;  %v6288_v39 = vpack.c.bf16 %v1046_v35, %v1040_v34  ;;  %v1088_v30 = vld [vmem:[%s10867_s1 + $0x3c0] sm:$0xff]  ;;  %v1101_v35 = vld [vmem:[%s10867_s1 + $0x428] sm:$0xff] }
 0x11e   : > { %6405 = vmatprep.subr.bf16.mxu1 %v6404_v40  ;;  %v6426_v40 = vpack.c.bf16 %v1048_v38, %v1042_v37  ;;  %v1096_v34 = vld [vmem:[%s10867_s1 + $0x400] sm:$0xff]  ;;  %v1142_v26 = vld [vmem:[%s10867_s1 + $0x570] sm:$0xff] }
 0x11f   : > { %v1136_v25 = vld [vmem:[%s10867_s1 + $0x540] sm:$0xff] }
 0x121   : > { %v426_v44 = vpop.permute.xlu1 %425  ;;  %v428_v45 = vpop.permute.xlu0 %427 }
 0x122   : > { %v445_v46 = vsel %vm439_vm2, %v402_v42, %v426_v44  ;;  %v446_v47 = vsel %vm439_vm2, %v404_v43, %v428_v45  ;;  %v460_v55 = vld [vmem:[#allocation2 + $0x10] sm:$0xff]  ;;  %v461_v56 = vld [vmem:[#allocation2 + $0x18] sm:$0xff]  ;;  %v988_v43 = vld [vmem:[%s10867_s1 + $0xa0] sm:$0xff] }
 0x123   : > { %454 = vst.msk [vmem:[#allocation2 + $0x28] sm:$0xff] %vm448_vm3, %v445_v46  ;;  %455 = vst.msk [vmem:[#allocation2 + $0x30] sm:$0xff] %vm448_vm3, %v446_v47  ;;  %v982_v42 = vld [vmem:[%s10867_s1 + $0x70] sm:$0xff]  ;;  %v993_v45 = vld [vmem:[%s10867_s1 + $0xc8] sm:$0xff] }
 0x124   : > { %v6406_v44 = vpack.c.bf16 %v988_v43, %v982_v42  ;;  %v999_v46 = vld [vmem:[%s10867_s1 + $0xf8] sm:$0xff]  ;;  %v1053_v43 = vld [vmem:[%s10867_s1 + $0x2a8] sm:$0xff] }
 0x125   : > { %v372_v48 = vpop.permute.xlu1 %371  ;;  %v400_v49 = vpop.permute.xlu0 %399  ;;  %v995_v47 = vld [vmem:[%s10867_s1 + $0xd8] sm:$0xff] }
 0x126   : > { %374 = vst.msk [vmem:[#allocation2 + $0x3a] sm:$0x3] %vm300_vm0, %v372_v48  ;;  %6407 = vmatpush1.bf16.msra.mxu1 %v6406_v44  ;;  %v6270_v48 = vpack.c.bf16 %v999_v46, %v993_v45  ;;  %v1059_v44 = vld [vmem:[%s10867_s1 + $0x2d8] sm:$0xff]  ;;  %vm630_vm0 = vcmask 818816  }
 0x127   : > { %v1055_v45 = vld [vmem:[%s10867_s1 + $0x2b8] sm:$0xff]  ;;  %v6290_v46 = vpack.c.bf16 %v1059_v44, %v1053_v43 }
 0x128   : > { %6271 = vmatprep.subr.bf16.mxu0 %v6270_v48  ;;  %v1052_v48 = vld [vmem:[%s10867_s1 + $0x2a0] sm:$0xff] }
 0x129   : > { %v424_v50 = vpop.permute.xlu1 %423 }
 0x12a   : > { %v444_v51 = vsel %vm439_vm2, %v400_v49, %v424_v50  ;;  %v463_v57 = vld [vmem:[#allocation2 + $0x28] sm:$0xff]  ;;  %v464_v58 = vld [vmem:[#allocation2 + $0x30] sm:$0xff]  ;;  %v992_v50 = vld [vmem:[%s10867_s1 + $0xc0] sm:$0xff] }
 0x12b   : > { %453 = vst.msk [vmem:[#allocation2 + $0x20] sm:$0xff] %vm448_vm3, %v444_v51  ;;  %v1001_v49 = vld [vmem:[%s10867_s1 + $0x108] sm:$0xff]  ;;  %v998_v51 = vld [vmem:[%s10867_s1 + $0xf0] sm:$0xff]  ;;  %vm658_vm3 = vcmask 1048512  }
 0x12d   : > { %v382_v52 = vld [vmem:[#allocation2 + $0x38] sm:$0xf] }
 0x12e   : > { %429 = vrot.lane.b32.xlu1 %v382_v52, %s7463_s20  ;;  %405 = vrot.lane.b32.xlu0 %v382_v52, %s7462_s19  ;;  %v6408_v52 = vpack.c.bf16 %v1001_v49, %v995_v47  ;;  %v1061_v47 = vld [vmem:[%s10867_s1 + $0x2e8] sm:$0xff]  ;;  %v1058_v49 = vld [vmem:[%s10867_s1 + $0x2d0] sm:$0xff]  ;;  %s7471_s19 = smov 20   ;;  %s10877_s20 = smov 52  }
 0x130   : > { %6409 = vmatprep.subr.bf16.mxu1 %v6408_v52  ;;  %v1054_v52 = vld [vmem:[%s10867_s1 + $0x2b0] sm:$0xff] }
 0x132   : > { %474 = vrot.lane.b32.xlu0 %v458_v53, %s7464_s21  ;;  %476 = vrot.lane.b32.xlu1 %v459_v54, %s7464_s21  ;;  %v462_v59 = vld [vmem:[#allocation2 + $0x20] sm:$0xff] }
 0x136   : > { %498 = vrot.lane.b32.xlu0 %v458_v53, %s10883_s22  ;;  %500 = vrot.lane.b32.xlu1 %v459_v54, %s10883_s22  ;;  %v6272_v53 = vpack.c.bf16 %v998_v51, %v992_v50  ;;  %v994_v54 = vld [vmem:[%s10867_s1 + $0xd0] sm:$0xff]  ;;  %v6428_v50 = vpack.c.bf16 %v1061_v47, %v1055_v45  ;;  %v6292_v51 = vpack.c.bf16 %v1058_v49, %v1052_v48  ;;  %v1100_v47 = vld [vmem:[%s10867_s1 + $0x420] sm:$0xff] }
 0x137   : > { %v1106_v48 = vld [vmem:[%s10867_s1 + $0x450] sm:$0xff] }
 0x138   : > { %6273 = vmatpush1.bf16.msra.mxu0 %v6272_v53  ;;  %v1060_v53 = vld [vmem:[%s10867_s1 + $0x2e0] sm:$0xff]  ;;  %v6308_v49 = vpack.c.bf16 %v1106_v48, %v1100_v47  ;;  %v1163_v48 = vld [vmem:[%s10867_s1 + $0x618] sm:$0xff] }
 0x13a   : > { %478 = vrot.lane.b32.xlu0 %v460_v55, %s7464_s21  ;;  %480 = vrot.lane.b32.xlu1 %v461_v56, %s7464_s21 }
 0x13e   : > { %502 = vrot.lane.b32.xlu0 %v460_v55, %s10883_s22  ;;  %504 = vrot.lane.b32.xlu1 %v461_v56, %s10883_s22  ;;  %v1000_v55 = vld [vmem:[%s10867_s1 + $0x100] sm:$0xff]  ;;  %v1005_v56 = vld [vmem:[%s10867_s1 + $0x128] sm:$0xff] }
 0x142   : > { %484 = vrot.lane.b32.xlu0 %v463_v57, %s7464_s21  ;;  %486 = vrot.lane.b32.xlu1 %v464_v58, %s7464_s21 }
 0x146   : > { %508 = vrot.lane.b32.xlu0 %v463_v57, %s10883_s22  ;;  %510 = vrot.lane.b32.xlu1 %v464_v58, %s10883_s22  ;;  %v6410_v57 = vpack.c.bf16 %v1000_v55, %v994_v54  ;;  %v1011_v58 = vld [vmem:[%s10867_s1 + $0x158] sm:$0xff]  ;;  %v6430_v54 = vpack.c.bf16 %v1060_v53, %v1054_v52  ;;  %v1113_v52 = vld [vmem:[%s10867_s1 + $0x488] sm:$0xff] }
 0x148   : > { %6411 = vmatpush1.bf16.msra.mxu1 %v6410_v57  ;;  %v1065_v57 = vld [vmem:[%s10867_s1 + $0x308] sm:$0xff] }
 0x14a   : > { %506 = vrot.lane.b32.xlu1 %v462_v59, %s10883_s22  ;;  %482 = vrot.lane.b32.xlu0 %v462_v59, %s7464_s21  ;;  %v1007_v59 = vld [vmem:[%s10867_s1 + $0x138] sm:$0xff] }
 0x1a0   : > { %v430_v60 = vpop.permute.xlu1 %429  ;;  %v406_v61 = vpop.permute.xlu0 %405 }
 0x1a1   : > { %v447_v62 = vsel %vm439_vm2, %v406_v61, %v430_v60  ;;  %v1013_v60 = vld [vmem:[%s10867_s1 + $0x168] sm:$0xff]  ;;  %v6274_v61 = vpack.c.bf16 %v1011_v58, %v1005_v56  ;;  %v1071_v58 = vld [vmem:[%s10867_s1 + $0x338] sm:$0xff] }
 0x1a2   : > { %457 = vst.msk [vmem:[#allocation2 + $0x38] sm:$0xf] %vm456_vm4, %v447_v62  ;;  %v6412_v62 = vpack.c.bf16 %v1013_v60, %v1007_v59  ;;  %v1067_v59 = vld [vmem:[%s10867_s1 + $0x318] sm:$0xff]  ;;  %v6294_v60 = vpack.c.bf16 %v1071_v58, %v1065_v57  ;;  %vm732_vm4 = vcmask 917216  }
 0x1a3   : > { %6275 = vmatprep.subr.bf16.mxu0 %v6274_v61  ;;  %v1073_v61 = vld [vmem:[%s10867_s1 + $0x348] sm:$0xff] }
 0x1a4   : > { %v477_v63 = vpop.permute.xlu1 %476  ;;  %v475_v0 = vpop.permute.xlu0 %474  ;;  %6413 = vmatprep.subr.bf16.mxu1 %v6412_v62  ;;  %v1064_v62 = vld [vmem:[%s10867_s1 + $0x300] sm:$0xff] }
 0x1a8   : > { %v501_v1 = vpop.permute.xlu1 %500  ;;  %v499_v2 = vpop.permute.xlu0 %498 }
 0x1a9   : > { %v523_v3 = vsel %vm439_vm2, %v477_v63, %v501_v1  ;;  %v522_v4 = vsel %vm439_vm2, %v475_v0, %v499_v2  ;;  %v465_v17 = vld [vmem:[#allocation2 + $0x38] sm:$0xf]  ;;  %v1004_v63 = vld [vmem:[%s10867_s1 + $0x120] sm:$0xff]  ;;  %v1010_v0 = vld [vmem:[%s10867_s1 + $0x150] sm:$0xff] }
 0x1aa   : > { %540 = vrot.lane.b32.xlu1 %v523_v3, %s7466_s23  ;;  %538 = vrot.lane.b32.xlu0 %v522_v4, %s7466_s23  ;;  %v1006_v1 = vld [vmem:[%s10867_s1 + $0x130] sm:$0xff]  ;;  %v6276_v2 = vpack.c.bf16 %v1010_v0, %v1004_v63  ;;  %v1012_v3 = vld [vmem:[%s10867_s1 + $0x160] sm:$0xff]  ;;  %v6432_v0 = vpack.c.bf16 %v1073_v61, %v1067_v59 }
 0x1ab   : > { %v1017_v4 = vld [vmem:[%s10867_s1 + $0x188] sm:$0xff]  ;;  %v1070_v63 = vld [vmem:[%s10867_s1 + $0x330] sm:$0xff]  ;;  %v1112_v59 = vld [vmem:[%s10867_s1 + $0x480] sm:$0xff] }
 0x1ac   : > { %v481_v5 = vpop.permute.xlu1 %480  ;;  %v479_v6 = vpop.permute.xlu0 %478  ;;  %6277 = vmatpush1.bf16.msra.mxu0 %v6276_v2  ;;  %v1066_v2 = vld [vmem:[%s10867_s1 + $0x310] sm:$0xff] }
 0x1b0   : > { %v505_v7 = vpop.permute.xlu1 %504  ;;  %v503_v8 = vpop.permute.xlu0 %502 }
 0x1b1   : > { %v525_v9 = vsel %vm439_vm2, %v481_v5, %v505_v7  ;;  %v524_v10 = vsel %vm439_vm2, %v479_v6, %v503_v8  ;;  %v1023_v5 = vld [vmem:[%s10867_s1 + $0x1b8] sm:$0xff]  ;;  %v6414_v6 = vpack.c.bf16 %v1012_v3, %v1006_v1  ;;  %v6296_v1 = vpack.c.bf16 %v1070_v63, %v1064_v62  ;;  %v1072_v3 = vld [vmem:[%s10867_s1 + $0x340] sm:$0xff] }
 0x1b2   : > { %544 = vrot.lane.b32.xlu1 %v525_v9, %s7466_s23  ;;  %542 = vrot.lane.b32.xlu0 %v524_v10, %s7466_s23  ;;  %v6278_v7 = vpack.c.bf16 %v1023_v5, %v1017_v4  ;;  %v1019_v8 = vld [vmem:[%s10867_s1 + $0x198] sm:$0xff]  ;;  %v1025_v9 = vld [vmem:[%s10867_s1 + $0x1c8] sm:$0xff]  ;;  %v6434_v5 = vpack.c.bf16 %v1072_v3, %v1066_v2 }
 0x1b3   : > { %v1016_v10 = vld [vmem:[%s10867_s1 + $0x180] sm:$0xff]  ;;  %6415 = vmatpush1.bf16.msra.mxu1 %v6414_v6  ;;  %v1077_v4 = vld [vmem:[%s10867_s1 + $0x368] sm:$0xff]  ;;  %v1083_v6 = vld [vmem:[%s10867_s1 + $0x398] sm:$0xff] }
 0x1b4   : > { %v487_v11 = vpop.permute.xlu1 %486  ;;  %v485_v12 = vpop.permute.xlu0 %484  ;;  %6279 = vmatprep.subr.bf16.mxu0 %v6278_v7  ;;  %v1079_v7 = vld [vmem:[%s10867_s1 + $0x378] sm:$0xff]  ;;  %v1120_v2 = vld [vmem:[%s10867_s1 + $0x4c0] sm:$0xff]  ;;  %v1125_v3 = vld [vmem:[%s10867_s1 + $0x4e8] sm:$0xff] }
 0x1b8   : > { %v511_v13 = vpop.permute.xlu1 %510  ;;  %v509_v14 = vpop.permute.xlu0 %508 }
 0x1b9   : > { %v528_v15 = vsel %vm439_vm2, %v487_v11, %v511_v13  ;;  %v527_v16 = vsel %vm439_vm2, %v485_v12, %v509_v14  ;;  %v6416_v11 = vpack.c.bf16 %v1025_v9, %v1019_v8  ;;  %v1022_v12 = vld [vmem:[%s10867_s1 + $0x1b0] sm:$0xff]  ;;  %v1024_v14 = vld [vmem:[%s10867_s1 + $0x1c0] sm:$0xff]  ;;  %v1085_v8 = vld [vmem:[%s10867_s1 + $0x3a8] sm:$0xff] }
 0x1ba   : > { %550 = vrot.lane.b32.xlu1 %v528_v15, %s7466_s23  ;;  %548 = vrot.lane.b32.xlu0 %v527_v16, %s7466_s23  ;;  %v1018_v13 = vld [vmem:[%s10867_s1 + $0x190] sm:$0xff]  ;;  %v6280_v15 = vpack.c.bf16 %v1022_v12, %v1016_v10  ;;  %v1029_v16 = vld [vmem:[%s10867_s1 + $0x1e8] sm:$0xff]  ;;  %v6298_v12 = vpack.c.bf16 %v1083_v6, %v1077_v4 }
 0x1bb   : > { %6417 = vmatprep.subr.bf16.mxu1 %v6416_v11  ;;  %v1131_v4 = vld [vmem:[%s10867_s1 + $0x518] sm:$0xff] }
 0x1bc   : > { %v507_v18 = vpop.permute.xlu1 %506  ;;  %v483_v19 = vpop.permute.xlu0 %482  ;;  %6281 = vmatpush1.bf16.msra.mxu0 %v6280_v15  ;;  %v1082_v15 = vld [vmem:[%s10867_s1 + $0x390] sm:$0xff] }
 0x1bd   : > { %v526_v20 = vsel %vm439_vm2, %v483_v19, %v507_v18  ;;  %v1031_v18 = vld [vmem:[%s10867_s1 + $0x1f8] sm:$0xff]  ;;  %v6418_v19 = vpack.c.bf16 %v1024_v14, %v1018_v13  ;;  %v6436_v13 = vpack.c.bf16 %v1085_v8, %v1079_v7  ;;  %v1076_v14 = vld [vmem:[%s10867_s1 + $0x360] sm:$0xff]  ;;  %v6314_v7 = vpack.c.bf16 %v1131_v4, %v1125_v3 }
 0x1be   : > { %512 = vrot.lane.b32.xlu1 %v465_v17, %s10883_s22  ;;  %488 = vrot.lane.b32.xlu0 %v465_v17, %s7464_s21  ;;  %v1035_v17 = vld [vmem:[%s10867_s1 + $0x218] sm:$0xff]  ;;  %v6420_v24 = vpack.c.bf16 %v1037_v21, %v1031_v18  ;;  %v1084_v18 = vld [vmem:[%s10867_s1 + $0x3a0] sm:$0xff]  ;;  %s10897_s21 = smov 92  }
 0x1bf   : > { %6419 = vmatpush1.bf16.msra.mxu1 %v6418_v19  ;;  %v1127_v8 = vld [vmem:[%s10867_s1 + $0x4f8] sm:$0xff] }
 0x1c0   : > { %6421 = vmatprep.subr.bf16.mxu1 %v6420_v24  ;;  %v1095_v24 = vld [vmem:[%s10867_s1 + $0x3f8] sm:$0xff] }
 0x1c2   : > { %546 = vrot.lane.b32.xlu0 %v526_v20, %s7466_s23  ;;  %v6282_v20 = vpack.c.bf16 %v1035_v17, %v1029_v16  ;;  %v1078_v16 = vld [vmem:[%s10867_s1 + $0x370] sm:$0xff]  ;;  %v6300_v17 = vpack.c.bf16 %v1082_v15, %v1076_v14 }
 0x1c3   : > { %6423 = vmatpush1.bf16.msra.mxu1 %v6422_v32  ;;  %v6438_v23 = vpack.c.bf16 %v1084_v18, %v1078_v16  ;;  %v1090_v32 = vld [vmem:[%s10867_s1 + $0x3d0] sm:$0xff]  ;;  %v1132_v16 = vld [vmem:[%s10867_s1 + $0x520] sm:$0xff]  ;;  %v1143_v18 = vld [vmem:[%s10867_s1 + $0x578] sm:$0xff] }
 0x1c4   : > { %6283 = vmatprep.subr.bf16.mxu0 %v6282_v20  ;;  %6425 = vmatprep.subr.bf16.mxu1 %v6424_v36  ;;  %v1089_v20 = vld [vmem:[%s10867_s1 + $0x3c8] sm:$0xff]  ;;  %v1107_v36 = vld [vmem:[%s10867_s1 + $0x458] sm:$0xff]  ;;  %v6442_v37 = vpack.c.bf16 %v1096_v34, %v1090_v32  ;;  %v1126_v14 = vld [vmem:[%s10867_s1 + $0x4f0] sm:$0xff] }
 0x1c5   : > { %6285 = vmatpush1.bf16.msra.mxu0 %v6284_v31  ;;  %v6302_v28 = vpack.c.bf16 %v1095_v24, %v1089_v20  ;;  %v1094_v31 = vld [vmem:[%s10867_s1 + $0x3f0] sm:$0xff]  ;;  %v6306_v38 = vpack.c.bf16 %v1107_v36, %v1101_v35  ;;  %v6454_v20 = vpack.c.bf16 %v1132_v16, %v1126_v14  ;;  %v1149_v32 = vld [vmem:[%s10867_s1 + $0x5a8] sm:$0xff]  ;;  %v1155_v35 = vld [vmem:[%s10867_s1 + $0x5d8] sm:$0xff] }
 0x1c6   : > { %6287 = vmatprep.subr.bf16.mxu0 %v6286_v33  ;;  %v6304_v33 = vpack.c.bf16 %v1094_v31, %v1088_v30  ;;  %v1144_v30 = vld [vmem:[%s10867_s1 + $0x580] sm:$0xff]  ;;  %v1151_v36 = vld [vmem:[%s10867_s1 + $0x5b8] sm:$0xff] }
 0x1c7   : > { %6427 = vmatpush1.bf16.msra.mxu1 %v6426_v40  ;;  %v1109_v40 = vld [vmem:[%s10867_s1 + $0x468] sm:$0xff] }
 0x1c8   : > { %6429 = vmatprep.subr.bf16.mxu1 %v6428_v50  ;;  %v1102_v50 = vld [vmem:[%s10867_s1 + $0x430] sm:$0xff] }
 0x1c9   : > { %6289 = vmatpush1.bf16.msra.mxu0 %v6288_v39  ;;  %v1103_v39 = vld [vmem:[%s10867_s1 + $0x438] sm:$0xff] }
 0x1ca   : > { %6291 = vmatprep.subr.bf16.mxu0 %v6290_v46  ;;  %v6444_v43 = vpack.c.bf16 %v1109_v40, %v1103_v39  ;;  %v1148_v40 = vld [vmem:[%s10867_s1 + $0x5a0] sm:$0xff] }
 0x1cb   : > { %6431 = vmatpush1.bf16.msra.mxu1 %v6430_v54  ;;  %v1119_v54 = vld [vmem:[%s10867_s1 + $0x4b8] sm:$0xff] }
 0x1cc   : > { %6433 = vmatprep.subr.bf16.mxu1 %v6432_v0  ;;  %v6310_v57 = vpack.c.bf16 %v1119_v54, %v1113_v52 }
 0x1cd   : > { %6293 = vmatpush1.bf16.msra.mxu0 %v6292_v51  ;;  %v1108_v51 = vld [vmem:[%s10867_s1 + $0x460] sm:$0xff] }
 0x1ce   : > { %6295 = vmatprep.subr.bf16.mxu0 %v6294_v60  ;;  %v6446_v53 = vpack.c.bf16 %v1108_v51, %v1102_v50  ;;  %v1118_v60 = vld [vmem:[%s10867_s1 + $0x4b0] sm:$0xff] }
 0x1cf   : > { %6435 = vmatpush1.bf16.msra.mxu1 %v6434_v5  ;;  %v6312_v62 = vpack.c.bf16 %v1118_v60, %v1112_v59 }
 0x1d0   : > { %6437 = vmatprep.subr.bf16.mxu1 %v6436_v13  ;;  %v1130_v13 = vld [vmem:[%s10867_s1 + $0x510] sm:$0xff] }
 0x1d1   : > { %6297 = vmatpush1.bf16.msra.mxu0 %v6296_v1  ;;  %v1114_v1 = vld [vmem:[%s10867_s1 + $0x490] sm:$0xff] }
 0x1d2   : > { %6299 = vmatprep.subr.bf16.mxu0 %v6298_v12  ;;  %v6450_v6 = vpack.c.bf16 %v1120_v2, %v1114_v1  ;;  %v1124_v12 = vld [vmem:[%s10867_s1 + $0x4e0] sm:$0xff] }
 0x1d3   : > { %6439 = vmatpush1.bf16.msra.mxu1 %v6438_v23  ;;  %v6316_v15 = vpack.c.bf16 %v1130_v13, %v1124_v12  ;;  %v1145_v23 = vld [vmem:[%s10867_s1 + $0x588] sm:$0xff] }
 0x1d4   : > { %6441 = vmatprep.subr.bf16.mxu1 %v6440_v29  ;;  %v6320_v29 = vpack.c.bf16 %v1142_v26, %v1136_v25 }
 0x1d5   : > { %6301 = vmatpush1.bf16.msra.mxu0 %v6300_v17  ;;  %v1137_v17 = vld [vmem:[%s10867_s1 + $0x548] sm:$0xff] }
 0x1d6   : > { %6303 = vmatprep.subr.bf16.mxu0 %v6302_v28 }
 0x1d7   : > { %6443 = vmatpush1.bf16.msra.mxu1 %v6442_v37  ;;  %v1157_v37 = vld [vmem:[%s10867_s1 + $0x5e8] sm:$0xff] }
 0x1d8   : > { %6445 = vmatprep.subr.bf16.mxu1 %v6444_v43  ;;  %v6460_v39 = vpack.c.bf16 %v1157_v37, %v1151_v36 }
 0x1d9   : > { %6305 = vmatpush1.bf16.msra.mxu0 %v6304_v33 }
 0x1da   : > { %6307 = vmatprep.subr.bf16.mxu0 %v6306_v38  ;;  %v6322_v38 = vpack.c.bf16 %v1155_v35, %v1149_v32 }
 0x1db   : > { %6447 = vmatpush1.bf16.msra.mxu1 %v6446_v53 }
 0x1dd   : > { %6309 = vmatpush1.bf16.msra.mxu0 %v6308_v49  ;;  %v1169_v49 = vld [vmem:[%s10867_s1 + $0x648] sm:$0xff] }
 0x1de   : > { %6311 = vmatprep.subr.bf16.mxu0 %v6310_v57  ;;  %v6464_v52 = vpack.c.bf16 %v1169_v49, %v1163_v48  ;;  %v1181_v48 = vld [vmem:[%s10867_s1 + $0x6a8] sm:$0xff] }
 0x1e1   : > { %6313 = vmatpush1.bf16.msra.mxu0 %v6312_v62 }
 0x1e2   : > { %6315 = vmatprep.subr.bf16.mxu0 %v6314_v7 }
 0x1e5   : > { %6317 = vmatpush1.bf16.msra.mxu0 %v6316_v15 }
 0x21c   : > { %v541_v41 = vpop.permute.xlu1 %540  ;;  %v539_v42 = vpop.permute.xlu0 %538 }
 0x21d   : > { %564 = vst.msk [vmem:[#allocation2 + $0x8] sm:$0xff] %vm562_vm5, %v541_v41  ;;  %563 = vst.msk [vmem:[#allocation2] sm:$0xff] %vm562_vm5, %v539_v42 }
 0x224   : > { %v545_v55 = vpop.permute.xlu1 %544  ;;  %v543_v56 = vpop.permute.xlu0 %542  ;;  %v572_v19 = vld [vmem:[#allocation2] sm:$0xff]  ;;  %v649_v28 = vld [vmem:[#allocation2 + $0xa] sm:$0xf] }
 0x225   : > { %566 = vst.msk [vmem:[#allocation2 + $0x18] sm:$0xff] %vm562_vm5, %v545_v55  ;;  %565 = vst.msk [vmem:[#allocation2 + $0x10] sm:$0xff] %vm562_vm5, %v543_v56  ;;  %v648_v44 = vld [vmem:[#allocation2 + $0x2] sm:$0xff]  ;;  %v1115_v55 = vld [vmem:[%s10867_s1 + $0x498] sm:$0xff] }
 0x226   : > { %575 = vst.msk [vmem:[#allocation3] sm:$0xff] %vm574_vm6, %v572_v19  ;;  %v1121_v56 = vld [vmem:[%s10867_s1 + $0x4c8] sm:$0xff]  ;;  %vm746_vm6 = vcmask 1048448  }
 0x227   : > { %v6448_v58 = vpack.c.bf16 %v1121_v56, %v1115_v55  ;;  %v606_v61 = vld [vmem:[#allocation2 + $0x1] sm:$0xff]  ;;  %v607_v56 = vld [vmem:[#allocation2 + $0x9] sm:$0xf] }
 0x228   : > { %v694_v63 = vld [vmem:[#allocation2 + $0x3] sm:$0xff]  ;;  %v695_v57 = vld [vmem:[#allocation2 + $0xb] sm:$0xf] }
 0x229   : > { %6449 = vmatprep.subr.bf16.mxu1 %v6448_v58  ;;  %v573_v31 = vld [vmem:[#allocation2 + $0x8] sm:$0xf] }
 0x22a   : > { %6451 = vmatpush1.bf16.msra.mxu1 %v6450_v6  ;;  %v736_v33 = vld [vmem:[#allocation2 + $0x4] sm:$0xff]  ;;  %577 = vst.msk [vmem:[#allocation3 + $0x28] sm:$0xf] %vm576_vm7, %v573_v31  ;;  %vm748_vm7 = vcmask 31744  }
 0x22b   : > { %v870_v2 = vld [vmem:[#allocation2 + $0x7] sm:$0xff] }
 0x22c   : > { %v551_v9 = vpop.permute.xlu1 %550  ;;  %v549_v10 = vpop.permute.xlu0 %548  ;;  %v666_v11 = vld [vmem:[#allocation2 + $0x16] sm:$0xff]  ;;  %v824_v12 = vld [vmem:[#allocation2 + $0x6] sm:$0xff]  ;;  %v913_v26 = vld [vmem:[#allocation2 + $0x10] sm:$0xf] }
 0x22d   : > { %569 = vst.msk [vmem:[#allocation2 + $0x30] sm:$0xff] %vm562_vm5, %v551_v9  ;;  %568 = vst.msk [vmem:[#allocation2 + $0x28] sm:$0xff] %vm562_vm5, %v549_v10  ;;  %670 = vrot.lane.b32.xlu0 %v666_v11, %s7467_s18  ;;  %v578_v45 = vld [vmem:[#allocation2 + $0x14] sm:$0xff]  ;;  %v1133_v9 = vld [vmem:[%s10867_s1 + $0x528] sm:$0xff] }
 0x22e   : > { %v620_v0 = vld [vmem:[#allocation2 + $0x15] sm:$0xff]  ;;  %v6452_v11 = vpack.c.bf16 %v1133_v9, %v1127_v8 }
 0x22f   : > { %v708_v5 = vld [vmem:[#allocation2 + $0x17] sm:$0xff] }
 0x230   : > { %v513_v21 = vpop.permute.xlu1 %512  ;;  %v489_v22 = vpop.permute.xlu0 %488  ;;  %6453 = vmatprep.subr.bf16.mxu1 %v6452_v11  ;;  %v579_v51 = vld [vmem:[#allocation2 + $0x1c] sm:$0xf]  ;;  %v912_v11 = vld [vmem:[#allocation2 + $0x8] sm:$0xff] }
 0x231   : > { %v529_v27 = vsel %vm439_vm2, %v489_v22, %v513_v21  ;;  %v6318_v21 = vpack.c.bf16 %v1143_v18, %v1137_v17  ;;  %v1139_v22 = vld [vmem:[%s10867_s1 + $0x558] sm:$0xff]  ;;  %6455 = vmatpush1.bf16.msra.mxu1 %v6454_v20  ;;  %vm644_vm2 = vcmask 982816  }
 0x232   : > { %552 = vrot.lane.b32.xlu1 %v529_v27, %s7466_s23  ;;  %v6456_v24 = vpack.c.bf16 %v1145_v23, %v1139_v22  ;;  %v1138_v27 = vld [vmem:[%s10867_s1 + $0x550] sm:$0xff]  ;;  %s10892_s23 = smov 40  }
 0x233   : > { %6319 = vmatprep.subr.bf16.mxu0 %v6318_v21  ;;  %v6458_v34 = vpack.c.bf16 %v1144_v30, %v1138_v27 }
 0x234   : > { %v547_v41 = vpop.permute.xlu0 %546  ;;  %v680_v42 = vld [vmem:[#allocation2 + $0x2a] sm:$0xff]  ;;  %6457 = vmatprep.subr.bf16.mxu1 %v6456_v24  ;;  %6321 = vmatpush1.bf16.msra.mxu0 %v6320_v29  ;;  %v681_v55 = vld [vmem:[#allocation2 + $0x32] sm:$0xf] }
 0x235   : > { %567 = vst.msk [vmem:[#allocation2 + $0x20] sm:$0xff] %vm562_vm5, %v547_v41  ;;  %684 = vrot.lane.b32.xlu0 %v680_v42, %s10874_s16  ;;  %v592_v46 = vld [vmem:[#allocation2 + $0x28] sm:$0xff]  ;;  %s10880_s16 = smov 72   ;;  %v1154_v41 = vld [vmem:[%s10867_s1 + $0x5d0] sm:$0xff]  ;;  %6323 = vmatprep.subr.bf16.mxu0 %v6322_v38  ;;  %vm664_vm5 = vcmask 93184  }
 0x236   : > { %652 = vrot.lane.b32.xlu1 %v648_v44, %s7469_s17  ;;  %v634_v10 = vld [vmem:[#allocation2 + $0x29] sm:$0xff]  ;;  %v6324_v43 = vpack.c.bf16 %v1154_v41, %v1148_v40  ;;  %v1156_v44 = vld [vmem:[%s10867_s1 + $0x5e0] sm:$0xff]  ;;  %6459 = vmatpush1.bf16.msra.mxu1 %v6458_v34  ;;  %v723_v60 = vld [vmem:[#allocation2 + $0x33] sm:$0xf] }
 0x237   : > { %v722_v19 = vld [vmem:[#allocation2 + $0x2b] sm:$0xff]  ;;  %6461 = vmatprep.subr.bf16.mxu1 %v6460_v39  ;;  %v769_v25 = vld [vmem:[#allocation2 + $0x34] sm:$0xf]  ;;  %v1160_v39 = vld [vmem:[%s10867_s1 + $0x600] sm:$0xff] }
 0x238   : > { %v1150_v42 = vld [vmem:[%s10867_s1 + $0x5b0] sm:$0xff]  ;;  %6325 = vmatpush1.bf16.msra.mxu0 %v6324_v43 }
 0x239   : > { %596 = vrot.lane.b32.xlu0 %v592_v46, %s10876_s8  ;;  %s10879_s8 = smov 60   ;;  %v1167_v46 = vld [vmem:[%s10867_s1 + $0x638] sm:$0xff]  ;;  %v6462_v50 = vpack.c.bf16 %v1156_v44, %v1150_v42  ;;  %v593_v54 = vld [vmem:[#allocation2 + $0x30] sm:$0xf]  ;;  %v1168_v44 = vld [vmem:[%s10867_s1 + $0x640] sm:$0xff] }
 0x23a   : > { %582 = vrot.lane.b32.xlu1 %v578_v45, %s7471_s19  ;;  %v1161_v45 = vld [vmem:[%s10867_s1 + $0x608] sm:$0xff]  ;;  %v635_v1 = vld [vmem:[#allocation2 + $0x31] sm:$0xf] }
 0x23b   : > { %v6326_v47 = vpack.c.bf16 %v1167_v46, %v1161_v45  ;;  %6463 = vmatpush1.bf16.msra.mxu1 %v6462_v50  ;;  %v856_v62 = vld [vmem:[#allocation2 + $0x2e] sm:$0xff]  ;;  %v1179_v46 = vld [vmem:[%s10867_s1 + $0x698] sm:$0xff] }
 0x23c   : > { %v667_v53 = vld [vmem:[#allocation2 + $0x1e] sm:$0xf]  ;;  %6465 = vmatprep.subr.bf16.mxu1 %v6464_v52  ;;  %v768_v3 = vld [vmem:[#allocation2 + $0x2c] sm:$0xff]  ;;  %v839_v6 = vld [vmem:[#allocation2 + $0x22] sm:$0xf] }
 0x23d   : > { %610 = vrot.lane.b32.xlu0 %v606_v61, %s10879_s8  ;;  %6327 = vmatprep.subr.bf16.mxu0 %v6326_v47  ;;  %s10894_s8 = smov 60   ;;  %v838_v58 = vld [vmem:[#allocation2 + $0x1a] sm:$0xff]  ;;  %v898_v9 = vld [vmem:[#allocation2 + $0x2f] sm:$0xff]  ;;  %v885_v14 = vld [vmem:[#allocation2 + $0x23] sm:$0xf] }
 0x23e   : > { %698 = vrot.lane.b32.xlu1 %v694_v63, %s10877_s20  ;;  %s10878_s20 = smov 80   ;;  %v709_v59 = vld [vmem:[#allocation2 + $0x1f] sm:$0xf]  ;;  %v871_v29 = vld [vmem:[#allocation2 + $0xf] sm:$0xf] }
 0x23f   : > { %v621_v61 = vld [vmem:[#allocation2 + $0x1d] sm:$0xf]  ;;  %v927_v30 = vld [vmem:[#allocation2 + $0x24] sm:$0xf]  ;;  %v1166_v42 = vld [vmem:[%s10867_s1 + $0x630] sm:$0xff] }
 0x240   : > { %v754_v63 = vld [vmem:[#allocation2 + $0x18] sm:$0xff]  ;;  %v755_v8 = vld [vmem:[#allocation2 + $0x20] sm:$0xf]  ;;  %v1162_v43 = vld [vmem:[%s10867_s1 + $0x610] sm:$0xff] }
 0x241   : > { %624 = vrot.lane.b32.xlu0 %v620_v0, %s10878_s20  ;;  %s10882_s20 = smov 92   ;;  %v737_v0 = vld [vmem:[#allocation2 + $0xc] sm:$0xf]  ;;  %v884_v4 = vld [vmem:[#allocation2 + $0x1b] sm:$0xff] }
 0x242   : > { %712 = vrot.lane.b32.xlu1 %v708_v5, %s10880_s16  ;;  %s10898_s16 = smov 80   ;;  %v782_v5 = vld [vmem:[#allocation2 + $0x5] sm:$0xff]  ;;  %v796_v7 = vld [vmem:[#allocation2 + $0x19] sm:$0xff]  ;;  %v797_v37 = vld [vmem:[#allocation2 + $0x21] sm:$0xf] }
 0x243   : > { %v926_v13 = vld [vmem:[#allocation2 + $0x1c] sm:$0xff]  ;;  %v1173_v45 = vld [vmem:[%s10867_s1 + $0x668] sm:$0xff] }
 0x244   : > { %v1175_v47 = vld [vmem:[%s10867_s1 + $0x678] sm:$0xff]  ;;  %v825_v50 = vld [vmem:[#allocation2 + $0xe] sm:$0xf]  ;;  %v1172_v52 = vld [vmem:[%s10867_s1 + $0x660] sm:$0xff] }
 0x245   : > { %638 = vrot.lane.b32.xlu0 %v634_v10, %s10881_s29  ;;  %s7480_s29 = smov 4   ;;  %v810_v10 = vld [vmem:[#allocation2 + $0x2d] sm:$0xff] }
 0x246   : > { %726 = vrot.lane.b32.xlu1 %v722_v19, %s10882_s20  ;;  %s7481_s20 = smov 36  }
 0x249   : > { %654 = vrot.lane.b32.xlu0 %v649_v28, %s7469_s17  ;;  %s10899_s17 = smov 100  }
 0x24a   : > { %740 = vrot.lane.b32.xlu1 %v736_v33, %s10883_s22  ;;  %v783_v33 = vld [vmem:[#allocation2 + $0xd] sm:$0xf] }
 0x24d   : > { %584 = vrot.lane.b32.xlu0 %v579_v51, %s7471_s19  ;;  %s7478_s19 = smov 124   ;;  %v6328_v51 = vpack.c.bf16 %v1166_v42, %v1160_v39  ;;  %v1210_v39 = vld [vmem:[%s10867_s1 + $0x790] sm:$0xff]  ;;  %v1221_v42 = vld [vmem:[%s10867_s1 + $0x7e8] sm:$0xff] }
 0x24e   : > { %672 = vrot.lane.b32.xlu1 %v667_v53, %s7467_s18  ;;  %s10896_s18 = smov 72   ;;  %v1178_v53 = vld [vmem:[%s10867_s1 + $0x690] sm:$0xff] }
 0x251   : > { %598 = vrot.lane.b32.xlu0 %v593_v54, %s10892_s23  ;;  %s7483_s23 = smov 56  }
 0x252   : > { %686 = vrot.lane.b32.xlu1 %v681_v55, %s10893_s14 }
 0x255   : > { %612 = vrot.lane.b32.xlu0 %v607_v56, %s10894_s8  ;;  %s7484_s8 = smov 44   ;;  %v6466_v56 = vpack.c.bf16 %v1168_v44, %v1162_v43  ;;  %v1227_v43 = vld [vmem:[%s10867_s1 + $0x818] sm:$0xff] }
 0x256   : > { %700 = vrot.lane.b32.xlu1 %v695_v57, %s10895_s15  ;;  %s10887_s15 = smov 64   ;;  %v6330_v57 = vpack.c.bf16 %v1179_v46, %v1173_v45  ;;  %v1223_v44 = vld [vmem:[%s10867_s1 + $0x7f8] sm:$0xff]  ;;  %v1229_v45 = vld [vmem:[%s10867_s1 + $0x828] sm:$0xff] }
 0x259   : > { %842 = vrot.lane.b32.xlu0 %v838_v58, %s7478_s19  ;;  %v1174_v58 = vld [vmem:[%s10867_s1 + $0x670] sm:$0xff] }
 0x25a   : > { %714 = vrot.lane.b32.xlu1 %v709_v59, %s10896_s18  ;;  %s7486_s18 = smov 76   ;;  %v1180_v59 = vld [vmem:[%s10867_s1 + $0x6a0] sm:$0xff] }
 0x25d   : > { %728 = vrot.lane.b32.xlu0 %v723_v60, %s10897_s21  ;;  %s7487_s21 = smov 84  }
 0x25e   : > { %626 = vrot.lane.b32.xlu1 %v621_v61, %s10898_s16  ;;  %s10885_s16 = smov 96   ;;  %v6468_v61 = vpack.c.bf16 %v1181_v48, %v1175_v47 }
 0x261   : > { %860 = vrot.lane.b32.xlu0 %v856_v62, %s7479_s9  ;;  %v1185_v62 = vld [vmem:[%s10867_s1 + $0x6c8] sm:$0xff] }
 0x262   : > { %758 = vrot.lane.b32.xlu1 %v754_v63, %s7480_s29  ;;  %v1191_v63 = vld [vmem:[%s10867_s1 + $0x6f8] sm:$0xff] }
 0x265   : > { %742 = vrot.lane.b32.xlu0 %v737_v0, %s10883_s22  ;;  %v1187_v0 = vld [vmem:[%s10867_s1 + $0x6d8] sm:$0xff]  ;;  %s10904_s22 = smov 112  }
 0x266   : > { %640 = vrot.lane.b32.xlu1 %v635_v1, %s10899_s17  ;;  %s7490_s17 = smov 116   ;;  %v1193_v1 = vld [vmem:[%s10867_s1 + $0x708] sm:$0xff] }
 0x269   : > { %874 = vrot.lane.b32.xlu0 %v870_v2, %s7481_s20 }
 0x26a   : > { %772 = vrot.lane.b32.xlu1 %v768_v3, %s7482_s13  ;;  %v944_v3 = vld [vmem:[#allocation2 + $0x30] sm:$0xff] }
 0x26d   : > { %888 = vrot.lane.b32.xlu0 %v884_v4, %s7483_s23  ;;  %v6332_v4 = vpack.c.bf16 %v1178_v53, %v1172_v52  ;;  %v1226_v52 = vld [vmem:[%s10867_s1 + $0x810] sm:$0xff] }
 0x26e   : > { %786 = vrot.lane.b32.xlu1 %v782_v5, %s7484_s8  ;;  %v1222_v53 = vld [vmem:[%s10867_s1 + $0x7f0] sm:$0xff] }
 0x271   : > { %844 = vrot.lane.b32.xlu0 %v839_v6, %s7478_s19  ;;  %s7489_s19 = smov 104   ;;  %v6470_v6 = vpack.c.bf16 %v1180_v59, %v1174_v58  ;;  %v1239_v58 = vld [vmem:[%s10867_s1 + $0x878] sm:$0xff] }
 0x272   : > { %800 = vrot.lane.b32.xlu1 %v796_v7, %s10887_s15  ;;  %v6334_v7 = vpack.c.bf16 %v1191_v63, %v1185_v62  ;;  %v1235_v59 = vld [vmem:[%s10867_s1 + $0x858] sm:$0xff] }
 0x275   : > { %760 = vrot.lane.b32.xlu0 %v755_v8, %s7480_s29  ;;  %v1184_v8 = vld [vmem:[%s10867_s1 + $0x6c0] sm:$0xff] }
 0x276   : > { %902 = vrot.lane.b32.xlu1 %v898_v9, %s7486_s18  ;;  %v1190_v9 = vld [vmem:[%s10867_s1 + $0x6f0] sm:$0xff] }
 0x27a   : > { %814 = vrot.lane.b32.xlu1 %v810_v10, %s7487_s21  ;;  %v1186_v10 = vld [vmem:[%s10867_s1 + $0x6d0] sm:$0xff] }
 0x27e   : > { %916 = vrot.lane.b32.xlu1 %v912_v11, %s10885_s16  ;;  %v6472_v11 = vpack.c.bf16 %v1193_v1, %v1187_v0 }
 0x282   : > { %828 = vrot.lane.b32.xlu1 %v824_v12, %s7489_s19  ;;  %v1192_v12 = vld [vmem:[%s10867_s1 + $0x700] sm:$0xff] }
 0x286   : > { %930 = vrot.lane.b32.xlu1 %v926_v13, %s7490_s17  ;;  %v1197_v13 = vld [vmem:[%s10867_s1 + $0x728] sm:$0xff] }
 0x28a   : > { %890 = vrot.lane.b32.xlu1 %v885_v14, %s7483_s23  ;;  %v1203_v14 = vld [vmem:[%s10867_s1 + $0x758] sm:$0xff]  ;;  %s269_s23 = sand.u32 1, %s7451_s25  }
 0x29f   : > { %v671_v15 = vpop.permute.xlu0 %670 }
 0x2a4   : > { %v553_v16 = vpop.permute.xlu1 %552 }
 0x2a5   : > { %571 = vst.msk [vmem:[#allocation2 + $0x38] sm:$0xf] %vm570_vm8, %v553_v16  ;;  %vm590_vm8 = vcmask 322720   ;;  %v1205_v16 = vld [vmem:[%s10867_s1 + $0x768] sm:$0xff] }
 0x2a7   : > { %v685_v17 = vpop.permute.xlu0 %684 }
 0x2a8   : > { %v653_v18 = vpop.permute.xlu1 %652 }
 0x2a9   : > { %661 = vst.msk [vmem:[#allocation3 + $0x8] sm:$0xff] %vm660_vm9, %v653_v18  ;;  %vm678_vm9 = vcmask 257120  }
 0x2aa   : > { %677 = vst.msk [vmem:[#allocation3 + $0x8] sm:$0xff] %vm676_vm10, %v671_v15  ;;  %vm604_vm10 = vcmask 486720   ;;  %v1199_v15 = vld [vmem:[%s10867_s1 + $0x738] sm:$0xff] }
 0x2ab   : > { %v597_v19 = vpop.permute.xlu0 %596  ;;  %691 = vst.msk [vmem:[#allocation3 + $0x8] sm:$0xff] %vm690_vm11, %v685_v17  ;;  %vm692_vm11 = vcmask 421120  }
 0x2ac   : > { %v583_v20 = vpop.permute.xlu1 %582  ;;  %v857_v21 = vld [vmem:[#allocation2 + $0x36] sm:$0xf] }
 0x2ad   : > { %v899_v22 = vld [vmem:[#allocation2 + $0x37] sm:$0xf]  ;;  %589 = vst.msk [vmem:[#allocation3] sm:$0xff] %vm588_vm12, %v583_v20  ;;  %862 = vrot.lane.b32.xlu0 %v857_v21, %s7479_s9  ;;  %s10889_s9 = smov 8   ;;  %vm618_vm12 = vcmask 650720   ;;  %v6474_v20 = vpack.c.bf16 %v1192_v12, %v1186_v10  ;;  %v6338_v21 = vpack.c.bf16 %v1203_v14, %v1197_v13  ;;  %v1244_v14 = vld [vmem:[%s10867_s1 + $0x8a0] sm:$0xff] }
 0x2ae   : > { %904 = vrot.lane.b32.xlu1 %v899_v22, %s7486_s18  ;;  %603 = vst.msk [vmem:[#allocation3] sm:$0xff] %vm602_vm13, %v597_v19  ;;  %v945_v34 = vld [vmem:[#allocation2 + $0x38] sm:$0xf]  ;;  %vm706_vm13 = vcmask 585120   ;;  %v1196_v22 = vld [vmem:[%s10867_s1 + $0x720] sm:$0xff] }
 0x2af   : > { %v611_v23 = vpop.permute.xlu0 %610  ;;  %v811_v41 = vld [vmem:[#allocation2 + $0x35] sm:$0xf] }
 0x2b0   : > { %617 = vst.msk [vmem:[#allocation3] sm:$0xff] %vm616_vm14, %v611_v23  ;;  %v699_v24 = vpop.permute.xlu1 %698  ;;  %vm850_vm14 = vcmask 130048   ;;  %v1202_v23 = vld [vmem:[%s10867_s1 + $0x750] sm:$0xff] }
 0x2b1   : > { %705 = vst.msk [vmem:[#allocation3 + $0x8] sm:$0xff] %vm704_vm15, %v699_v24  ;;  %774 = vrot.lane.b32.xlu0 %v769_v25, %s7482_s13  ;;  %vm720_vm15 = vcmask 749120   ;;  %v1198_v24 = vld [vmem:[%s10867_s1 + $0x730] sm:$0xff]  ;;  %v6476_v25 = vpack.c.bf16 %v1205_v16, %v1199_v15 }
 0x2b2   : > { %918 = vrot.lane.b32.xlu1 %v913_v26, %s10885_s16  ;;  %v1204_v26 = vld [vmem:[%s10867_s1 + $0x760] sm:$0xff]  ;;  %v1250_v15 = vld [vmem:[%s10867_s1 + $0x8d0] sm:$0xff]  ;;  %s10903_s16 = smov 96  }
 0x2b3   : > { %v625_v27 = vpop.permute.xlu0 %624  ;;  %v1246_v16 = vld [vmem:[%s10867_s1 + $0x8b0] sm:$0xff] }
 0x2b4   : > { %631 = vst.msk [vmem:[#allocation3] sm:$0xff] %vm630_vm0, %v625_v27  ;;  %v713_v28 = vpop.permute.xlu1 %712  ;;  %vm734_vm0 = vcmask 913120   ;;  %v1209_v27 = vld [vmem:[%s10867_s1 + $0x788] sm:$0xff] }
 0x2b5   : > { %719 = vst.msk [vmem:[#allocation3 + $0x8] sm:$0xff] %vm718_vm1, %v713_v28  ;;  %876 = vrot.lane.b32.xlu0 %v871_v29, %s7481_s20  ;;  %v1215_v28 = vld [vmem:[%s10867_s1 + $0x7b8] sm:$0xff]  ;;  %vm632_vm1 = vcmask 814720  }
 0x2b6   : > { %932 = vrot.lane.b32.xlu1 %v927_v30, %s7490_s17  ;;  %v1211_v29 = vld [vmem:[%s10867_s1 + $0x798] sm:$0xff]  ;;  %v1217_v30 = vld [vmem:[%s10867_s1 + $0x7c8] sm:$0xff] }
 0x2b7   : > { %v639_v31 = vpop.permute.xlu0 %638 }
 0x2b8   : > { %645 = vst.msk [vmem:[#allocation3] sm:$0xff] %vm644_vm2, %v639_v31  ;;  %v727_v32 = vpop.permute.xlu1 %726  ;;  %vm866_vm2 = vcmask 294016  }
 0x2b9   : > { %659 = vst.msk [vmem:[#allocation3] sm:$0xff] %vm658_vm3, %v653_v18  ;;  %788 = vrot.lane.b32.xlu0 %v783_v33, %s7484_s8  ;;  %v6336_v18 = vpack.c.bf16 %v1190_v9, %v1184_v8  ;;  %vm764_vm3 = vcmask 195616   ;;  %v1251_v8 = vld [vmem:[%s10867_s1 + $0x8d8] sm:$0xff]  ;;  %s7320_s8 = smul.u32 48, %s269_s23 }
 0x2ba   : > { %733 = vst.msk [vmem:[#allocation3 + $0x8] sm:$0xff] %vm732_vm4, %v727_v32  ;;  %950 = vrot.lane.b32.xlu1 %v945_v34, %s10889_s9  ;;  %v6340_v32 = vpack.c.bf16 %v1202_v23, %v1196_v22  ;;  %v6478_v34 = vpack.c.bf16 %v1204_v26, %v1198_v24  ;;  %vm750_vm4 = vcmask 1044352   ;;  %v1259_v23 = vld [vmem:[%s10867_s1 + $0x918] sm:$0xff]  ;;  %v1265_v24 = vld [vmem:[%s10867_s1 + $0x948] sm:$0xff] }
 0x2bb   : > { %v8138_v35 = vpop.permute.xlu0 %654 }
 0x2bc   : > { %665 = vst.msk [vmem:[#allocation3 + $0x30] sm:$0xf] %vm664_vm5, %v8138_v35  ;;  %v741_v36 = vpop.permute.xlu1 %740  ;;  %vm752_vm5 = vcmask 27648  }
 0x2bd   : > { %747 = vst.msk [vmem:[#allocation3 + $0x8] sm:$0xff] %vm746_vm6, %v741_v36  ;;  %802 = vrot.lane.b32.xlu0 %v797_v37, %s10887_s15  ;;  %v1208_v37 = vld [vmem:[%s10867_s1 + $0x780] sm:$0xff]  ;;  %vm646_vm6 = vcmask 978720   ;;  %s7494_s15 = smov [#allocation7]  }
 0x2be   : > { %749 = vst.msk [vmem:[#allocation3 + $0x10] sm:$0xff] %vm748_vm7, %v741_v36  ;;  %v6342_v36 = vpack.c.bf16 %v1215_v28, %v1209_v27  ;;  %vm662_vm7 = vcmask 1044416   ;;  %v6356_v27 = vpack.c.bf16 %v1250_v15, %v1244_v14  ;;  %v1256_v28 = vld [vmem:[%s10867_s1 + $0x900] sm:$0xff]  ;;  %v1305_v15 = vld [vmem:[%s10867_s1 + $0xa88] sm:$0xff]  ;;  %s7401_s20 = sshll.u32 %s7494_s15, 4  ;;  %s7402_s20 = int_to_ptr.vmem [resolvable:$false] %s7401_s20 }
 0x2bf   : > { %v585_v38 = vpop.permute.xlu0 %584  ;;  %v1300_v14 = vld [vmem:[%s10867_s1 + $0xa60] sm:$0xff]  ;;  %s7403_s13 = scalar_lea.vmem %s7402_s20, 1536 }
 0x2c0   : > { %591 = vst.msk [vmem:[#allocation3 + $0x28] sm:$0xf] %vm590_vm8, %v585_v38  ;;  %v673_v40 = vpop.permute.xlu1 %672  ;;  %v958_v60 = vld [vmem:[#allocation3] sm:$0xff]  ;;  %v1214_v38 = vld [vmem:[%s10867_s1 + $0x7b0] sm:$0xff]  ;;  %vm880_vm8 = vcmask 458016  }
 0x2c1   : > { %679 = vst.msk [vmem:[#allocation3 + $0x30] sm:$0xf] %vm678_vm9, %v673_v40  ;;  %816 = vrot.lane.b32.xlu0 %v811_v41, %s7487_s21  ;;  %v6480_v40 = vpack.c.bf16 %v1217_v30, %v1211_v29  ;;  %v1216_v41 = vld [vmem:[%s10867_s1 + $0x7c0] sm:$0xff]  ;;  %v6344_v47 = vpack.c.bf16 %v1214_v38, %v1208_v37  ;;  %vm778_vm9 = vcmask 359616   ;;  %v6496_v37 = vpack.c.bf16 %v1265_v24, %v1259_v23  ;;  %v1269_v38 = vld [vmem:[%s10867_s1 + $0x968] sm:$0xff]  ;;  %s271_s21 = scalar_lea.vmem [#allocation7], %s7320_s8 }
 0x2c2   : > { %v1304_v24 = vld [vmem:[%s10867_s1 + $0xa80] sm:$0xff]  ;;  %s5287_s18 = sshll.u32 %s271_s21, 4  ;;  %s10815_s18 = int_to_ptr.vmem [resolvable:$true] %s5287_s18 }
 0x2c3   : > { %v599_v49 = vpop.permute.xlu0 %598  ;;  %p7404_p0 = scmp.lt.s32.totalorder %s10815_s18, %s7402_s20 }
 0x2c4   : > { %605 = vst.msk [vmem:[#allocation3 + $0x28] sm:$0xf] %vm604_vm10, %v599_v49  ;;  %v687_v54 = vpop.permute.xlu1 %686  ;;  %v8173_v55 = vld [vmem:[#allocation3 + $0x8] sm:$0xff]  ;;  %v6482_v49 = vpack.c.bf16 %v1216_v41, %v1210_v39  ;;  %vm894_vm10 = vcmask 622016   ;;  %v1275_v39 = vld [vmem:[%s10867_s1 + $0x998] sm:$0xff] }
 0x2c5   : > { %693 = vst.msk [vmem:[#allocation3 + $0x30] sm:$0xf] %vm692_vm11, %v687_v54  ;;  %830 = vrot.lane.b32.xlu0 %v825_v50, %s7489_s19  ;;  %1498 = vmatprep.mubr.f32.mxu0 %v8173_v55  ;;  %v6346_v50 = vpack.c.bf16 %v1227_v43, %v1221_v42  ;;  %v6484_v54 = vpack.c.bf16 %v1229_v45, %v1223_v44  ;;  %vm792_vm11 = vcmask 523616   ;;  %v1277_v41 = vld [vmem:[%s10867_s1 + $0x9a8] sm:$0xff]  ;;  %s10902_s19 = smov 64  }
 0x2c6   : > { %1729 = vmatprep.mubr.f32.mxu1 %v8173_v55  ;;  %1499 = vmatmul.mubr.f32.vlgmr.msra.gmra.mrb[0].mxu0 %v958_v60 }
 0x2c7   : > { %6329 = vmatpush1.bf16.msra.mxu0 %v6328_v51  ;;  %1730 = vmatmul.mubr.f32.vlgmr.msra.gmra.mrb[0].mxu1 %v958_v60  ;;  %v613_v2 = vpop.permute.xlu0 %612  ;;  %v1220_v51 = vld [vmem:[%s10867_s1 + $0x7e0] sm:$0xff]  ;;  %v1241_v60 = vld [vmem:[%s10867_s1 + $0x888] sm:$0xff] }
 0x2c8   : > { %6467 = vmatpush1.bf16.msra.mxu1 %v6466_v56  ;;  %619 = vst.msk [vmem:[#allocation3 + $0x28] sm:$0xf] %vm618_vm12, %v613_v2  ;;  %v701_v5 = vpop.permute.xlu1 %700  ;;  %6331 = vmatprep.subr.bf16.mxu0 %v6330_v57  ;;  %v1228_v56 = vld [vmem:[%s10867_s1 + $0x820] sm:$0xff]  ;;  %v1233_v57 = vld [vmem:[%s10867_s1 + $0x848] sm:$0xff]  ;;  %v6348_v62 = vpack.c.bf16 %v1226_v52, %v1220_v51  ;;  %vm854_vm12 = vcmask 125952  }
 0x2c9   : > { %707 = vst.msk [vmem:[#allocation3 + $0x30] sm:$0xf] %vm706_vm13, %v701_v5  ;;  %948 = vrot.lane.b32.xlu0 %v944_v3, %s10889_s9  ;;  %6469 = vmatprep.subr.bf16.mxu1 %v6468_v61  ;;  %v6486_v0 = vpack.c.bf16 %v1228_v56, %v1222_v53  ;;  %v6350_v1 = vpack.c.bf16 %v1239_v58, %v1233_v57  ;;  %v1232_v2 = vld [vmem:[%s10867_s1 + $0x840] sm:$0xff]  ;;  %v1238_v3 = vld [vmem:[%s10867_s1 + $0x870] sm:$0xff]  ;;  %vm806_vm13 = vcmask 687616   ;;  %v1281_v52 = vld [vmem:[%s10867_s1 + $0x9c8] sm:$0xff] }
 0x2ca   : > { %v1234_v5 = vld [vmem:[%s10867_s1 + $0x850] sm:$0xff]  ;;  %v6352_v10 = vpack.c.bf16 %v1238_v3, %v1232_v2  ;;  %v1276_v51 = vld [vmem:[%s10867_s1 + $0x9a0] sm:$0xff]  ;;  %v1287_v53 = vld [vmem:[%s10867_s1 + $0x9f8] sm:$0xff] }
 0x2cb   : > { %6333 = vmatpush1.bf16.msra.mxu0 %v6332_v4  ;;  %v8222_v17 = vpop.permute.xlu0 %842  ;;  %v6488_v4 = vpack.c.bf16 %v1241_v60, %v1235_v59  ;;  %v1289_v56 = vld [vmem:[%s10867_s1 + $0xa08] sm:$0xff]  ;;  %v1288_v2 = vld [vmem:[%s10867_s1 + $0xa00] sm:$0xff] }
 0x2cc   : > { %6471 = vmatpush1.bf16.msra.mxu1 %v6470_v6  ;;  %851 = vst.msk [vmem:[#allocation3 + $0x18] sm:$0xff] %vm850_vm14, %v8222_v17  ;;  %v715_v19 = vpop.permute.xlu1 %714  ;;  %6335 = vmatprep.subr.bf16.mxu0 %v6334_v7  ;;  %v1240_v6 = vld [vmem:[%s10867_s1 + $0x880] sm:$0xff]  ;;  %v1245_v7 = vld [vmem:[%s10867_s1 + $0x8a8] sm:$0xff] }
 0x2cd   : > { %721 = vst.msk [vmem:[#allocation3 + $0x30] sm:$0xf] %vm720_vm15, %v715_v19  ;;  %6473 = vmatprep.subr.bf16.mxu1 %v6472_v11  ;;  %v1247_v11 = vld [vmem:[%s10867_s1 + $0x8b8] sm:$0xff]  ;;  %v6490_v13 = vpack.c.bf16 %v1240_v6, %v1234_v5  ;;  %v1252_v19 = vld [vmem:[%s10867_s1 + $0x8e0] sm:$0xff]  ;;  %vm766_vm15 = vcmask 191520   ;;  %v1293_v3 = vld [vmem:[%s10867_s1 + $0xa28] sm:$0xff] }
 0x2ce   : > { %v6494_v30 = vpack.c.bf16 %v1252_v19, %v1246_v16  ;;  %v1295_v5 = vld [vmem:[%s10867_s1 + $0xa38] sm:$0xff]  ;;  %v1301_v6 = vld [vmem:[%s10867_s1 + $0xa68] sm:$0xff] }
 0x2cf   : > { %6337 = vmatpush1.bf16.msra.mxu0 %v6336_v18  ;;  %v729_v31 = vpop.permute.xlu0 %728  ;;  %v6354_v18 = vpack.c.bf16 %v1251_v8, %v1245_v7  ;;  %v1311_v16 = vld [vmem:[%s10867_s1 + $0xab8] sm:$0xff]  ;;  %v1313_v19 = vld [vmem:[%s10867_s1 + $0xac8] sm:$0xff] }
 0x2d0   : > { %6475 = vmatpush1.bf16.msra.mxu1 %v6474_v20  ;;  %735 = vst.msk [vmem:[#allocation3 + $0x30] sm:$0xf] %vm734_vm0, %v729_v31  ;;  %v627_v33 = vpop.permute.xlu1 %626  ;;  %6339 = vmatprep.subr.bf16.mxu0 %v6338_v21  ;;  %v1257_v20 = vld [vmem:[%s10867_s1 + $0x908] sm:$0xff]  ;;  %v1263_v21 = vld [vmem:[%s10867_s1 + $0x938] sm:$0xff]  ;;  %vm908_vm0 = vcmask 786016   ;;  %v6374_v23 = vpack.c.bf16 %v1311_v16, %v1305_v15 }
 0x2d1   : > { %633 = vst.msk [vmem:[#allocation3 + $0x28] sm:$0xf] %vm632_vm1, %v627_v33  ;;  %6477 = vmatprep.subr.bf16.mxu1 %v6476_v25  ;;  %v6358_v31 = vpack.c.bf16 %v1263_v21, %v1257_v20  ;;  %v1258_v33 = vld [vmem:[%s10867_s1 + $0x910] sm:$0xff]  ;;  %vm820_vm1 = vcmask 851616   ;;  %v1371_v15 = vld [vmem:[%s10867_s1 + $0xc98] sm:$0xf] }
 0x2d3   : > { %6341 = vmatpush1.bf16.msra.mxu0 %v6340_v32  ;;  %v861_v46 = vpop.permute.xlu0 %860  ;;  %v1262_v32 = vld [vmem:[%s10867_s1 + $0x930] sm:$0xff] }
 0x2d4   : > { %6479 = vmatpush1.bf16.msra.mxu1 %v6478_v34  ;;  %867 = vst.msk [vmem:[#allocation3 + $0x18] sm:$0xff] %vm866_vm2, %v861_v46  ;;  %v759_v48 = vpop.permute.xlu1 %758  ;;  %6343 = vmatprep.subr.bf16.mxu0 %v6342_v36  ;;  %v1264_v34 = vld [vmem:[%s10867_s1 + $0x940] sm:$0xff]  ;;  %v6360_v43 = vpack.c.bf16 %v1262_v32, %v1256_v28  ;;  %v6362_v46 = vpack.c.bf16 %v1275_v39, %v1269_v38  ;;  %vm922_vm2 = vcmask 950016   ;;  %v1319_v32 = vld [vmem:[%s10867_s1 + $0xaf8] sm:$0xff] }
 0x2d5   : > { %765 = vst.msk [vmem:[#allocation3 + $0x10] sm:$0xff] %vm764_vm3, %v759_v48  ;;  %6481 = vmatprep.subr.bf16.mxu1 %v6480_v40  ;;  %v1271_v40 = vld [vmem:[%s10867_s1 + $0x978] sm:$0xff]  ;;  %v6498_v45 = vpack.c.bf16 %v1264_v34, %v1258_v33  ;;  %v1274_v48 = vld [vmem:[%s10867_s1 + $0x990] sm:$0xff]  ;;  %vm834_vm3 = vcmask 1015616   ;;  %v1325_v33 = vld [vmem:[%s10867_s1 + $0xb28] sm:$0xff] }
 0x2d7   : > { %6345 = vmatpush1.bf16.msra.mxu0 %v6344_v47  ;;  %v743_v61 = vpop.permute.xlu0 %742  ;;  %v1268_v47 = vld [vmem:[%s10867_s1 + $0x960] sm:$0xff] }
 0x2d8   : > { %6483 = vmatpush1.bf16.msra.mxu1 %v6482_v49  ;;  %751 = vst.msk [vmem:[#allocation3 + $0x30] sm:$0xf] %vm750_vm4, %v743_v61  ;;  %v641_v63 = vpop.permute.xlu1 %640  ;;  %6347 = vmatprep.subr.bf16.mxu0 %v6346_v50  ;;  %v1270_v49 = vld [vmem:[%s10867_s1 + $0x970] sm:$0xff]  ;;  %v6500_v50 = vpack.c.bf16 %v1277_v41, %v1271_v40  ;;  %v6364_v58 = vpack.c.bf16 %v1274_v48, %v1268_v47  ;;  %vm848_vm4 = vcmask 1048544   ;;  %v1316_v40 = vld [vmem:[%s10867_s1 + $0xae0] sm:$0xff]  ;;  %v1335_v47 = vld [vmem:[%s10867_s1 + $0xb78] sm:$0xff] }
 0x2d9   : > { %753 = vst.msk [vmem:[#allocation3 + $0x38] sm:$0xf] %vm752_vm5, %v743_v61  ;;  %6485 = vmatprep.subr.bf16.mxu1 %v6484_v54  ;;  %v1283_v54 = vld [vmem:[%s10867_s1 + $0x9d8] sm:$0xff]  ;;  %v6502_v60 = vpack.c.bf16 %v1276_v51, %v1270_v49  ;;  %v6366_v61 = vpack.c.bf16 %v1287_v53, %v1281_v52  ;;  %v1322_v41 = vld [vmem:[%s10867_s1 + $0xb10] sm:$0xff]  ;;  %vm936_vm5 = vcmask 1048480   ;;  %v1337_v49 = vld [vmem:[%s10867_s1 + $0xb88] sm:$0xff] }
 0x2da   : > { %647 = vst.msk [vmem:[#allocation3 + $0x28] sm:$0xf] %vm646_vm6, %v641_v63  ;;  %v1286_v63 = vld [vmem:[%s10867_s1 + $0x9f0] sm:$0xff]  ;;  %vm938_vm6 = vcmask 64512   ;;  %v1331_v48 = vld [vmem:[%s10867_s1 + $0xb58] sm:$0xff] }
 0x2db   : > { %663 = vst.msk [vmem:[#allocation3 + $0x28] sm:$0xf] %vm662_vm7, %v8138_v35  ;;  %6349 = vmatpush1.bf16.msra.mxu0 %v6348_v62  ;;  %v875_v9 = vpop.permute.xlu0 %874  ;;  %v1253_v35 = vld [vmem:[%s10867_s1 + $0x8e8] sm:$0xff]  ;;  %v1280_v62 = vld [vmem:[%s10867_s1 + $0x9c0] sm:$0xff]  ;;  %vm1415_vm7 = vcmask 1043456  }
 0x2dc   : > { %6487 = vmatpush1.bf16.msra.mxu1 %v6486_v0  ;;  %881 = vst.msk [vmem:[#allocation3 + $0x18] sm:$0xff] %vm880_vm8, %v875_v9  ;;  %v773_v12 = vpop.permute.xlu1 %772  ;;  %6351 = vmatprep.subr.bf16.mxu0 %v6350_v1  ;;  %v6492_v22 = vpack.c.bf16 %v1253_v35, %v1247_v11  ;;  %v1282_v0 = vld [vmem:[%s10867_s1 + $0x9d0] sm:$0xff]  ;;  %v6504_v1 = vpack.c.bf16 %v1289_v56, %v1283_v54  ;;  %v1292_v11 = vld [vmem:[%s10867_s1 + $0xa20] sm:$0xff]  ;;  %vm7492_vm8 = vmmov 1  }
 0x2dd   : > { %779 = vst.msk [vmem:[#allocation3 + $0x10] sm:$0xff] %vm778_vm9, %v773_v12  ;;  %6489 = vmatprep.subr.bf16.mxu1 %v6488_v4  ;;  %v1299_v4 = vld [vmem:[%s10867_s1 + $0xa58] sm:$0xff]  ;;  %v6368_v7 = vpack.c.bf16 %v1286_v63, %v1280_v62  ;;  %v6506_v9 = vpack.c.bf16 %v1288_v2, %v1282_v0  ;;  %v1298_v35 = vld [vmem:[%s10867_s1 + $0xa50] sm:$0xff]  ;;  %v1349_v62 = vld [vmem:[%s10867_s1 + $0xbe8] sm:$0xff] }
 0x2de   : > { %v1294_v12 = vld [vmem:[%s10867_s1 + $0xa30] sm:$0xff]  ;;  %v6372_v20 = vpack.c.bf16 %v1298_v35, %v1292_v11  ;;  %v1340_v2 = vld [vmem:[%s10867_s1 + $0xba0] sm:$0xff]  ;;  %vm8568_vm9 = vmpackc.low %vm1415_vm7, %vm7492_vm8  ;;  %vm836_vm8 = vcmask 1011520  }
 0x2df   : > { %6353 = vmatpush1.bf16.msra.mxu0 %v6352_v10  ;;  %v889_v25 = vpop.permute.xlu0 %888  ;;  %v8350_v26 = vld [vmem:[#allocation3 + $0x30] sm:$0xf]  ;;  %v6370_v10 = vpack.c.bf16 %v1299_v4, %v1293_v3 }
 0x2e0   : > { %6491 = vmatpush1.bf16.msra.mxu1 %v6490_v13  ;;  %895 = vst.msk [vmem:[#allocation3 + $0x18] sm:$0xff] %vm894_vm10, %v889_v25  ;;  %v787_v29 = vpop.permute.xlu1 %786  ;;  %1504 = vmatprep.mubr.f32.mxu0 %v8350_v26  ;;  %v6508_v13 = vpack.c.bf16 %v1301_v6, %v1295_v5  ;;  %v1310_v25 = vld [vmem:[%s10867_s1 + $0xab0] sm:$0xff]  ;;  %v1348_v6 = vld [vmem:[%s10867_s1 + $0xbe0] sm:$0xff]  ;;  %vm868_vm10 = vcmask 289920  }
 0x2e1   : > { %793 = vst.msk [vmem:[#allocation3 + $0x10] sm:$0xff] %vm792_vm11, %v787_v29  ;;  %1735 = vmatprep.mubr.f32.mxu1 %v8350_v26  ;;  %6355 = vmatprep.subr.bf16.mxu0 %v6354_v18  ;;  %v1307_v18 = vld [vmem:[%s10867_s1 + $0xa98] sm:$0xff]  ;;  %v1312_v29 = vld [vmem:[%s10867_s1 + $0xac0] sm:$0xff]  ;;  %v6376_v34 = vpack.c.bf16 %v1310_v25, %v1304_v24  ;;  %v1334_v54 = vld [vmem:[%s10867_s1 + $0xb70] sm:$0xff]  ;;  %vm780_vm11 = vcmask 355520  }
 0x2e2   : > { %v8367_v36 = vld [vmem:[#allocation3 + $0x28] sm:$0xf]  ;;  %6493 = vmatprep.subr.bf16.mxu1 %v6492_v22  ;;  %v6510_v22 = vpack.c.bf16 %v1300_v14, %v1294_v12  ;;  %v6512_v28 = vpack.c.bf16 %v1313_v19, %v1307_v18  ;;  %v1330_v56 = vld [vmem:[%s10867_s1 + $0xb50] sm:$0xff]  ;;  %v1352_v12 = vld [vmem:[%s10867_s1 + $0xc00] sm:$0xff] }
 0x2e3   : > { %1505 = vmatmul.mubr.f32.gmra.mrb[2].mxu0 %v8367_v36  ;;  %1736 = vmatmul.mubr.f32.gmra.mrb[2].mxu1 %v8367_v36  ;;  %v8383_v42 = vpop.permute.xlu0 %844  ;;  %v1346_v3 = vld [vmem:[%s10867_s1 + $0xbd0] sm:$0xff]  ;;  %v1365_v14 = vld [vmem:[%s10867_s1 + $0xc68] sm:$0xff] }
 0x2e4   : > { %6357 = vmatpush1.bf16.msra.mxu0 %v6356_v27  ;;  %6495 = vmatpush1.bf16.msra.mxu1 %v6494_v30  ;;  %855 = vst.msk [vmem:[#allocation3 + $0x40] sm:$0xf] %vm854_vm12, %v8383_v42  ;;  %v801_v44 = vpop.permute.xlu1 %800  ;;  %v1306_v27 = vld [vmem:[%s10867_s1 + $0xa90] sm:$0xff]  ;;  %v1317_v30 = vld [vmem:[%s10867_s1 + $0xae8] sm:$0xff]  ;;  %v6394_v18 = vpack.c.bf16 %v1371_v15, %v1365_v14  ;;  %vm942_vm12 = vcmask 60416   ;;  %v1008_v14 = vld [vmem:[%s10867_s1 + $0x140] sm:$0xff] }
 0x2e5   : > { %6359 = vmatprep.subr.bf16.mxu0 %v6358_v31  ;;  %807 = vst.msk [vmem:[#allocation3 + $0x10] sm:$0xff] %vm806_vm13, %v801_v44  ;;  %6497 = vmatprep.subr.bf16.mxu1 %v6496_v37  ;;  %v1323_v31 = vld [vmem:[%s10867_s1 + $0xb18] sm:$0xff]  ;;  %v6514_v38 = vpack.c.bf16 %v1312_v29, %v1306_v27  ;;  %v6516_v44 = vpack.c.bf16 %v1325_v33, %v1319_v32  ;;  %v1342_v4 = vld [vmem:[%s10867_s1 + $0xbb0] sm:$0xff]  ;;  %v1361_v24 = vld [vmem:[%s10867_s1 + $0xc48] sm:$0xff]  ;;  %vm882_vm13 = vcmask 453920  }
 0x2e6   : > { %v6378_v39 = vpack.c.bf16 %v1323_v31, %v1317_v30  ;;  %v6526_v11 = vpack.c.bf16 %v1348_v6, %v1342_v4  ;;  %v997_v4 = vld [vmem:[%s10867_s1 + $0xe8] sm:$0xff]  ;;  %v1014_v15 = vld [vmem:[%s10867_s1 + $0x170] sm:$0xff] }
 0x2e7   : > { %v761_v57 = vpop.permute.xlu0 %760 }
 0x2e8   : > { %6361 = vmatpush1.bf16.msra.mxu0 %v6360_v43  ;;  %6499 = vmatpush1.bf16.msra.mxu1 %v6498_v45  ;;  %767 = vst.msk [vmem:[#allocation3 + $0x38] sm:$0xf] %vm766_vm15, %v761_v57  ;;  %v903_v59 = vpop.permute.xlu1 %902  ;;  %v1318_v43 = vld [vmem:[%s10867_s1 + $0xaf0] sm:$0xff]  ;;  %v1324_v45 = vld [vmem:[%s10867_s1 + $0xb20] sm:$0xff]  ;;  %v6520_v57 = vpack.c.bf16 %v1337_v49, %v1331_v48  ;;  %vm896_vm15 = vcmask 617920   ;;  %v1367_v48 = vld [vmem:[%s10867_s1 + $0xc78] sm:$0xff] }
 0x2e9   : > { %6363 = vmatprep.subr.bf16.mxu0 %v6362_v46  ;;  %909 = vst.msk [vmem:[#allocation3 + $0x18] sm:$0xff] %vm908_vm0, %v903_v59  ;;  %6501 = vmatprep.subr.bf16.mxu1 %v6500_v50  ;;  %v1329_v46 = vld [vmem:[%s10867_s1 + $0xb48] sm:$0xff]  ;;  %v6380_v50 = vpack.c.bf16 %v1322_v41, %v1316_v40  ;;  %v6518_v52 = vpack.c.bf16 %v1324_v45, %v1318_v43  ;;  %vm910_vm0 = vcmask 781920   ;;  %v1354_v45 = vld [vmem:[%s10867_s1 + $0xc10] sm:$0xff]  ;;  %v7493_v49 = vmov 0.0  }
 0x2ea   : > { %v6382_v53 = vpack.c.bf16 %v1335_v47, %v1329_v46  ;;  %v1341_v59 = vld [vmem:[%s10867_s1 + $0xba8] sm:$0xff]  ;;  %v1360_v46 = vld [vmem:[%s10867_s1 + $0xc40] sm:$0xff] }
 0x2ec   : > { %6365 = vmatpush1.bf16.msra.mxu0 %v6364_v58  ;;  %6503 = vmatpush1.bf16.msra.mxu1 %v6502_v60  ;;  %v815_v8 = vpop.permute.xlu1 %814  ;;  %v1336_v58 = vld [vmem:[%s10867_s1 + $0xb80] sm:$0xff]  ;;  %v1347_v60 = vld [vmem:[%s10867_s1 + $0xbd8] sm:$0xff] }
 0x2ed   : > { %6367 = vmatprep.subr.bf16.mxu0 %v6366_v61  ;;  %821 = vst.msk [vmem:[#allocation3 + $0x10] sm:$0xff] %vm820_vm1, %v815_v8  ;;  %6505 = vmatprep.subr.bf16.mxu1 %v6504_v1  ;;  %v1343_v61 = vld [vmem:[%s10867_s1 + $0xbb8] sm:$0xff]  ;;  %v6522_v0 = vpack.c.bf16 %v1336_v58, %v1330_v56  ;;  %v6386_v1 = vpack.c.bf16 %v1347_v60, %v1341_v59  ;;  %vm924_vm1 = vcmask 945920   ;;  %v972_v59 = vld [vmem:[%s10867_s1 + $0x20] sm:$0xff]  ;;  %v978_v60 = vld [vmem:[%s10867_s1 + $0x50] sm:$0xff] }
 0x2ee   : > { %v6524_v5 = vpack.c.bf16 %v1349_v62, %v1343_v61  ;;  %v1359_v8 = vld [vmem:[%s10867_s1 + $0xc38] sm:$0xff]  ;;  %v985_v62 = vld [vmem:[%s10867_s1 + $0x88] sm:$0xff] }
 0x2ef   : > { %v979_v56 = vld [vmem:[%s10867_s1 + $0x58] sm:$0xff] }
 0x2f0   : > { %6369 = vmatpush1.bf16.msra.mxu0 %v6368_v7  ;;  %6507 = vmatpush1.bf16.msra.mxu1 %v6506_v9  ;;  %v917_v21 = vpop.permute.xlu1 %916  ;;  %v1353_v7 = vld [vmem:[%s10867_s1 + $0xc08] sm:$0xff]  ;;  %v6388_v9 = vpack.c.bf16 %v1346_v3, %v1340_v2  ;;  %v984_v2 = vld [vmem:[%s10867_s1 + $0x80] sm:$0xff]  ;;  %v990_v3 = vld [vmem:[%s10867_s1 + $0xb0] sm:$0xff] }
 0x2f1   : > { %6371 = vmatprep.subr.bf16.mxu0 %v6370_v10  ;;  %923 = vst.msk [vmem:[#allocation3 + $0x18] sm:$0xff] %vm922_vm2, %v917_v21  ;;  %6509 = vmatprep.subr.bf16.mxu1 %v6508_v13  ;;  %v6390_v35 = vpack.c.bf16 %v1359_v8, %v1353_v7  ;;  %v1358_v13 = vld [vmem:[%s10867_s1 + $0xc30] sm:$0xff]  ;;  %vm940_vm2 = vcmask 1044384   ;;  %v6544_v6 = vpack.c.bf16 %v990_v3, %v984_v2  ;;  %v996_v8 = vld [vmem:[%s10867_s1 + $0xe0] sm:$0xff] }
 0x2f2   : > { %v6392_v16 = vpack.c.bf16 %v1358_v13, %v1352_v12  ;;  %v1370_v21 = vld [vmem:[%s10867_s1 + $0xc90] sm:$0xf]  ;;  %v1092_v2 = vld [vmem:[%s10867_s1 + $0x3e0] sm:$0xff] }
 0x2f3   : > { %v1098_v3 = vld [vmem:[%s10867_s1 + $0x410] sm:$0xff] }
 0x2f4   : > { %6373 = vmatpush1.bf16.msra.mxu0 %v6372_v20  ;;  %6511 = vmatpush1.bf16.msra.mxu1 %v6510_v22  ;;  %v829_v37 = vpop.permute.xlu1 %828  ;;  %v1364_v20 = vld [vmem:[%s10867_s1 + $0xc60] sm:$0xff] }
 0x2f5   : > { %6375 = vmatprep.subr.bf16.mxu0 %v6374_v23  ;;  %835 = vst.msk [vmem:[#allocation3 + $0x10] sm:$0xff] %vm834_vm3, %v829_v37  ;;  %6513 = vmatprep.subr.bf16.mxu1 %v6512_v28  ;;  %v1355_v23 = vld [vmem:[%s10867_s1 + $0xc18] sm:$0xff]  ;;  %v6397_v25 = vpack.c.bf16 %v1370_v21, %v1364_v20  ;;  %vm956_vm3 = vcmask 224320   ;;  %v1020_v21 = vld [vmem:[%s10867_s1 + $0x1a0] sm:$0xff] }
 0x2f6   : > { %849 = vst.msk [vmem:[#allocation3 + $0x10] sm:$0xff] %vm848_vm4, %v8222_v17  ;;  %v1328_v17 = vld [vmem:[%s10867_s1 + $0xb40] sm:$0xff]  ;;  %v6528_v27 = vpack.c.bf16 %v1361_v24, %v1355_v23  ;;  %vm794_vm4 = vcmask 519520   ;;  %v1026_v23 = vld [vmem:[%s10867_s1 + $0x1d0] sm:$0xff]  ;;  %v1033_v24 = vld [vmem:[%s10867_s1 + $0x208] sm:$0xff] }
 0x2f7   : > { %v6384_v63 = vpack.c.bf16 %v1334_v54, %v1328_v17  ;;  %v1372_v17 = vld [vmem:[%s10867_s1 + $0xca0] sm:$0xf]  ;;  %v973_v54 = vld [vmem:[%s10867_s1 + $0x28] sm:$0xff] }
 0x2f8   : > { %6377 = vmatpush1.bf16.msra.mxu0 %v6376_v34  ;;  %6515 = vmatpush1.bf16.msra.mxu1 %v6514_v38  ;;  %v931_v51 = vpop.permute.xlu1 %930  ;;  %v6538_v58 = vpack.c.bf16 %v979_v56, %v973_v54  ;;  %v1081_v54 = vld [vmem:[%s10867_s1 + $0x388] sm:$0xff]  ;;  %v1087_v56 = vld [vmem:[%s10867_s1 + $0x3b8] sm:$0xff] }
 0x2f9   : > { %6379 = vmatprep.subr.bf16.mxu0 %v6378_v39  ;;  %937 = vst.msk [vmem:[#allocation3 + $0x18] sm:$0xff] %vm936_vm5, %v931_v51  ;;  %6517 = vmatprep.subr.bf16.mxu1 %v6516_v44  ;;  %vm808_vm5 = vcmask 683520  }
 0x2fa   : > { %939 = vst.msk [vmem:[#allocation3 + $0x20] sm:$0xff] %vm938_vm6, %v931_v51  ;;  %vm822_vm6 = vcmask 847520  }
 0x2fc   : > { %6381 = vmatpush1.bf16.msra.mxu0 %v6380_v50  ;;  %6519 = vmatpush1.bf16.msra.mxu1 %v6518_v52  ;;  %v891_v28 = vpop.permute.xlu1 %890  ;;  %v6530_v50 = vpack.c.bf16 %v1360_v46, %v1354_v45  ;;  %v1056_v45 = vld [vmem:[%s10867_s1 + $0x2c0] sm:$0xff]  ;;  %v1062_v46 = vld [vmem:[%s10867_s1 + $0x2f0] sm:$0xff] }
 0x2fd   : > { %6383 = vmatprep.subr.bf16.mxu0 %v6382_v53  ;;  %6521 = vmatprep.subr.bf16.mxu1 %v6520_v57  ;;  %v8578_v22 = vld [vmem:[#allocation3 + $0x10] sm:$0xff] }
 0x2fe   : > { %v1366_v53 = vld [vmem:[%s10867_s1 + $0xc70] sm:$0xff] }
 0x2ff   : > { %v6535_v57 = vpack.c.bf16 %v1372_v17, %v1366_v53  ;;  %v1068_v53 = vld [vmem:[%s10867_s1 + $0x320] sm:$0xff]  ;;  %v1074_v17 = vld [vmem:[%s10867_s1 + $0x350] sm:$0xff] }
 0x300   : > { %6385 = vmatpush1.bf16.msra.mxu0 %v6384_v63  ;;  %6523 = vmatpush1.bf16.msra.mxu1 %v6522_v0  ;;  %v8551_v10 = vld [vmem:[#allocation3 + $0x18] sm:$0xff]  ;;  %v6540_v0 = vpack.c.bf16 %v978_v60, %v972_v59  ;;  %v1080_v59 = vld [vmem:[%s10867_s1 + $0x380] sm:$0xff]  ;;  %v1086_v60 = vld [vmem:[%s10867_s1 + $0x3b0] sm:$0xff] }
 0x301   : > { %6387 = vmatprep.subr.bf16.mxu0 %v6386_v1  ;;  %1575 = vmatprep.mubr.f32.mxu0 %v8551_v10  ;;  %v991_v63 = vld [vmem:[%s10867_s1 + $0xb8] sm:$0xff] }
 0x302   : > { %6525 = vmatprep.subr.bf16.mxu1 %v6524_v5  ;;  %1806 = vmatprep.mubr.f32.mxu1 %v8551_v10  ;;  %v6542_v1 = vpack.c.bf16 %v991_v63, %v985_v62  ;;  %v1003_v5 = vld [vmem:[%s10867_s1 + $0x118] sm:$0xff]  ;;  %v1093_v62 = vld [vmem:[%s10867_s1 + $0x3e8] sm:$0xff] }
 0x303   : > { %v6546_v7 = vpack.c.bf16 %v1003_v5, %v997_v4  ;;  %v1099_v63 = vld [vmem:[%s10867_s1 + $0x418] sm:$0xff]  ;;  %v1105_v4 = vld [vmem:[%s10867_s1 + $0x448] sm:$0xff] }
 0x304   : > { %6389 = vmatpush1.bf16.msra.mxu0 %v6388_v9  ;;  %6527 = vmatpush1.bf16.msra.mxu1 %v6526_v11  ;;  %v1002_v9 = vld [vmem:[%s10867_s1 + $0x110] sm:$0xff]  ;;  %v1009_v11 = vld [vmem:[%s10867_s1 + $0x148] sm:$0xff]  ;;  %v1111_v5 = vld [vmem:[%s10867_s1 + $0x478] sm:$0xff] }
 0x305   : > { %6391 = vmatprep.subr.bf16.mxu0 %v6390_v35  ;;  %v1015_v35 = vld [vmem:[%s10867_s1 + $0x178] sm:$0xff]  ;;  %v6548_v12 = vpack.c.bf16 %v1002_v9, %v996_v8  ;;  %v1104_v8 = vld [vmem:[%s10867_s1 + $0x440] sm:$0xff]  ;;  %v1110_v9 = vld [vmem:[%s10867_s1 + $0x470] sm:$0xff] }
 0x306   : > { %v6550_v13 = vpack.c.bf16 %v1015_v35, %v1009_v11  ;;  %v1117_v11 = vld [vmem:[%s10867_s1 + $0x4a8] sm:$0xff]  ;;  %v1123_v35 = vld [vmem:[%s10867_s1 + $0x4d8] sm:$0xff] }
 0x307   : > { %1576 = vmatmul.mubr.f32.vlgmr.msra.gmra.mrb[0].mxu0 %v8578_v22  ;;  %1807 = vmatmul.mubr.f32.vlgmr.msra.gmra.mrb[0].mxu1 %v8578_v22 }
 0x308   : > { %6393 = vmatpush1.bf16.msra.mxu0 %v6392_v16  ;;  %v1021_v16 = vld [vmem:[%s10867_s1 + $0x1a8] sm:$0xff] }
 0x309   : > { %6396 = vmatprep.subr.msk.bf16.mxu0 %vm8568_vm9, %v6394_v18  ;;  %v1027_v18 = vld [vmem:[%s10867_s1 + $0x1d8] sm:$0xff] }
 0x30a   : > { %v6554_v20 = vpack.c.bf16 %v1027_v18, %v1021_v16  ;;  %v1129_v16 = vld [vmem:[%s10867_s1 + $0x508] sm:$0xff]  ;;  %v1135_v18 = vld [vmem:[%s10867_s1 + $0x538] sm:$0xff] }
 0x30c   : > { %6399 = vmatpush1.bf16.msk.msra.mxu0 %vm8568_vm9, %v6397_v25  ;;  %v1039_v25 = vld [vmem:[%s10867_s1 + $0x238] sm:$0xff] }
 0x30d   : > { %6529 = vmatprep.subr.bf16.mxu0 %v6528_v27  ;;  %v6556_v27 = vpack.c.bf16 %v1026_v23, %v1020_v21  ;;  %v1128_v21 = vld [vmem:[%s10867_s1 + $0x500] sm:$0xff]  ;;  %v1134_v23 = vld [vmem:[%s10867_s1 + $0x530] sm:$0xff] }
 0x31f   : > { %v863_v30 = vpop.permute.xlu0 %862 }
 0x320   : > { %v905_v29 = vpop.permute.xlu1 %904  ;;  %869 = vst.msk [vmem:[#allocation3 + $0x40] sm:$0xf] %vm868_vm10, %v863_v30  ;;  %vm852_vm10 = vcmask 1044448   ;;  %v1038_v30 = vld [vmem:[%s10867_s1 + $0x230] sm:$0xff] }
 0x323   : > { %v775_v32 = vpop.permute.xlu0 %774 }
 0x324   : > { %v919_v31 = vpop.permute.xlu1 %918  ;;  %781 = vst.msk [vmem:[#allocation3 + $0x38] sm:$0xf] %vm780_vm11, %v775_v32  ;;  %vm954_vm11 = vcmask 228416   ;;  %v1051_v32 = vld [vmem:[%s10867_s1 + $0x298] sm:$0xff] }
 0x327   : > { %v877_v34 = vpop.permute.xlu0 %876 }
 0x328   : > { %v933_v33 = vpop.permute.xlu1 %932  ;;  %883 = vst.msk [vmem:[#allocation3 + $0x40] sm:$0xf] %vm882_vm13, %v877_v34  ;;  %vm2259_vm13 = vcmask 261124  }
 0x329   : > { %943 = vst.msk [vmem:[#allocation3 + $0x48] sm:$0xf] %vm942_vm12, %v933_v33  ;;  %vm1408_vm12 = vcmask 228352  }
 0x32a   : > { %897 = vst.msk [vmem:[#allocation3 + $0x40] sm:$0xf] %vm896_vm15, %v891_v28  ;;  %v6558_v28 = vpack.c.bf16 %v1039_v25, %v1033_v24  ;;  %v1141_v24 = vld [vmem:[%s10867_s1 + $0x568] sm:$0xff]  ;;  %v1147_v25 = vld [vmem:[%s10867_s1 + $0x598] sm:$0xff]  ;;  %vm2261_vm15 = vcmask 261120  }
 0x32b   : > { %911 = vst.msk [vmem:[#allocation3 + $0x40] sm:$0xf] %vm910_vm0, %v905_v29  ;;  %v789_v38 = vpop.permute.xlu0 %788  ;;  %v1032_v29 = vld [vmem:[%s10867_s1 + $0x200] sm:$0xff]  ;;  %vm2363_vm0 = vcmask 523524  }
 0x32c   : > { %925 = vst.msk [vmem:[#allocation3 + $0x40] sm:$0xf] %vm924_vm1, %v919_v31  ;;  %v951_v37 = vpop.permute.xlu1 %950  ;;  %v1045_v31 = vld [vmem:[%s10867_s1 + $0x268] sm:$0xff]  ;;  %vm2463_vm1 = vcmask 785924  }
 0x32d   : > { %941 = vst.msk [vmem:[#allocation3 + $0x40] sm:$0xf] %vm940_vm2, %v933_v33  ;;  %v6560_v33 = vpack.c.bf16 %v1038_v30, %v1032_v29  ;;  %v6562_v34 = vpack.c.bf16 %v1051_v32, %v1045_v31  ;;  %v1140_v29 = vld [vmem:[%s10867_s1 + $0x560] sm:$0xff]  ;;  %v1146_v30 = vld [vmem:[%s10867_s1 + $0x590] sm:$0xff]  ;;  %v1153_v31 = vld [vmem:[%s10867_s1 + $0x5c8] sm:$0xff]  ;;  %vm2567_vm2 = vcmask 1048324  }
 0x32e   : > { %957 = vst.msk [vmem:[#allocation3 + $0x48] sm:$0xf] %vm956_vm3, %v951_v37  ;;  %v1044_v37 = vld [vmem:[%s10867_s1 + $0x260] sm:$0xff]  ;;  %v1159_v32 = vld [vmem:[%s10867_s1 + $0x5f8] sm:$0xff]  ;;  %vm2365_vm3 = vcmask 523520  }
 0x32f   : > { %795 = vst.msk [vmem:[#allocation3 + $0x38] sm:$0xf] %vm794_vm4, %v789_v38  ;;  %v803_v39 = vpop.permute.xlu0 %802  ;;  %v1050_v38 = vld [vmem:[%s10867_s1 + $0x290] sm:$0xff]  ;;  %vm2465_vm4 = vcmask 785920  }
 0x330   : > { %809 = vst.msk [vmem:[#allocation3 + $0x38] sm:$0xf] %vm808_vm5, %v803_v39  ;;  %v1057_v39 = vld [vmem:[%s10867_s1 + $0x2c8] sm:$0xff]  ;;  %vm2569_vm5 = vcmask 1048320  }
 0x333   : > { %v817_v40 = vpop.permute.xlu0 %816 }
 0x334   : > { %v8592_v41 = vld [vmem:[#allocation3 + $0x40] sm:$0xf]  ;;  %823 = vst.msk [vmem:[#allocation3 + $0x38] sm:$0xf] %vm822_vm6, %v817_v40  ;;  %v1063_v40 = vld [vmem:[%s10867_s1 + $0x2f8] sm:$0xff]  ;;  %vm3546_vm6 = vcmask 1046528  }
 0x335   : > { %1581 = vmatprep.mubr.f32.mxu0 %v8592_v41  ;;  %1812 = vmatprep.mubr.f32.mxu1 %v8592_v41  ;;  %v8639_v61 = vld [vmem:[#allocation3 + $0x48] sm:$0xf] }
 0x337   : > { %v831_v43 = vpop.permute.xlu0 %830 }
 0x338   : > { %837 = vst.msk [vmem:[#allocation3 + $0x38] sm:$0xf] %vm836_vm8, %v831_v43  ;;  %v6564_v43 = vpack.c.bf16 %v1050_v38, %v1044_v37  ;;  %v1152_v37 = vld [vmem:[%s10867_s1 + $0x5c0] sm:$0xff]  ;;  %v1158_v38 = vld [vmem:[%s10867_s1 + $0x5f0] sm:$0xff]  ;;  %vm3622_vm8 = vcmask 1045504  }
 0x339   : > { %853 = vst.msk [vmem:[#allocation3 + $0x38] sm:$0xf] %vm852_vm10, %v8383_v42  ;;  %v1373_v42 = vld [vmem:[%s10867_s1 + $0xca8] sm:$0xf]  ;;  %vm3444_vm10 = vcmask 785408  }
 0x33a   : > { %v6532_v52 = vpack.c.bf16 %v1373_v42, %v1367_v48  ;;  %v1069_v48 = vld [vmem:[%s10867_s1 + $0x328] sm:$0xff]  ;;  %v1075_v42 = vld [vmem:[%s10867_s1 + $0x358] sm:$0xff] }
 0x33b   : > { %v949_v44 = vpop.permute.xlu0 %948 }
 0x33c   : > { %955 = vst.msk [vmem:[#allocation3 + $0x20] sm:$0xff] %vm954_vm11, %v949_v44  ;;  %v6566_v44 = vpack.c.bf16 %v1063_v40, %v1057_v39  ;;  %v1165_v39 = vld [vmem:[%s10867_s1 + $0x628] sm:$0xff]  ;;  %v1171_v40 = vld [vmem:[%s10867_s1 + $0x658] sm:$0xff]  ;;  %vm3698_vm11 = vcmask 1044480  }
 0x340   : > { %v8603_v47 = vld [vmem:[#allocation3 + $0x38] sm:$0xf] }
 0x341   : > { %1582 = vmatmul.mubr.f32.gmra.mrb[2].mxu0 %v8603_v47  ;;  %1813 = vmatmul.mubr.f32.gmra.mrb[2].mxu1 %v8603_v47 }
 0x342   : > { %1652 = vmatprep.mubr.f32.mxu0 %v7493_v49 }
 0x343   : > { %v8614_v51 = vld [vmem:[#allocation3 + $0x20] sm:$0xff] }
 0x345   : > { %5362 = vmatmul.mubr.msk.f32.vlgmr.msra.gmra.mrb[0].mxu0 %vm1408_vm12, %v8614_v51 }
 0x346   : > { %6531 = vmatpush1.bf16.msra.mxu0 %v6530_v50  ;;  %1658 = vmatprep.mubr.f32.mxu0 %v7493_v49  ;;  %v6568_v50 = vpack.c.bf16 %v1062_v46, %v1056_v45  ;;  %v1164_v45 = vld [vmem:[%s10867_s1 + $0x620] sm:$0xff]  ;;  %v1170_v46 = vld [vmem:[%s10867_s1 + $0x650] sm:$0xff] }
 0x347   : > { %6534 = vmatprep.subr.msk.bf16.mxu0 %vm8568_vm9, %v6532_v52  ;;  %v6570_v52 = vpack.c.bf16 %v1075_v42, %v1069_v48  ;;  %v1177_v48 = vld [vmem:[%s10867_s1 + $0x688] sm:$0xff]  ;;  %v1183_v42 = vld [vmem:[%s10867_s1 + $0x6b8] sm:$0xff] }
 0x349   : > { %5363 = vmatmul.mubr.msk.f32.gmra.mrb[2].mxu0 %vm1408_vm12, %v8639_v61 }
 0x34a   : > { %6537 = vmatpush1.bf16.msk.msra.mxu0 %vm8568_vm9, %v6535_v57  ;;  %1883 = vmatprep.mubr.f32.mxu0 %v7493_v49  ;;  %v6572_v57 = vpack.c.bf16 %v1074_v17, %v1068_v53  ;;  %v1176_v53 = vld [vmem:[%s10867_s1 + $0x680] sm:$0xff]  ;;  %v1182_v17 = vld [vmem:[%s10867_s1 + $0x6b0] sm:$0xff] }
 0x34b   : > { %6539 = vmatprep.subr.bf16.mxu0 %v6538_v58  ;;  %v6574_v58 = vpack.c.bf16 %v1087_v56, %v1081_v54  ;;  %v1189_v54 = vld [vmem:[%s10867_s1 + $0x6e8] sm:$0xff]  ;;  %v1195_v56 = vld [vmem:[%s10867_s1 + $0x718] sm:$0xff] }
 0x34d   : > { %5366 = vmatmul.mubr.msk.f32.vlgmr.msra.gmra.mrb[4].mxu0 %vm1408_vm12, %v8614_v51 }
 0x34e   : > { %6541 = vmatpush1.bf16.msra.mxu0 %v6540_v0  ;;  %1889 = vmatprep.mubr.f32.mxu0 %v7493_v49  ;;  %v6576_v0 = vpack.c.bf16 %v1086_v60, %v1080_v59  ;;  %v6610_v59 = vpack.c.bf16 %v1195_v56, %v1189_v54  ;;  %v1188_v60 = vld [vmem:[%s10867_s1 + $0x6e0] sm:$0xff] }
 0x34f   : > { %6543 = vmatprep.subr.bf16.mxu0 %v6542_v1  ;;  %v6578_v1 = vpack.c.bf16 %v1099_v63, %v1093_v62  ;;  %v1194_v62 = vld [vmem:[%s10867_s1 + $0x710] sm:$0xff]  ;;  %v1201_v63 = vld [vmem:[%s10867_s1 + $0x748] sm:$0xff]  ;;  %v1272_v56 = vld [vmem:[%s10867_s1 + $0x980] sm:$0xff] }
 0x351   : > { %5367 = vmatmul.mubr.msk.f32.gmra.mrb[6].mxu0 %vm1408_vm12, %v8639_v61 }
 0x352   : > { %6545 = vmatpush1.bf16.msra.mxu0 %v6544_v6  ;;  %1960 = vmatprep.mubr.f32.mxu0 %v8173_v55  ;;  %v6552_v55 = vpack.c.bf16 %v1014_v15, %v1008_v14  ;;  %v6580_v6 = vpack.c.bf16 %v1098_v3, %v1092_v2  ;;  %v1116_v14 = vld [vmem:[%s10867_s1 + $0x4a0] sm:$0xff]  ;;  %v1122_v15 = vld [vmem:[%s10867_s1 + $0x4d0] sm:$0xff] }
 0x353   : > { %6547 = vmatprep.subr.bf16.mxu0 %v6546_v7  ;;  %v6582_v7 = vpack.c.bf16 %v1111_v5, %v1105_v4  ;;  %v1200_v2 = vld [vmem:[%s10867_s1 + $0x740] sm:$0xff]  ;;  %v1206_v3 = vld [vmem:[%s10867_s1 + $0x770] sm:$0xff]  ;;  %v1213_v4 = vld [vmem:[%s10867_s1 + $0x7a8] sm:$0xff] }
 0x356   : > { %6549 = vmatpush1.bf16.msra.mxu0 %v6548_v12  ;;  %v6584_v12 = vpack.c.bf16 %v1110_v9, %v1104_v8  ;;  %v1225_v8 = vld [vmem:[%s10867_s1 + $0x808] sm:$0xff]  ;;  %v1231_v9 = vld [vmem:[%s10867_s1 + $0x838] sm:$0xff] }
 0x357   : > { %6551 = vmatprep.subr.bf16.mxu0 %v6550_v13  ;;  %v6586_v13 = vpack.c.bf16 %v1123_v35, %v1117_v11  ;;  %v6622_v35 = vpack.c.bf16 %v1231_v9, %v1225_v8  ;;  %v1308_v9 = vld [vmem:[%s10867_s1 + $0xaa0] sm:$0xff] }
 0x35a   : > { %6553 = vmatpush1.bf16.msra.mxu0 %v6552_v55  ;;  %v6588_v55 = vpack.c.bf16 %v1122_v15, %v1116_v14  ;;  %v1237_v14 = vld [vmem:[%s10867_s1 + $0x868] sm:$0xff]  ;;  %v1243_v15 = vld [vmem:[%s10867_s1 + $0x898] sm:$0xff] }
 0x35b   : > { %6555 = vmatprep.subr.bf16.mxu0 %v6554_v20  ;;  %v6590_v20 = vpack.c.bf16 %v1135_v18, %v1129_v16  ;;  %v2151_v18 = vld [vmem:[%s10869_s3] sm:$0xff] }
 0x35e   : > { %6557 = vmatpush1.bf16.msra.mxu0 %v6556_v27  ;;  %v6592_v27 = vpack.c.bf16 %v1134_v23, %v1128_v21  ;;  %v1236_v21 = vld [vmem:[%s10867_s1 + $0x860] sm:$0xff]  ;;  %v1242_v23 = vld [vmem:[%s10867_s1 + $0x890] sm:$0xff] }
 0x35f   : > { %6559 = vmatprep.subr.bf16.mxu0 %v6558_v28  ;;  %v6594_v28 = vpack.c.bf16 %v1147_v25, %v1141_v24  ;;  %v1249_v25 = vld [vmem:[%s10867_s1 + $0x8c8] sm:$0xff] }
 0x362   : > { %6561 = vmatpush1.bf16.msra.mxu0 %v6560_v33  ;;  %v6596_v33 = vpack.c.bf16 %v1146_v30, %v1140_v29  ;;  %v2153_v29 = vld [vmem:[%s10869_s3 + $0x10] sm:$0xff]  ;;  %v2154_v30 = vld [vmem:[%s10869_s3 + $0x18] sm:$0xff] }
 0x363   : > { %6563 = vmatprep.subr.bf16.mxu0 %v6562_v34  ;;  %v6598_v34 = vpack.c.bf16 %v1159_v32, %v1153_v31  ;;  %v1248_v32 = vld [vmem:[%s10867_s1 + $0x8c0] sm:$0xff] }
 0x366   : > { %6565 = vmatpush1.bf16.msra.mxu0 %v6564_v43  ;;  %v6600_v43 = vpack.c.bf16 %v1158_v38, %v1152_v37  ;;  %v1261_v37 = vld [vmem:[%s10867_s1 + $0x928] sm:$0xff]  ;;  %v1267_v38 = vld [vmem:[%s10867_s1 + $0x958] sm:$0xff] }
 0x367   : > { %6567 = vmatprep.subr.bf16.mxu0 %v6566_v44  ;;  %v6602_v44 = vpack.c.bf16 %v1171_v40, %v1165_v39  ;;  %v2155_v40 = vld [vmem:[%s10869_s3 + $0x20] sm:$0xff] }
 0x36a   : > { %6569 = vmatpush1.bf16.msra.mxu0 %v6568_v50  ;;  %v6604_v50 = vpack.c.bf16 %v1170_v46, %v1164_v45  ;;  %v1260_v45 = vld [vmem:[%s10867_s1 + $0x920] sm:$0xff]  ;;  %v1266_v46 = vld [vmem:[%s10867_s1 + $0x950] sm:$0xff] }
 0x36b   : > { %6571 = vmatprep.subr.bf16.mxu0 %v6570_v52  ;;  %v6606_v52 = vpack.c.bf16 %v1183_v42, %v1177_v48  ;;  %v1273_v42 = vld [vmem:[%s10867_s1 + $0x988] sm:$0xff] }
 0x36e   : > { %6573 = vmatpush1.bf16.msra.mxu0 %v6572_v57  ;;  %v7396_v57 = vld [vmem:[#allocation3] sm:$0xff] }
 0x36f   : > { %6575 = vmatprep.subr.bf16.mxu0 %v6574_v58  ;;  %v6608_v58 = vpack.c.bf16 %v1182_v17, %v1176_v53  ;;  %v2157_v53 = vld [vmem:[%s10869_s3 + $0x30] sm:$0xff]  ;;  %v2158_v17 = vld [vmem:[%s10869_s3 + $0x38] sm:$0xff] }
 0x372   : > { %6577 = vmatpush1.bf16.msra.mxu0 %v6576_v0  ;;  %v6612_v0 = vpack.c.bf16 %v1194_v62, %v1188_v60  ;;  %v1291_v60 = vld [vmem:[%s10867_s1 + $0xa18] sm:$0xff] }
 0x373   : > { %6579 = vmatprep.subr.bf16.mxu0 %v6578_v1 }
 0x376   : > { %6581 = vmatpush1.bf16.msra.mxu0 %v6580_v6  ;;  %v1212_v6 = vld [vmem:[%s10867_s1 + $0x7a0] sm:$0xff] }
 0x377   : > { %6583 = vmatprep.subr.bf16.mxu0 %v6582_v7  ;;  %v1218_v7 = vld [vmem:[%s10867_s1 + $0x7d0] sm:$0xff] }
 0x378   : > { %v6620_v11 = vpack.c.bf16 %v1218_v7, %v1212_v6  ;;  %v1315_v6 = vld [vmem:[%s10867_s1 + $0xad8] sm:$0xff] }
 0x37a   : > { %6585 = vmatpush1.bf16.msra.mxu0 %v6584_v12  ;;  %v1224_v12 = vld [vmem:[%s10867_s1 + $0x800] sm:$0xff] }
 0x37b   : > { %6587 = vmatprep.subr.bf16.mxu0 %v6586_v13  ;;  %v1230_v13 = vld [vmem:[%s10867_s1 + $0x830] sm:$0xff] }
 0x37c   : > { %v6624_v16 = vpack.c.bf16 %v1230_v13, %v1224_v12  ;;  %v1327_v12 = vld [vmem:[%s10867_s1 + $0xb38] sm:$0xff] }
 0x37e   : > { %6589 = vmatpush1.bf16.msra.mxu0 %v6588_v55  ;;  %v2152_v55 = vld [vmem:[%s10869_s3 + $0x8] sm:$0xff] }
 0x37f   : > { %6591 = vmatprep.subr.bf16.mxu0 %v6590_v20  ;;  %v6626_v20 = vpack.c.bf16 %v1243_v15, %v1237_v14  ;;  %v8925_v24 = vpack.c.bf16 %v2152_v55, %v2151_v18  ;;  %v1320_v15 = vld [vmem:[%s10867_s1 + $0xb00] sm:$0xff]  ;;  %v1333_v18 = vld [vmem:[%s10867_s1 + $0xb68] sm:$0xff]  ;;  %v1339_v55 = vld [vmem:[%s10867_s1 + $0xb98] sm:$0xff] }
 0x381   : > { %6677 = vmatprep.subr.bf16.mxu1 %v8925_v24 }
 0x382   : > { %6593 = vmatpush1.bf16.msra.mxu0 %v6592_v27  ;;  %v1255_v27 = vld [vmem:[%s10867_s1 + $0x8f8] sm:$0xff]  ;;  %6679 = vmatpush3.bf16.msra.mxu1 %v8925_v24 }
 0x383   : > { %6595 = vmatprep.subr.bf16.mxu0 %v6594_v28  ;;  %v6628_v28 = vpack.c.bf16 %v1242_v23, %v1236_v21  ;;  %v6630_v31 = vpack.c.bf16 %v1255_v27, %v1249_v25  ;;  %v6658_v21 = vpack.c.bf16 %v1339_v55, %v1333_v18  ;;  %v1332_v23 = vld [vmem:[%s10867_s1 + $0xb60] sm:$0xff]  ;;  %v1338_v25 = vld [vmem:[%s10867_s1 + $0xb90] sm:$0xff]  ;;  %v1345_v27 = vld [vmem:[%s10867_s1 + $0xbc8] sm:$0xff] }
 0x386   : > { %6597 = vmatpush1.bf16.msra.mxu0 %v6596_v33  ;;  %v1254_v33 = vld [vmem:[%s10867_s1 + $0x8f0] sm:$0xff] }
 0x387   : > { %6599 = vmatprep.subr.bf16.mxu0 %v6598_v34  ;;  %v8947_v34 = vpack.c.bf16 %v2154_v30, %v2153_v29  ;;  %v6632_v39 = vpack.c.bf16 %v1254_v33, %v1248_v32  ;;  %v6660_v29 = vpack.c.bf16 %v1338_v25, %v1332_v23  ;;  %v1350_v32 = vld [vmem:[%s10867_s1 + $0xbf0] sm:$0xff]  ;;  %v1357_v33 = vld [vmem:[%s10867_s1 + $0xc28] sm:$0xff] }
 0x389   : > { %6681 = vmatprep.subr.bf16.mxu1 %v8947_v34 }
 0x38a   : > { %6601 = vmatpush1.bf16.msra.mxu0 %v6600_v43  ;;  %6683 = vmatpush3.bf16.msra.mxu1 %v8947_v34  ;;  %v2156_v43 = vld [vmem:[%s10869_s3 + $0x28] sm:$0xff] }
 0x38b   : > { %6603 = vmatprep.subr.bf16.mxu0 %v6602_v44  ;;  %v6634_v44 = vpack.c.bf16 %v1267_v38, %v1261_v37  ;;  %v8969_v48 = vpack.c.bf16 %v2156_v43, %v2155_v40  ;;  %v1363_v37 = vld [vmem:[%s10867_s1 + $0xc58] sm:$0xff]  ;;  %v1356_v40 = vld [vmem:[%s10867_s1 + $0xc20] sm:$0xff]  ;;  %v1362_v43 = vld [vmem:[%s10867_s1 + $0xc50] sm:$0xff] }
 0x38d   : > { %1961 = vmatmul.mubr.f32.vlgmr.msra.gmra.mrb[8].mxu0 %v7396_v57  ;;  %6685 = vmatprep.subr.bf16.mxu1 %v8969_v48  ;;  %v1278_v57 = vld [vmem:[%s10867_s1 + $0x9b0] sm:$0xff] }
 0x38e   : > { %1966 = vmatprep.mubr.f32.mxu0 %v8350_v26  ;;  %6605 = vmatpush1.bf16.msra.mxu0 %v6604_v50  ;;  %v1207_v26 = vld [vmem:[%s10867_s1 + $0x778] sm:$0xff]  ;;  %v6640_v62 = vpack.c.bf16 %v1278_v57, %v1272_v56 }
 0x38f   : > { %6607 = vmatprep.subr.bf16.mxu0 %v6606_v52  ;;  %v6614_v1 = vpack.c.bf16 %v1207_v26, %v1201_v63  ;;  %v1279_v50 = vld [vmem:[%s10867_s1 + $0x9b8] sm:$0xff]  ;;  %v6636_v52 = vpack.c.bf16 %v1266_v46, %v1260_v45  ;;  %6687 = vmatpush3.bf16.msra.mxu1 %v8969_v48  ;;  %v1284_v26 = vld [vmem:[%s10867_s1 + $0x9e0] sm:$0xff]  ;;  %v6668_v46 = vpack.c.bf16 %v1362_v43, %v1356_v40 }
 0x390   : > { %v6638_v54 = vpack.c.bf16 %v1279_v50, %v1273_v42  ;;  %v1375_v45 = vld [vmem:[%s10867_s1 + $0xcb8] sm:$0xf]  ;;  %v1368_v50 = vld [vmem:[%s10867_s1 + $0xc80] sm:$0xff] }
 0x391   : > { %1967 = vmatmul.mubr.f32.gmra.mrb[10].mxu0 %v8367_v36  ;;  %v1219_v36 = vld [vmem:[%s10867_s1 + $0x7d8] sm:$0xff] }
 0x392   : > { %6609 = vmatpush1.bf16.msra.mxu0 %v6608_v58  ;;  %2037 = vmatprep.mubr.f32.mxu0 %v8551_v10  ;;  %v6616_v10 = vpack.c.bf16 %v1206_v3, %v1200_v2  ;;  %v6618_v5 = vpack.c.bf16 %v1219_v36, %v1213_v4  ;;  %v8991_v58 = vpack.c.bf16 %v2158_v17, %v2157_v53  ;;  %v1303_v2 = vld [vmem:[%s10867_s1 + $0xa78] sm:$0xff]  ;;  %v1296_v36 = vld [vmem:[%s10867_s1 + $0xa40] sm:$0xff] }
 0x393   : > { %6611 = vmatprep.subr.bf16.mxu0 %v6610_v59  ;;  %v1285_v59 = vld [vmem:[%s10867_s1 + $0x9e8] sm:$0xff] }
 0x394   : > { %6689 = vmatprep.subr.bf16.mxu1 %v8991_v58  ;;  %v6642_v63 = vpack.c.bf16 %v1291_v60, %v1285_v59 }
 0x395   : > { %6691 = vmatpush3.bf16.msra.mxu1 %v8991_v58 }
 0x396   : > { %6613 = vmatpush1.bf16.msra.mxu0 %v6612_v0  ;;  %v1290_v0 = vld [vmem:[%s10867_s1 + $0xa10] sm:$0xff]  ;;  %6693 = vmatprep.subr.bf16.mxu1 %v8925_v24 }
 0x397   : > { %6615 = vmatprep.subr.bf16.mxu0 %v6614_v1  ;;  %v1297_v1 = vld [vmem:[%s10867_s1 + $0xa48] sm:$0xff]  ;;  %v6644_v3 = vpack.c.bf16 %v1290_v0, %v1284_v26 }
 0x398   : > { %v6646_v4 = vpack.c.bf16 %v1303_v2, %v1297_v1 }
 0x39a   : > { %6617 = vmatpush1.bf16.msra.mxu0 %v6616_v10  ;;  %v1302_v10 = vld [vmem:[%s10867_s1 + $0xa70] sm:$0xff] }
 0x39b   : > { %6619 = vmatprep.subr.bf16.mxu0 %v6618_v5  ;;  %v1309_v5 = vld [vmem:[%s10867_s1 + $0xaa8] sm:$0xff]  ;;  %v6648_v7 = vpack.c.bf16 %v1302_v10, %v1296_v36 }
 0x39c   : > { %v6650_v8 = vpack.c.bf16 %v1315_v6, %v1309_v5 }
 0x39e   : > { %6621 = vmatpush1.bf16.msra.mxu0 %v6620_v11  ;;  %v1314_v11 = vld [vmem:[%s10867_s1 + $0xad0] sm:$0xff] }
 0x39f   : > { %6623 = vmatprep.subr.bf16.mxu0 %v6622_v35  ;;  %v1321_v35 = vld [vmem:[%s10867_s1 + $0xb08] sm:$0xff]  ;;  %v6652_v13 = vpack.c.bf16 %v1314_v11, %v1308_v9 }
 0x3a0   : > { %v6654_v14 = vpack.c.bf16 %v1327_v12, %v1321_v35 }
 0x3a2   : > { %6625 = vmatpush1.bf16.msra.mxu0 %v6624_v16  ;;  %v1326_v16 = vld [vmem:[%s10867_s1 + $0xb30] sm:$0xff] }
 0x3a3   : > { %6627 = vmatprep.subr.bf16.mxu0 %v6626_v20  ;;  %v6656_v20 = vpack.c.bf16 %v1326_v16, %v1320_v15 }
 0x3a6   : > { %6629 = vmatpush1.bf16.msra.mxu0 %v6628_v28  ;;  %v1351_v28 = vld [vmem:[%s10867_s1 + $0xbf8] sm:$0xff] }
 0x3a7   : > { %6631 = vmatprep.subr.bf16.mxu0 %v6630_v31  ;;  %v6662_v30 = vpack.c.bf16 %v1351_v28, %v1345_v27  ;;  %v1344_v31 = vld [vmem:[%s10867_s1 + $0xbc0] sm:$0xff] }
 0x3a8   : > { %v6664_v38 = vpack.c.bf16 %v1350_v32, %v1344_v31 }
 0x3aa   : > { %6633 = vmatpush1.bf16.msra.mxu0 %v6632_v39  ;;  %v6666_v39 = vpack.c.bf16 %v1363_v37, %v1357_v33 }
 0x3ab   : > { %6635 = vmatprep.subr.bf16.mxu0 %v6634_v44  ;;  %v1369_v44 = vld [vmem:[%s10867_s1 + $0xc88] sm:$0xff] }
 0x3ac   : > { %v6670_v42 = vpack.c.bf16 %v1375_v45, %v1369_v44 }
 0x3ae   : > { %6637 = vmatpush1.bf16.msra.mxu0 %v6636_v52  ;;  %v1374_v52 = vld [vmem:[%s10867_s1 + $0xcb0] sm:$0xf] }
 0x3af   : > { %6639 = vmatprep.subr.bf16.mxu0 %v6638_v54  ;;  %v6673_v53 = vpack.c.bf16 %v1374_v52, %v1368_v50 }
 0x3b2   : > { %6641 = vmatpush1.bf16.msra.mxu0 %v6640_v62 }
 0x3b3   : > { %6643 = vmatprep.subr.bf16.mxu0 %v6642_v63 }
 0x3b6   : > { %6645 = vmatpush1.bf16.msra.mxu0 %v6644_v3 }
 0x3b7   : > { %6647 = vmatprep.subr.bf16.mxu0 %v6646_v4 }
 0x3ba   : > { %6649 = vmatpush1.bf16.msra.mxu0 %v6648_v7 }
 0x3bb   : > { %6651 = vmatprep.subr.bf16.mxu0 %v6650_v8 }
 0x3be   : > { %6653 = vmatpush1.bf16.msra.mxu0 %v6652_v13 }
 0x3bf   : > { %6655 = vmatprep.subr.bf16.mxu0 %v6654_v14 }
 0x3c2   : > { %6657 = vmatpush1.bf16.msra.mxu0 %v6656_v20 }
 0x3c3   : > { %6659 = vmatprep.subr.bf16.mxu0 %v6658_v21 }
 0x3c6   : > { %6661 = vmatpush1.bf16.msra.mxu0 %v6660_v29 }
 0x3c7   : > { %6663 = vmatprep.subr.bf16.mxu0 %v6662_v30 }
 0x3ca   : > { %6665 = vmatpush1.bf16.msra.mxu0 %v6664_v38 }
 0x3cb   : > { %6667 = vmatprep.subr.bf16.mxu0 %v6666_v39 }
 0x3cd   : > { %2038 = vmatmul.mubr.f32.vlgmr.msra.gmra.mrb[8].mxu0 %v8578_v22 }
 0x3ce   : > { %2043 = vmatprep.mubr.f32.mxu0 %v8592_v41  ;;  %6669 = vmatpush1.bf16.msra.mxu0 %v6668_v46  ;;  %v1378_v41 = vlaneseq }
 0x3cf   : > { %6672 = vmatprep.subr.msk.bf16.mxu0 %vm8568_vm9, %v6670_v42 }
 0x3d1   : > { %2044 = vmatmul.mubr.f32.gmra.mrb[10].mxu0 %v8603_v47  ;;  %v9114_v47 = vshrl.u32 %v1378_v41, 7 }
 0x3d2   : > { %6675 = vmatpush1.bf16.msk.msra.mxu0 %vm8568_vm9, %v6673_v53  ;;  %2114 = vmatprep.mubr.f32.mxu0 %v7493_v49  ;;  %vm2168_vm9 = vcmask 523264  }
 0x3d3   : > { %6821 = vmatprep.subr.bf16.mxu0 %v8925_v24  ;;  %v9132_v59 = vsub.s32 2, %v9114_v47  ;;  %v1392_v60 = vsub.s32 3, %v9114_v47  ;;  %v1396_v39 = vsub.s32 4, %v9114_v47  ;;  %v1400_v40 = vsub.s32 5, %v9114_v47 }
 0x3d5   : > { %5370 = vmatmul.mubr.msk.f32.vlgmr.msra.gmra.mrb[8].mxu0 %vm1408_vm12, %v8614_v51  ;;  %v9120_v51 = vsub.s32 1, %v9114_v47 }
 0x3d6   : > { %2120 = vmatprep.mubr.f32.mxu0 %v7493_v49  ;;  %6823 = vmatpush3.bf16.msra.mxu0 %v8925_v24  ;;  %v9117_v49 = vsub.s32 0, %v9114_v47 }
 0x3d7   : > { %6825 = vmatprep.subr.bf16.mxu0 %v8947_v34 }
 0x3d9   : > { %5371 = vmatmul.mubr.msk.f32.gmra.mrb[10].mxu0 %vm1408_vm12, %v8639_v61  ;;  %v9125_v61 = vld [vmem:[%s10868_s2] sm:$0x3f] }
 0x3da   : > { %v1808_v22 = vpop.f32.mrb[0].mxu1  ;;  %6827 = vmatpush3.bf16.msra.mxu0 %v8947_v34  ;;  %v1381_v56 = vrot.slane %v9125_v61, %v9117_v49  ;;  %v1385_v57 = vrot.slane %v9125_v61, %v9120_v51  ;;  %v1389_v1 = vrot.slane %v9125_v61, %v9132_v59  ;;  %v1393_v3 = vrot.slane %v9125_v61, %v1392_v60 }
 0x3db   : > { %v1810_v19 = vpop.f32.mrb[1].mxu1  ;;  %6829 = vmatprep.subr.bf16.mxu0 %v8969_v48  ;;  %v1397_v43 = vrot.slane %v9125_v61, %v1396_v39  ;;  %v1401_v44 = vrot.slane %v9125_v61, %v1400_v40 }
 0x3dc   : > { %v7288_v7 = vadd.f32 %v1808_v22, %v1389_v1  ;;  %v7290_v9 = vadd.f32 %v1810_v19, %v1393_v3 }
 0x3de   : > { %6831 = vmatpush3.bf16.msra.mxu0 %v8969_v48 }
 0x3df   : > { %6833 = vmatprep.subr.bf16.mxu0 %v8991_v58 }
 0x3e2   : > { %6835 = vmatpush3.bf16.msra.mxu0 %v8991_v58 }
 0x3e3   : > { %6853 = vmatprep.subr.bf16.mxu0 %v8925_v24 }
 0x414   : > { %v1814_v17 = vpop.f32.mrb[2].mxu1 }
 0x415   : > { %v1816_v54 = vpop.f32.mrb[3].mxu1  ;;  %v7292_v15 = vadd.f32 %v1814_v17, %v1389_v1 }
 0x416   : > { %v7294_v18 = vadd.f32 %v1816_v54, %v1393_v3  ;;  %v9252_v3 = vld [vmem:[%s10870_s4] ss:$0 sm:$0xff] }
 0x418   : > { %v1654_v62 = vpop.f32.mrb[0].mxu0 }
 0x419   : > { %v7284_v63 = vadd.f32 %v1654_v62, %v1381_v56  ;;  %v1656_v26 = vpop.f32.mrb[1].mxu0 }
 0x41a   : > { %v7285_v0 = vadd.f32 %v1656_v26, %v1385_v57 }
 0x41b   : > { %v2127_v2 = vmax.f32 %v7284_v63, 0.0 }
 0x41c   : > { %v2128_v4 = vmax.f32 %v7285_v0, 0.0  ;;  %v1660_v36 = vpop.f32.mrb[2].mxu0 }
 0x41d   : > { %v7286_v10 = vadd.f32 %v1660_v36, %v1381_v56  ;;  %v1662_v5 = vpop.f32.mrb[3].mxu0  ;;  %2267 = vrot.lane.b32.xlu0 %v2127_v2, %s10902_s19  ;;  %6015 = vmatprep.mubr.msk.f32.mxu1 %vm2168_vm9, %v2127_v2 }
 0x41e   : > { %v7287_v6 = vadd.f32 %v1662_v5, %v1385_v57 }
 0x41f   : > { %v2133_v8 = vmax.f32 %v7286_v10, 0.0 }
 0x420   : > { %v2134_v11 = vmax.f32 %v7287_v6, 0.0  ;;  %v1885_v35 = vpop.f32.mrb[4].mxu0 }
 0x421   : > { %2145 = vst [vmem:[#allocation4 + $0x30] sm:$0xf] %v2133_v8  ;;  %v9140_v12 = vadd.f32 %v7288_v7, %v1885_v35  ;;  %v1887_v13 = vpop.f32.mrb[5].mxu0  ;;  %2471 = vrot.lane.b32.xlu0 %v2128_v4, %s10902_s19 }
 0x422   : > { %2146 = vst [vmem:[#allocation4 + $0x38] sm:$0xf] %v2134_v11  ;;  %v9143_v14 = vadd.f32 %v7290_v9, %v1887_v13 }
 0x423   : > { %v2129_v16 = vmax.f32 %v9140_v12, 0.0 }
 0x424   : > { %v2130_v55 = vmax.f32 %v9143_v14, 0.0  ;;  %v1891_v20 = vpop.f32.mrb[6].mxu0 }
 0x425   : > { %v7293_v21 = vadd.f32 %v7292_v15, %v1891_v20  ;;  %v1893_v23 = vpop.f32.mrb[7].mxu0  ;;  %2669 = vrot.lane.b32.xlu0 %v2129_v16, %s10902_s19 }
 0x426   : > { %v7295_v25 = vadd.f32 %v7294_v18, %v1893_v23 }
 0x427   : > { %v2135_v27 = vmax.f32 %v7293_v21, 0.0 }
 0x428   : > { %v2136_v28 = vmax.f32 %v7295_v25, 0.0  ;;  %v2264_v29 = vld [vmem:[#allocation4 + $0x30] sm:$0xf] }
 0x429   : > { %v2161_v30 = vld [vmem:[#allocation4 + $0x30] sm:$0xf]  ;;  %2147 = vst [vmem:[#allocation4 + $0x40] sm:$0xf] %v2135_v27  ;;  %2269 = vrot.lane.b32.xlu1 %v2264_v29, %s10902_s19  ;;  %2869 = vrot.lane.b32.xlu0 %v2130_v55, %s10902_s19  ;;  %v2468_v31 = vld [vmem:[#allocation4 + $0x38] sm:$0xf] }
 0x42a   : > { %6016 = vmatmul.mubr.msk.f32.vlgmr.msra.gmra.mrb[4].mxu1 %vm2168_vm9, %v2161_v30  ;;  %2148 = vst [vmem:[#allocation4 + $0x48] sm:$0xf] %v2136_v28  ;;  %v2368_v53 = vld [vmem:[#allocation4 + $0x38] sm:$0xf] }
 0x42b   : > { %6695 = vmatpush3.bf16.msra.mxu1 %v8925_v24 }
 0x42c   : > { %6697 = vmatprep.subr.bf16.mxu1 %v8947_v34 }
 0x42d   : > { %2473 = vrot.lane.b32.xlu1 %v2468_v31, %s10902_s19 }
 0x42f   : > { %6699 = vmatpush3.bf16.msra.mxu1 %v8947_v34 }
 0x430   : > { %6701 = vmatprep.subr.bf16.mxu1 %v8969_v48  ;;  %v2666_v32 = vld [vmem:[#allocation4 + $0x40] sm:$0xf] }
 0x431   : > { %2671 = vrot.lane.b32.xlu1 %v2666_v32, %s10902_s19  ;;  %v2866_v33 = vld [vmem:[#allocation4 + $0x48] sm:$0xf]  ;;  %v2572_v63 = vld [vmem:[#allocation4 + $0x40] sm:$0xf] }
 0x432   : > { %v2768_v1 = vld [vmem:[#allocation4 + $0x48] sm:$0xf] }
 0x433   : > { %6703 = vmatpush3.bf16.msra.mxu1 %v8969_v48 }
 0x434   : > { %6705 = vmatprep.subr.bf16.mxu1 %v8991_v58 }
 0x435   : > { %2871 = vrot.lane.b32.xlu1 %v2866_v33, %s10902_s19 }
 0x437   : > { %6707 = vmatpush3.bf16.msra.mxu1 %v8991_v58 }
 0x438   : > { %6709 = vmatprep.subr.bf16.mxu1 %v8925_v24 }
 0x48f   : > { %v2268_v37 = vpop.permute.xlu0 %2267 }
 0x490   : > { %6034 = vmatprep.mubr.msk.f32.mxu1 %vm2168_vm9, %v2268_v37 }
 0x493   : > { %v2472_v22 = vpop.permute.xlu0 %2471 }
 0x497   : > { %v2670_v26 = vpop.permute.xlu0 %2669 }
 0x49b   : > { %v2270_v38 = vpop.permute.xlu1 %2269  ;;  %v2870_v2 = vpop.permute.xlu0 %2869 }
 0x49c   : > { %6035 = vmatmul.mubr.msk.f32.vlgmr.msra.gmra.mrb[6].mxu1 %vm2168_vm9, %v2270_v38 }
 0x49d   : > { %6711 = vmatpush3.bf16.msra.mxu1 %v8925_v24  ;;  %6053 = vmatprep.mubr.msk.f32.mxu1 %vm2168_vm9, %v2128_v4 }
 0x49e   : > { %6713 = vmatprep.subr.bf16.mxu1 %v8947_v34 }
 0x49f   : > { %v2474_v60 = vpop.permute.xlu1 %2473 }
 0x4a1   : > { %6715 = vmatpush3.bf16.msra.mxu1 %v8947_v34 }
 0x4a2   : > { %6717 = vmatprep.subr.bf16.mxu1 %v8969_v48 }
 0x4a3   : > { %v2672_v0 = vpop.permute.xlu1 %2671 }
 0x4a5   : > { %6719 = vmatpush3.bf16.msra.mxu1 %v8969_v48 }
 0x4a6   : > { %6721 = vmatprep.subr.bf16.mxu1 %v8991_v58 }
 0x4a7   : > { %v2872_v4 = vpop.permute.xlu1 %2871 }
 0x4a8   : > { %v2116_v45 = vpop.f32.mrb[8].mxu0 }
 0x4a9   : > { %v9179_v46 = vadd.f32 %v2116_v45, %v1397_v43  ;;  %v2118_v42 = vpop.f32.mrb[9].mxu0  ;;  %6723 = vmatpush3.bf16.msra.mxu1 %v8991_v58 }
 0x4aa   : > { %v9182_v50 = vadd.f32 %v2118_v42, %v1401_v44  ;;  %6725 = vmatprep.subr.bf16.mxu1 %v8925_v24 }
 0x4ab   : > { %v2131_v52 = vmax.f32 %v9179_v46, 0.0 }
 0x4ac   : > { %v2132_v19 = vmax.f32 %v9182_v50, 0.0  ;;  %v2122_v41 = vpop.f32.mrb[10].mxu0  ;;  %6054 = vmatmul.mubr.msk.f32.vlgmr.msra.gmra.mrb[8].mxu1 %vm2168_vm9, %v2368_v53 }
 0x4ad   : > { %v7298_v47 = vadd.f32 %v2122_v41, %v1397_v43  ;;  %v2124_v61 = vpop.f32.mrb[11].mxu0  ;;  %6727 = vmatpush3.bf16.msra.mxu1 %v8925_v24  ;;  %6072 = vmatprep.mubr.msk.f32.mxu1 %vm2168_vm9, %v2472_v22 }
 0x4ae   : > { %v7299_v17 = vadd.f32 %v2124_v61, %v1401_v44  ;;  %6729 = vmatprep.subr.bf16.mxu1 %v8947_v34  ;;  %3065 = vrot.lane.b32.xlu0 %v2131_v52, %s10902_s19 }
 0x4af   : > { %v2137_v54 = vmax.f32 %v7298_v47, 0.0 }
 0x4b0   : > { %v2138_v56 = vmax.f32 %v7299_v17, 0.0 }
 0x4b1   : > { %2149 = vst [vmem:[#allocation4 + $0x50] sm:$0xf] %v2137_v54  ;;  %6731 = vmatpush3.bf16.msra.mxu1 %v8947_v34 }
 0x4b2   : > { %2150 = vst [vmem:[#allocation4 + $0x58] sm:$0xf] %v2138_v56  ;;  %6733 = vmatprep.subr.bf16.mxu1 %v8969_v48  ;;  %3265 = vrot.lane.b32.xlu0 %v2132_v19, %s10902_s19 }
 0x4b5   : > { %6735 = vmatpush3.bf16.msra.mxu1 %v8969_v48 }
 0x4b6   : > { %6737 = vmatprep.subr.bf16.mxu1 %v8991_v58 }
 0x4b8   : > { %v3062_v57 = vld [vmem:[#allocation4 + $0x50] sm:$0xf] }
 0x4b9   : > { %3067 = vrot.lane.b32.xlu1 %v3062_v57, %s10902_s19  ;;  %6739 = vmatpush3.bf16.msra.mxu1 %v8991_v58  ;;  %v3262_v62 = vld [vmem:[#allocation4 + $0x58] sm:$0xf]  ;;  %v2968_v12 = vld [vmem:[#allocation4 + $0x50] sm:$0xf] }
 0x4ba   : > { %6741 = vmatprep.subr.bf16.mxu1 %v8925_v24  ;;  %v3164_v13 = vld [vmem:[#allocation4 + $0x58] sm:$0xf] }
 0x4bc   : > { %6073 = vmatmul.mubr.msk.f32.vlgmr.msra.gmra.mrb[10].mxu1 %vm2168_vm9, %v2474_v60 }
 0x4bd   : > { %3267 = vrot.lane.b32.xlu1 %v3262_v62, %s10902_s19  ;;  %6743 = vmatpush3.bf16.msra.mxu1 %v8925_v24 }
 0x4be   : > { %6091 = vmatprep.mubr.msk.f32.mxu1 %vm2168_vm9, %v2129_v16  ;;  %6745 = vmatprep.subr.bf16.mxu1 %v8947_v34 }
 0x4c1   : > { %6747 = vmatpush3.bf16.msra.mxu1 %v8947_v34 }
 0x4c2   : > { %6749 = vmatprep.subr.bf16.mxu1 %v8969_v48 }
 0x4c5   : > { %6751 = vmatpush3.bf16.msra.mxu1 %v8969_v48 }
 0x4c6   : > { %6753 = vmatprep.subr.bf16.mxu1 %v8991_v58 }
 0x4c9   : > { %6755 = vmatpush3.bf16.msra.mxu1 %v8991_v58 }
 0x4ca   : > { %6757 = vmatprep.subr.bf16.mxu1 %v8925_v24 }
 0x4cc   : > { %6092 = vmatmul.mubr.msk.f32.vlgmr.msra.gmra.mrb[12].mxu1 %vm2168_vm9, %v2572_v63 }
 0x4cd   : > { %6759 = vmatpush3.bf16.msra.mxu1 %v8925_v24  ;;  %6110 = vmatprep.mubr.msk.f32.mxu1 %vm2168_vm9, %v2670_v26 }
 0x4ce   : > { %6761 = vmatprep.subr.bf16.mxu1 %v8947_v34 }
 0x4d1   : > { %6763 = vmatpush3.bf16.msra.mxu1 %v8947_v34 }
 0x4d2   : > { %6765 = vmatprep.subr.bf16.mxu1 %v8969_v48 }
 0x4d5   : > { %6767 = vmatpush3.bf16.msra.mxu1 %v8969_v48 }
 0x4d6   : > { %6769 = vmatprep.subr.bf16.mxu1 %v8991_v58 }
 0x4d9   : > { %6771 = vmatpush3.bf16.msra.mxu1 %v8991_v58 }
 0x4da   : > { %6773 = vmatprep.subr.bf16.mxu1 %v8925_v24 }
 0x4dc   : > { %6111 = vmatmul.mubr.msk.f32.vlgmr.msra.gmra.mrb[14].mxu1 %vm2168_vm9, %v2672_v0 }
 0x4dd   : > { %6775 = vmatpush3.bf16.msra.mxu1 %v8925_v24  ;;  %6129 = vmatprep.mubr.msk.f32.mxu1 %vm2168_vm9, %v2130_v55 }
 0x4de   : > { %6777 = vmatprep.subr.bf16.mxu1 %v8947_v34 }
 0x4e1   : > { %6779 = vmatpush3.bf16.msra.mxu1 %v8947_v34 }
 0x4e2   : > { %6781 = vmatprep.subr.bf16.mxu1 %v8969_v48 }
 0x4e5   : > { %6783 = vmatpush3.bf16.msra.mxu1 %v8969_v48 }
 0x4e6   : > { %6785 = vmatprep.subr.bf16.mxu1 %v8991_v58 }
 0x4e9   : > { %6787 = vmatpush3.bf16.msra.mxu1 %v8991_v58 }
 0x4ea   : > { %6789 = vmatprep.subr.bf16.mxu1 %v8925_v24 }
 0x4ec   : > { %6130 = vmatmul.mubr.msk.f32.vlgmr.msra.gmra.mrb[16].mxu1 %vm2168_vm9, %v2768_v1 }
 0x4ed   : > { %6791 = vmatpush3.bf16.msra.mxu1 %v8925_v24  ;;  %6148 = vmatprep.mubr.msk.f32.mxu1 %vm2168_vm9, %v2870_v2 }
 0x4ee   : > { %6793 = vmatprep.subr.bf16.mxu1 %v8947_v34 }
 0x4f1   : > { %6795 = vmatpush3.bf16.msra.mxu1 %v8947_v34 }
 0x4f2   : > { %6797 = vmatprep.subr.bf16.mxu1 %v8969_v48 }
 0x4f5   : > { %6799 = vmatpush3.bf16.msra.mxu1 %v8969_v48 }
 0x4f6   : > { %6801 = vmatprep.subr.bf16.mxu1 %v8991_v58 }
 0x4f9   : > { %6803 = vmatpush3.bf16.msra.mxu1 %v8991_v58 }
 0x4fa   : > { %6805 = vmatprep.subr.bf16.mxu1 %v8925_v24 }
 0x4fc   : > { %6149 = vmatmul.mubr.msk.f32.vlgmr.msra.gmra.mrb[18].mxu1 %vm2168_vm9, %v2872_v4 }
 0x4fd   : > { %v6017_v36 = vpop.f32.mrb[4].mxu1  ;;  %6807 = vmatpush3.bf16.msra.mxu1 %v8925_v24  ;;  %6167 = vmatprep.mubr.msk.f32.mxu1 %vm2168_vm9, %v2131_v52 }
 0x4fe   : > { %v2247_v10 = vadd.f32 %v6017_v36, %v9252_v3  ;;  %v2241_v5 = vpop.f32.mrb[5].mxu1  ;;  %6809 = vmatprep.subr.bf16.mxu1 %v8947_v34 }
 0x4ff   : > { %v2242_v6 = vadd.f32 %v9252_v3, %v2241_v5 }
 0x500   : > { %v2251_v7 = vmax.f32 %v2247_v10, 0.0 }
 0x501   : > { %v2250_v8 = vmax.f32 %v2242_v6, 0.0  ;;  %6811 = vmatpush3.bf16.msra.mxu1 %v8947_v34 }
 0x502   : > { %v2255_v9 = vrot.slane %v2251_v7, 4  ;;  %6813 = vmatprep.subr.bf16.mxu1 %v8969_v48 }
 0x503   : > { %v2254_v11 = vrot.slane %v2250_v8, 4 }
 0x505   : > { %2260 = vst.msk [vmem:[#allocation5 + $0x8] sm:$0xf0] %vm2259_vm13, %v2254_v11  ;;  %v2256_v35 = vsel %vm1415_vm7, %v2254_v11, %v2255_v9  ;;  %6815 = vmatpush3.bf16.msra.mxu1 %v8969_v48 }
 0x506   : > { %2262 = vst.msk [vmem:[#allocation5 + $0x30] sm:$0xff] %vm2261_vm15, %v2256_v35  ;;  %6817 = vmatprep.subr.bf16.mxu1 %v8991_v58 }
 0x509   : > { %6819 = vmatpush3.bf16.msra.mxu1 %v8991_v58 }
 0x50a   : > { %6837 = vmatprep.subr.bf16.mxu1 %v8925_v24 }
 0x50c   : > { %6168 = vmatmul.mubr.msk.f32.vlgmr.msra.gmra.mrb[20].mxu1 %vm2168_vm9, %v2968_v12 }
 0x50d   : > { %6839 = vmatpush3.bf16.msra.mxu1 %v8925_v24  ;;  %6205 = vmatprep.mubr.msk.f32.mxu1 %vm2168_vm9, %v2132_v19 }
 0x50e   : > { %6841 = vmatprep.subr.bf16.mxu1 %v8947_v34 }
 0x511   : > { %6843 = vmatpush3.bf16.msra.mxu1 %v8947_v34 }
 0x512   : > { %6845 = vmatprep.subr.bf16.mxu1 %v8969_v48 }
 0x515   : > { %6847 = vmatpush3.bf16.msra.mxu1 %v8969_v48 }
 0x516   : > { %6849 = vmatprep.subr.bf16.mxu1 %v8991_v58 }
 0x519   : > { %6851 = vmatpush3.bf16.msra.mxu1 %v8991_v58 }
 0x51c   : > { %6206 = vmatmul.mubr.msk.f32.vlgmr.msra.gmra.mrb[22].mxu1 %vm2168_vm9, %v3164_v13 }
 0x520   : > { %v3066_v14 = vpop.permute.xlu0 %3065 }
 0x521   : > { %6186 = vmatprep.mubr.msk.f32.mxu0 %vm2168_vm9, %v3066_v14 }
 0x524   : > { %v3266_v16 = vpop.permute.xlu0 %3265 }
 0x52b   : > { %v3068_v15 = vpop.permute.xlu1 %3067 }
 0x52c   : > { %6187 = vmatmul.mubr.msk.f32.vlgmr.msra.gmra.mrb[12].mxu0 %vm2168_vm9, %v3068_v15 }
 0x52d   : > { %6855 = vmatpush3.bf16.msra.mxu0 %v8925_v24  ;;  %6224 = vmatprep.mubr.msk.f32.mxu0 %vm2168_vm9, %v3266_v16 }
 0x52e   : > { %6857 = vmatprep.subr.bf16.mxu0 %v8947_v34 }
 0x52f   : > { %v3268_v18 = vpop.permute.xlu1 %3267 }
 0x531   : > { %6859 = vmatpush3.bf16.msra.mxu0 %v8947_v34 }
 0x532   : > { %6861 = vmatprep.subr.bf16.mxu0 %v8969_v48 }
 0x535   : > { %6863 = vmatpush3.bf16.msra.mxu0 %v8969_v48 }
 0x536   : > { %6865 = vmatprep.subr.bf16.mxu0 %v8991_v58 }
 0x539   : > { %6867 = vmatpush3.bf16.msra.mxu0 %v8991_v58 }
 0x53c   : > { %6225 = vmatmul.mubr.msk.f32.vlgmr.msra.gmra.mrb[14].mxu0 %vm2168_vm9, %v3268_v18 }
 0x56f   : > { %v6036_v55 = vpop.f32.mrb[6].mxu1 }
 0x570   : > { %v2347_v24 = vadd.f32 %v6036_v55, %v9252_v3  ;;  %v2341_v20 = vpop.f32.mrb[7].mxu1 }
 0x571   : > { %v2342_v21 = vadd.f32 %v9252_v3, %v2341_v20 }
 0x572   : > { %v2351_v23 = vmax.f32 %v2347_v24, 0.0 }
 0x573   : > { %v2350_v25 = vmax.f32 %v2342_v21, 0.0 }
 0x574   : > { %v2355_v34 = vrot.slane %v2351_v23, 4 }
 0x575   : > { %v2354_v27 = vrot.slane %v2350_v25, 4 }
 0x577   : > { %2357 = vrot.lane.b32.xlu0 %v2354_v27, %s10893_s14  ;;  %v9298_v48 = vsel %vm1415_vm7, %v2354_v27, %v2355_v34 }
 0x57f   : > { %v6055_v28 = vpop.f32.mrb[8].mxu1 }
 0x580   : > { %v2447_v58 = vadd.f32 %v6055_v28, %v9252_v3  ;;  %v2441_v29 = vpop.f32.mrb[9].mxu1 }
 0x581   : > { %v2442_v30 = vadd.f32 %v9252_v3, %v2441_v29 }
 0x582   : > { %v2451_v31 = vmax.f32 %v2447_v58, 0.0 }
 0x583   : > { %v2450_v32 = vmax.f32 %v2442_v30, 0.0 }
 0x584   : > { %v2455_v33 = vrot.slane %v2451_v31, 4 }
 0x585   : > { %v2454_v37 = vrot.slane %v2450_v32, 4 }
 0x587   : > { %2457 = vrot.lane.b32.xlu1 %v2454_v37, %s10902_s19  ;;  %v9304_v38 = vsel %vm1415_vm7, %v2454_v37, %v2455_v33 }
 0x58f   : > { %v6074_v39 = vpop.f32.mrb[10].mxu1 }
 0x590   : > { %v2551_v40 = vadd.f32 %v6074_v39, %v9252_v3  ;;  %v2545_v43 = vpop.f32.mrb[11].mxu1 }
 0x591   : > { %v2546_v44 = vadd.f32 %v9252_v3, %v2545_v43 }
 0x592   : > { %v2555_v45 = vmax.f32 %v2551_v40, 0.0 }
 0x593   : > { %v2554_v46 = vmax.f32 %v2546_v44, 0.0 }
 0x594   : > { %v2559_v42 = vrot.slane %v2555_v45, 4 }
 0x595   : > { %v2558_v50 = vrot.slane %v2554_v46, 4 }
 0x597   : > { %2561 = vrot.lane.b32.xlu0 %v2558_v50, %s10903_s16  ;;  %v9310_v52 = vsel %vm1415_vm7, %v2558_v50, %v2559_v42  ;;  %v3917_v50 = vld [vmem:[%s10871_s5 + $0x180] sm:$0xff] }
 0x59f   : > { %v6093_v53 = vpop.f32.mrb[12].mxu1 }
 0x5a0   : > { %v2651_v22 = vadd.f32 %v6093_v53, %v9252_v3  ;;  %v2645_v19 = vpop.f32.mrb[13].mxu1  ;;  %v3918_v53 = vld [vmem:[%s10871_s5 + $0x188] sm:$0xff] }
 0x5a1   : > { %v2646_v41 = vadd.f32 %v9252_v3, %v2645_v19  ;;  %v6900_v19 = vpack.c.bf16 %v3918_v53, %v3917_v50  ;;  %v3913_v50 = vld [vmem:[%s10871_s5 + $0x160] sm:$0xff]  ;;  %v3914_v53 = vld [vmem:[%s10871_s5 + $0x168] sm:$0xff] }
 0x5a2   : > { %v2655_v47 = vmax.f32 %v2651_v22, 0.0  ;;  %v3901_v22 = vld [vmem:[%s10871_s5 + $0x100] sm:$0xff] }
 0x5a3   : > { %v2654_v61 = vmax.f32 %v2646_v41, 0.0  ;;  %v3902_v41 = vld [vmem:[%s10871_s5 + $0x108] sm:$0xff]  ;;  %6901 = vmatprep.subr.bf16.mxu0 %v6900_v19  ;;  %v3931_v19 = vld [vmem:[%s10871_s5 + $0x1f0] sm:$0xff] }
 0x5a4   : > { %v2659_v17 = vrot.slane %v2655_v47, 4  ;;  %v6902_v47 = vpack.c.bf16 %v3902_v41, %v3901_v22  ;;  %v3932_v41 = vld [vmem:[%s10871_s5 + $0x1f8] sm:$0xff] }
 0x5a5   : > { %v2658_v54 = vrot.slane %v2654_v61, 4 }
 0x5a6   : > { %6903 = vmatpush3.bf16.msra.mxu0 %v6902_v47  ;;  %v6926_v47 = vpack.c.bf16 %v3914_v53, %v3913_v50 }
 0x5a7   : > { %2663 = vst.msk [vmem:[#allocation5 + $0x10] sm:$0xf0] %vm2259_vm13, %v2658_v54  ;;  %v2660_v56 = vsel %vm1415_vm7, %v2658_v54, %v2659_v17  ;;  %v3919_v17 = vld [vmem:[%s10871_s5 + $0x190] sm:$0xff]  ;;  %v3920_v54 = vld [vmem:[%s10871_s5 + $0x198] sm:$0xff] }
 0x5a8   : > { %2664 = vst.msk [vmem:[#allocation5 + $0x38] sm:$0xff] %vm2261_vm15, %v2660_v56  ;;  %v3903_v56 = vld [vmem:[%s10871_s5 + $0x110] sm:$0xff] }
 0x5af   : > { %v6112_v57 = vpop.f32.mrb[14].mxu1 }
 0x5b0   : > { %v2749_v60 = vadd.f32 %v6112_v57, %v9252_v3  ;;  %v2743_v62 = vpop.f32.mrb[15].mxu1 }
 0x5b1   : > { %v2744_v63 = vadd.f32 %v9252_v3, %v2743_v62  ;;  %v6904_v62 = vpack.c.bf16 %v3920_v54, %v3919_v17  ;;  %v3915_v17 = vld [vmem:[%s10871_s5 + $0x170] sm:$0xff]  ;;  %v3916_v54 = vld [vmem:[%s10871_s5 + $0x178] sm:$0xff] }
 0x5b2   : > { %v2753_v26 = vmax.f32 %v2749_v60, 0.0 }
 0x5b3   : > { %v2752_v0 = vmax.f32 %v2744_v63, 0.0  ;;  %v3921_v63 = vld [vmem:[%s10871_s5 + $0x1a0] sm:$0xff]  ;;  %6905 = vmatprep.subr.bf16.mxu0 %v6904_v62 }
 0x5b4   : > { %v2757_v1 = vrot.slane %v2753_v26, 4  ;;  %v3922_v26 = vld [vmem:[%s10871_s5 + $0x1a8] sm:$0xff] }
 0x5b5   : > { %v2756_v2 = vrot.slane %v2752_v0, 4 }
 0x5b7   : > { %2759 = vrot.lane.b32.xlu1 %v2756_v2, %s10893_s14  ;;  %v9321_v4 = vsel %vm1415_vm7, %v2756_v2, %v2757_v1  ;;  %v6908_v2 = vpack.c.bf16 %v3922_v26, %v3921_v63  ;;  %v3869_v63 = vld [vmem:[%s10871_s5] sm:$0xff]  ;;  %v3870_v26 = vld [vmem:[%s10871_s5 + $0x8] sm:$0xff] }
 0x5bf   : > { %v6131_v36 = vpop.f32.mrb[16].mxu1 }
 0x5c0   : > { %v2847_v10 = vadd.f32 %v6131_v36, %v9252_v3  ;;  %v2841_v5 = vpop.f32.mrb[17].mxu1  ;;  %v3905_v36 = vld [vmem:[%s10871_s5 + $0x120] sm:$0xff] }
 0x5c1   : > { %v2842_v6 = vadd.f32 %v9252_v3, %v2841_v5  ;;  %v3923_v5 = vld [vmem:[%s10871_s5 + $0x1b0] sm:$0xff] }
 0x5c2   : > { %v2851_v7 = vmax.f32 %v2847_v10, 0.0  ;;  %v3906_v10 = vld [vmem:[%s10871_s5 + $0x128] sm:$0xff] }
 0x5c3   : > { %v2850_v8 = vmax.f32 %v2842_v6, 0.0 }
 0x5c4   : > { %v2855_v9 = vrot.slane %v2851_v7, 4  ;;  %v3924_v7 = vld [vmem:[%s10871_s5 + $0x1b8] sm:$0xff] }
 0x5c5   : > { %v2854_v11 = vrot.slane %v2850_v8, 4 }
 0x5c7   : > { %2857 = vrot.lane.b32.xlu0 %v2854_v11, %s10902_s19  ;;  %v9327_v35 = vsel %vm1415_vm7, %v2854_v11, %v2855_v9  ;;  %v6910_v9 = vpack.c.bf16 %v3906_v10, %v3905_v36  ;;  %v3871_v10 = vld [vmem:[%s10871_s5 + $0x10] sm:$0xff] }
 0x5cf   : > { %v6150_v12 = vpop.f32.mrb[18].mxu1 }
 0x5d0   : > { %v2949_v13 = vadd.f32 %v6150_v12, %v9252_v3  ;;  %v2943_v14 = vpop.f32.mrb[19].mxu1  ;;  %v6912_v12 = vpack.c.bf16 %v3924_v7, %v3923_v5  ;;  %v3872_v5 = vld [vmem:[%s10871_s5 + $0x18] sm:$0xff]  ;;  %v3890_v7 = vld [vmem:[%s10871_s5 + $0xa8] sm:$0xff] }
 0x5d1   : > { %v2944_v15 = vadd.f32 %v9252_v3, %v2943_v14  ;;  %v3908_v14 = vld [vmem:[%s10871_s5 + $0x138] sm:$0xff] }
 0x5d2   : > { %v2953_v16 = vmax.f32 %v2949_v13, 0.0  ;;  %v3907_v13 = vld [vmem:[%s10871_s5 + $0x130] sm:$0xff] }
 0x5d3   : > { %v2952_v18 = vmax.f32 %v2944_v15, 0.0 }
 0x5d4   : > { %v2957_v55 = vrot.slane %v2953_v16, 4 }
 0x5d5   : > { %v2956_v24 = vrot.slane %v2952_v18, 4 }
 0x5d7   : > { %v9332_v20 = vsel %vm1415_vm7, %v2956_v24, %v2957_v55 }
 0x5df   : > { %v6169_v21 = vpop.f32.mrb[20].mxu1 }
 0x5e0   : > { %v3047_v23 = vadd.f32 %v6169_v21, %v9252_v3  ;;  %v3041_v25 = vpop.f32.mrb[21].mxu1 }
 0x5e1   : > { %v3042_v34 = vadd.f32 %v9252_v3, %v3041_v25  ;;  %v3925_v25 = vld [vmem:[%s10871_s5 + $0x1c0] sm:$0xff] }
 0x5e2   : > { %v3051_v27 = vmax.f32 %v3047_v23, 0.0 }
 0x5e3   : > { %v3050_v28 = vmax.f32 %v3042_v34, 0.0  ;;  %v3926_v34 = vld [vmem:[%s10871_s5 + $0x1c8] sm:$0xff] }
 0x5e4   : > { %v3055_v58 = vrot.slane %v3051_v27, 4  ;;  %v3909_v27 = vld [vmem:[%s10871_s5 + $0x140] sm:$0xff] }
 0x5e5   : > { %v3054_v29 = vrot.slane %v3050_v28, 4 }
 0x5e7   : > { %3059 = vst.msk [vmem:[#allocation5 + $0x18] sm:$0xf0] %vm2259_vm13, %v3054_v29  ;;  %v3056_v30 = vsel %vm1415_vm7, %v3054_v29, %v3055_v58  ;;  %v6916_v58 = vpack.c.bf16 %v3926_v34, %v3925_v25  ;;  %v3910_v29 = vld [vmem:[%s10871_s5 + $0x148] sm:$0xff]  ;;  %v3877_v25 = vld [vmem:[%s10871_s5 + $0x40] sm:$0xff] }
 0x5e8   : > { %3060 = vst.msk [vmem:[#allocation5 + $0x40] sm:$0xff] %vm2261_vm15, %v3056_v30  ;;  %v3928_v30 = vld [vmem:[%s10871_s5 + $0x1d8] sm:$0xff]  ;;  %v3878_v34 = vld [vmem:[%s10871_s5 + $0x48] sm:$0xff] }
 0x5e9   : > { %v2358_v31 = vpop.permute.xlu0 %2357 }
 0x5ea   : > { %2364 = vst.msk [vmem:[#allocation5 + $0x8] sm:$0xf0] %vm2363_vm0, %v2358_v31 }
 0x5ef   : > { %v6207_v32 = vpop.f32.mrb[22].mxu1 }
 0x5f0   : > { %v3243_v33 = vadd.f32 %v6207_v32, %v9252_v3  ;;  %v3237_v37 = vpop.f32.mrb[23].mxu1  ;;  %v6918_v32 = vpack.c.bf16 %v3910_v29, %v3909_v27  ;;  %v6886_v27 = vpack.c.bf16 %v3878_v34, %v3877_v25 }
 0x5f1   : > { %v3238_v39 = vadd.f32 %v9252_v3, %v3237_v37  ;;  %v3911_v37 = vld [vmem:[%s10871_s5 + $0x150] sm:$0xff] }
 0x5f2   : > { %v3247_v40 = vmax.f32 %v3243_v33, 0.0 }
 0x5f3   : > { %v3246_v43 = vmax.f32 %v3238_v39, 0.0  ;;  %v3912_v39 = vld [vmem:[%s10871_s5 + $0x158] sm:$0xff] }
 0x5f4   : > { %v3251_v44 = vrot.slane %v3247_v40, 4  ;;  %v3929_v40 = vld [vmem:[%s10871_s5 + $0x1e0] sm:$0xff] }
 0x5f5   : > { %v3250_v45 = vrot.slane %v3246_v43, 4 }
 0x5f7   : > { %3253 = vrot.lane.b32.xlu1 %v3250_v45, %s10902_s19  ;;  %v3252_v46 = vsel %vm1415_vm7, %v3250_v45, %v3251_v44  ;;  %v3930_v44 = vld [vmem:[%s10871_s5 + $0x1e8] sm:$0xff] }
 0x5f9   : > { %v2458_v42 = vpop.permute.xlu1 %2457 }
 0x5fa   : > { %2464 = vst.msk [vmem:[#allocation5 + $0x8] sm:$0xf0] %vm2463_vm1, %v2458_v42  ;;  %v6924_v42 = vpack.c.bf16 %v3930_v44, %v3929_v40  ;;  %v3895_v40 = vld [vmem:[%s10871_s5 + $0xd0] sm:$0xff] }
 0x5fb   : > { %2959 = vrot.lane.b32.xlu1 %v2956_v24, %s10903_s16 }
 0x5ff   : > { %v6188_v61 = vpop.f32.mrb[12].mxu0  ;;  %2359 = vrot.lane.b32.xlu1 %v9298_v48, %s10893_s14  ;;  %v3904_v48 = vld [vmem:[%s10871_s5 + $0x118] sm:$0xff] }
 0x600   : > { %v3145_v57 = vadd.f32 %v6188_v61, %v9252_v3  ;;  %v3139_v60 = vpop.f32.mrb[13].mxu0  ;;  %v6906_v1 = vpack.c.bf16 %v3904_v48, %v3903_v56  ;;  %v6928_v61 = vpack.c.bf16 %v3932_v41, %v3931_v19  ;;  %v6930_v56 = vpack.c.bf16 %v3916_v54, %v3915_v17  ;;  %v3886_v48 = vld [vmem:[%s10871_s5 + $0x88] sm:$0xff]  ;;  %v3880_v19 = vld [vmem:[%s10871_s5 + $0x58] sm:$0xff] }
 0x601   : > { %v3140_v0 = vadd.f32 %v9252_v3, %v3139_v60  ;;  %v3982_v60 = vld [vmem:[%s10871_s5 + $0x388] sm:$0xff] }
 0x602   : > { %v3149_v6 = vmax.f32 %v3145_v57, 0.0  ;;  %6907 = vmatpush3.bf16.msra.mxu0 %v6906_v1  ;;  %v3981_v57 = vld [vmem:[%s10871_s5 + $0x380] sm:$0xff]  ;;  %v3888_v1 = vld [vmem:[%s10871_s5 + $0x98] sm:$0xff]  ;;  %v3898_v17 = vld [vmem:[%s10871_s5 + $0xe8] sm:$0xff] }
 0x603   : > { %v3148_v8 = vmax.f32 %v3140_v0, 0.0  ;;  %2563 = vrot.lane.b32.xlu1 %v9310_v52, %s10903_s16  ;;  %6909 = vmatprep.subr.bf16.mxu0 %v6908_v2  ;;  %v6914_v52 = vpack.c.bf16 %v3908_v14, %v3907_v13  ;;  %v6964_v62 = vpack.c.bf16 %v3982_v60, %v3981_v57  ;;  %v3887_v0 = vld [vmem:[%s10871_s5 + $0x90] sm:$0xff]  ;;  %v6870_v2 = vpack.c.bf16 %v3870_v26, %v3869_v63  ;;  %v3892_v14 = vld [vmem:[%s10871_s5 + $0xb8] sm:$0xff]  ;;  %v3882_v57 = vld [vmem:[%s10871_s5 + $0x68] sm:$0xff] }
 0x604   : > { %v3153_v11 = vrot.slane %v3149_v6, 4  ;;  %v6872_v36 = vpack.c.bf16 %v3888_v1, %v3887_v0  ;;  %v3889_v6 = vld [vmem:[%s10871_s5 + $0xa0] sm:$0xff]  ;;  %v3891_v13 = vld [vmem:[%s10871_s5 + $0xb0] sm:$0xff] }
 0x605   : > { %v3152_v15 = vrot.slane %v3148_v8, 4  ;;  %v6874_v8 = vpack.c.bf16 %v3872_v5, %v3871_v10  ;;  %v3965_v60 = vld [vmem:[%s10871_s5 + $0x300] sm:$0xff]  ;;  %v3899_v63 = vld [vmem:[%s10871_s5 + $0xf0] sm:$0xff] }
 0x606   : > { %6911 = vmatpush3.bf16.msra.mxu0 %v6910_v9  ;;  %v6876_v9 = vpack.c.bf16 %v3890_v7, %v3889_v6  ;;  %v3967_v5 = vld [vmem:[%s10871_s5 + $0x310] sm:$0xff]  ;;  %v3968_v6 = vld [vmem:[%s10871_s5 + $0x318] sm:$0xff]  ;;  %v3985_v7 = vld [vmem:[%s10871_s5 + $0x3a0] sm:$0xff] }
 0x607   : > { %3155 = vrot.lane.b32.xlu0 %v3152_v15, %s10893_s14  ;;  %v3154_v16 = vsel %vm1415_vm7, %v3152_v15, %v3153_v11  ;;  %6913 = vmatprep.subr.bf16.mxu0 %v6912_v12  ;;  %v3873_v11 = vld [vmem:[%s10871_s5 + $0x20] sm:$0xff]  ;;  %v3874_v12 = vld [vmem:[%s10871_s5 + $0x28] sm:$0xff] }
 0x608   : > { %3157 = vrot.lane.b32.xlu1 %v3154_v16, %s10893_s14  ;;  %v6878_v15 = vpack.c.bf16 %v3874_v12, %v3873_v11  ;;  %v6880_v16 = vpack.c.bf16 %v3892_v14, %v3891_v13  ;;  %v3884_v13 = vld [vmem:[%s10871_s5 + $0x78] sm:$0xff]  ;;  %v6970_v14 = vpack.c.bf16 %v3968_v6, %v3967_v5  ;;  %v4029_v6 = vld [vmem:[%s10871_s5 + $0x500] sm:$0xff] }
 0x609   : > { %v2562_v18 = vpop.permute.xlu0 %2561 }
 0x60a   : > { %2568 = vst.msk [vmem:[#allocation5 + $0x8] sm:$0xf0] %vm2567_vm2, %v2562_v18  ;;  %6915 = vmatpush3.bf16.msra.mxu0 %v6914_v52  ;;  %v3875_v52 = vld [vmem:[%s10871_s5 + $0x30] sm:$0xff]  ;;  %v3876_v18 = vld [vmem:[%s10871_s5 + $0x38] sm:$0xff] }
 0x60b   : > { %6917 = vmatprep.subr.bf16.mxu0 %v6916_v58 }
 0x60c   : > { %3255 = vrot.lane.b32.xlu1 %v3252_v46, %s10902_s19  ;;  %v6922_v46 = vpack.c.bf16 %v3912_v39, %v3911_v37 }
 0x60e   : > { %6919 = vmatpush3.bf16.msra.mxu0 %v6918_v32 }
 0x60f   : > { %v6226_v55 = vpop.f32.mrb[14].mxu0 }
 0x610   : > { %v3345_v24 = vadd.f32 %v6226_v55, %v9252_v3  ;;  %v3339_v21 = vpop.f32.mrb[15].mxu0  ;;  %v3893_v55 = vld [vmem:[%s10871_s5 + $0xc0] sm:$0xff] }
 0x611   : > { %v3340_v23 = vadd.f32 %v9252_v3, %v3339_v21  ;;  %v3927_v3 = vld [vmem:[%s10871_s5 + $0x1d0] sm:$0xff]  ;;  %v6882_v21 = vpack.c.bf16 %v3876_v18, %v3875_v52  ;;  %v3949_v52 = vld [vmem:[%s10871_s5 + $0x280] sm:$0xff]  ;;  %v3950_v18 = vld [vmem:[%s10871_s5 + $0x288] sm:$0xff] }
 0x612   : > { %v3349_v28 = vmax.f32 %v3345_v24, 0.0  ;;  %v6920_v33 = vpack.c.bf16 %v3928_v30, %v3927_v3  ;;  %v3894_v24 = vld [vmem:[%s10871_s5 + $0xc8] sm:$0xff]  ;;  %v6932_v25 = vpack.c.bf16 %v3950_v18, %v3949_v52 }
 0x613   : > { %v3348_v31 = vmax.f32 %v3340_v23, 0.0  ;;  %v6884_v23 = vpack.c.bf16 %v3894_v24, %v3893_v55 }
 0x614   : > { %v3353_v43 = vrot.slane %v3349_v28, 4  ;;  %6921 = vmatprep.subr.bf16.mxu0 %v6920_v33 }
 0x615   : > { %v3352_v45 = vrot.slane %v3348_v31, 4  ;;  %6923 = vmatpush3.bf16.msra.mxu0 %v6922_v46 }
 0x616   : > { %6925 = vmatprep.subr.bf16.mxu0 %v6924_v42  ;;  %v3879_v42 = vld [vmem:[%s10871_s5 + $0x50] sm:$0xff] }
 0x617   : > { %3355 = vrot.lane.b32.xlu0 %v3352_v45, %s10903_s16  ;;  %v3354_v22 = vsel %vm1415_vm7, %v3352_v45, %v3353_v43  ;;  %v3896_v43 = vld [vmem:[%s10871_s5 + $0xd8] sm:$0xff]  ;;  %v6890_v41 = vpack.c.bf16 %v3880_v19, %v3879_v42  ;;  %v3975_v19 = vld [vmem:[%s10871_s5 + $0x350] sm:$0xff] }
 0x618   : > { %3357 = vrot.lane.b32.xlu1 %v3354_v22, %s10903_s16  ;;  %v6888_v46 = vpack.c.bf16 %v3896_v43, %v3895_v40  ;;  %v3992_v42 = vld [vmem:[%s10871_s5 + $0x3d8] sm:$0xff] }
 0x619   : > { %6927 = vmatpush3.bf16.msra.mxu0 %v6926_v47 }
 0x61a   : > { %6929 = vmatprep.subr.bf16.mxu0 %v6928_v61  ;;  %v3897_v61 = vld [vmem:[%s10871_s5 + $0xe0] sm:$0xff] }
 0x61b   : > { %2459 = vrot.lane.b32.xlu0 %v9304_v38, %s10902_s19  ;;  %v6892_v54 = vpack.c.bf16 %v3898_v17, %v3897_v61  ;;  %v3994_v61 = vld [vmem:[%s10871_s5 + $0x3e8] sm:$0xff] }
 0x61d   : > { %6931 = vmatpush3.bf16.msra.mxu0 %v6930_v56  ;;  %v3881_v56 = vld [vmem:[%s10871_s5 + $0x60] sm:$0xff] }
 0x61e   : > { %6965 = vmatprep.subr.bf16.mxu0 %v6964_v62  ;;  %v3966_v62 = vld [vmem:[%s10871_s5 + $0x308] sm:$0xff] }
 0x61f   : > { %2761 = vrot.lane.b32.xlu0 %v9321_v4, %s10893_s14 }
 0x623   : > { %2859 = vrot.lane.b32.xlu0 %v9327_v35, %s10902_s19  ;;  %v3885_v35 = vld [vmem:[%s10871_s5 + $0x80] sm:$0xff] }
 0x627   : > { %2961 = vrot.lane.b32.xlu0 %v9332_v20, %s10903_s16  ;;  %v6868_v20 = vpack.c.bf16 %v3886_v48, %v3885_v35  ;;  %v3983_v35 = vld [vmem:[%s10871_s5 + $0x390] sm:$0xff]  ;;  %v3984_v48 = vld [vmem:[%s10871_s5 + $0x398] sm:$0xff] }
 0x628   : > { %v6968_v10 = vpack.c.bf16 %v3984_v48, %v3983_v35  ;;  %v3979_v35 = vld [vmem:[%s10871_s5 + $0x370] sm:$0xff]  ;;  %v3980_v48 = vld [vmem:[%s10871_s5 + $0x378] sm:$0xff] }
 0x629   : > { %v2760_v38 = vpop.permute.xlu1 %2759  ;;  %6869 = vmatprep.subr.bf16.mxu1 %v6868_v20  ;;  %v3900_v20 = vld [vmem:[%s10871_s5 + $0xf8] sm:$0xff] }
 0x62a   : > { %2765 = vst.msk [vmem:[#allocation5 + $0x10] sm:$0xf0] %vm2363_vm0, %v2760_v38  ;;  %6871 = vmatpush3.bf16.msra.mxu1 %v6870_v2  ;;  %v6894_v38 = vpack.c.bf16 %v3882_v57, %v3881_v56  ;;  %v6966_v2 = vpack.c.bf16 %v3966_v62, %v3965_v60  ;;  %v3977_v56 = vld [vmem:[%s10871_s5 + $0x360] sm:$0xff]  ;;  %v3978_v57 = vld [vmem:[%s10871_s5 + $0x368] sm:$0xff]  ;;  %v3995_v60 = vld [vmem:[%s10871_s5 + $0x3f0] sm:$0xff] }
 0x62b   : > { %6873 = vmatprep.subr.bf16.mxu1 %v6872_v36  ;;  %v6896_v36 = vpack.c.bf16 %v3900_v20, %v3899_v63  ;;  %v3996_v62 = vld [vmem:[%s10871_s5 + $0x3f8] sm:$0xff]  ;;  %v4045_v63 = vld [vmem:[%s10871_s5 + $0x580] sm:$0xff]  ;;  %v4046_v20 = vld [vmem:[%s10871_s5 + $0x588] sm:$0xff] }
 0x62c   : > { %v7028_v5 = vpack.c.bf16 %v4046_v20, %v4045_v63 }
 0x62e   : > { %6875 = vmatpush3.bf16.msra.mxu1 %v6874_v8  ;;  %v3986_v8 = vld [vmem:[%s10871_s5 + $0x3a8] sm:$0xff] }
 0x62f   : > { %6877 = vmatprep.subr.bf16.mxu1 %v6876_v9  ;;  %v3883_v9 = vld [vmem:[%s10871_s5 + $0x70] sm:$0xff]  ;;  %v6972_v24 = vpack.c.bf16 %v3986_v8, %v3985_v7  ;;  %v4030_v7 = vld [vmem:[%s10871_s5 + $0x508] sm:$0xff] }
 0x630   : > { %v7030_v52 = vpack.c.bf16 %v4030_v7, %v4029_v6 }
 0x632   : > { %6879 = vmatpush3.bf16.msra.mxu1 %v6878_v15  ;;  %v3969_v15 = vld [vmem:[%s10871_s5 + $0x320] sm:$0xff] }
 0x633   : > { %6881 = vmatprep.subr.bf16.mxu1 %v6880_v16  ;;  %v6898_v16 = vpack.c.bf16 %v3884_v13, %v3883_v9  ;;  %v4047_v9 = vld [vmem:[%s10871_s5 + $0x590] sm:$0xff] }
 0x636   : > { %6883 = vmatpush3.bf16.msra.mxu1 %v6882_v21  ;;  %v3970_v21 = vld [vmem:[%s10871_s5 + $0x328] sm:$0xff] }
 0x637   : > { %6885 = vmatprep.subr.bf16.mxu1 %v6884_v23  ;;  %v3987_v23 = vld [vmem:[%s10871_s5 + $0x3b0] sm:$0xff] }
 0x639   : > { %v2858_v4 = vpop.permute.xlu0 %2857 }
 0x63a   : > { %2863 = vst.msk [vmem:[#allocation5 + $0x10] sm:$0xf0] %vm2463_vm1, %v2858_v4  ;;  %6887 = vmatpush3.bf16.msra.mxu1 %v6886_v27 }
 0x63b   : > { %6889 = vmatprep.subr.bf16.mxu1 %v6888_v46  ;;  %v3991_v46 = vld [vmem:[%s10871_s5 + $0x3d0] sm:$0xff] }
 0x63e   : > { %6891 = vmatpush3.bf16.msra.mxu1 %v6890_v41  ;;  %v3976_v41 = vld [vmem:[%s10871_s5 + $0x358] sm:$0xff] }
 0x63f   : > { %6893 = vmatprep.subr.bf16.mxu1 %v6892_v54  ;;  %v6986_v17 = vpack.c.bf16 %v3976_v41, %v3975_v19  ;;  %v4055_v19 = vld [vmem:[%s10871_s5 + $0x5d0] sm:$0xff]  ;;  %v4056_v41 = vld [vmem:[%s10871_s5 + $0x5d8] sm:$0xff] }
 0x642   : > { %6895 = vmatpush3.bf16.msra.mxu1 %v6894_v38  ;;  %v6990_v38 = vpack.c.bf16 %v3978_v57, %v3977_v56  ;;  %v4057_v56 = vld [vmem:[%s10871_s5 + $0x5e0] sm:$0xff]  ;;  %v4058_v57 = vld [vmem:[%s10871_s5 + $0x5e8] sm:$0xff] }
 0x643   : > { %6897 = vmatprep.subr.bf16.mxu1 %v6896_v36 }
 0x646   : > { %6899 = vmatpush3.bf16.msra.mxu1 %v6898_v16 }
 0x647   : > { %6933 = vmatprep.subr.bf16.mxu1 %v6932_v25 }
 0x669   : > { %v3254_v28 = vpop.permute.xlu1 %3253 }
 0x66d   : > { %v2960_v58 = vpop.permute.xlu1 %2959 }
 0x66e   : > { %2965 = vst.msk [vmem:[#allocation5 + $0x10] sm:$0xf0] %vm2567_vm2, %v2960_v58  ;;  %v3988_v58 = vld [vmem:[%s10871_s5 + $0x3b8] sm:$0xff] }
 0x671   : > { %v2360_v29 = vpop.permute.xlu1 %2359 }
 0x672   : > { %2366 = vst.msk [vmem:[#allocation5 + $0x30] sm:$0xff] %vm2365_vm3, %v2360_v29 }
 0x675   : > { %v2564_v3 = vpop.permute.xlu1 %2563 }
 0x679   : > { %v3156_v30 = vpop.permute.xlu0 %3155 }
 0x67a   : > { %3161 = vst.msk [vmem:[#allocation5 + $0x18] sm:$0xf0] %vm2363_vm0, %v3156_v30  ;;  %v3158_v31 = vpop.permute.xlu1 %3157 }
 0x67b   : > { %3259 = vst.msk [vmem:[#allocation5 + $0x18] sm:$0xf0] %vm2463_vm1, %v3254_v28 }
 0x67c   : > { %3162 = vst.msk [vmem:[#allocation5 + $0x40] sm:$0xff] %vm2365_vm3, %v3158_v31 }
 0x67e   : > { %v3256_v32 = vpop.permute.xlu1 %3255 }
 0x67f   : > { %3260 = vst.msk [vmem:[#allocation5 + $0x40] sm:$0xff] %vm2465_vm4, %v3256_v32  ;;  %v6974_v32 = vpack.c.bf16 %v3970_v21, %v3969_v15  ;;  %v4032_v21 = vld [vmem:[%s10871_s5 + $0x518] sm:$0xff] }
 0x689   : > { %v3356_v33 = vpop.permute.xlu0 %3355 }
 0x68a   : > { %3361 = vst.msk [vmem:[#allocation5 + $0x18] sm:$0xf0] %vm2567_vm2, %v3356_v33  ;;  %v3358_v37 = vpop.permute.xlu1 %3357 }
 0x68b   : > { %3362 = vst.msk [vmem:[#allocation5 + $0x40] sm:$0xff] %vm2569_vm5, %v3358_v37  ;;  %v3971_v37 = vld [vmem:[%s10871_s5 + $0x330] sm:$0xff] }
 0x68d   : > { %v2460_v39 = vpop.permute.xlu0 %2459 }
 0x68e   : > { %2466 = vst.msk [vmem:[#allocation5 + $0x30] sm:$0xff] %vm2465_vm4, %v2460_v39  ;;  %v3990_v39 = vld [vmem:[%s10871_s5 + $0x3c8] sm:$0xff] }
 0x68f   : > { %2570 = vst.msk [vmem:[#allocation5 + $0x30] sm:$0xff] %vm2569_vm5, %v2564_v3 }
 0x691   : > { %v3364_v44 = vld [vmem:[#allocation5 + $0xc] ss:$8 sm:$0x7]  ;;  %v2762_v45 = vpop.permute.xlu0 %2761 }
 0x692   : > { %2766 = vst.msk [vmem:[#allocation5 + $0x38] sm:$0xff] %vm2365_vm3, %v2762_v45  ;;  %v3369_v50 = vrot.slane %v3364_v44, %v9117_v49  ;;  %v3377_v53 = vrot.slane %v3364_v44, %v9132_v59  ;;  %v3373_v22 = vrot.slane %v3364_v44, %v9120_v51  ;;  %v9617_v11 = vld [vmem:[#allocation5 + $0x40] sm:$0xff]  ;;  %v3973_v44 = vld [vmem:[%s10871_s5 + $0x340] sm:$0xff]  ;;  %v3974_v45 = vld [vmem:[%s10871_s5 + $0x348] sm:$0xff] }
 0x694   : > { %3381 = vst [vmem:[#allocation5 + $0x8] sm:$0xf] %v3369_v50  ;;  %3383 = vst [vmem:[#allocation5 + $0x18] sm:$0xf] %v3377_v53  ;;  %v6982_v53 = vpack.c.bf16 %v3974_v45, %v3973_v44  ;;  %v4053_v44 = vld [vmem:[%s10871_s5 + $0x5c0] sm:$0xff]  ;;  %v4054_v45 = vld [vmem:[%s10871_s5 + $0x5c8] sm:$0xff] }
 0x695   : > { %3382 = vst [vmem:[#allocation5 + $0x10] sm:$0xf] %v3373_v22  ;;  %v2860_v47 = vpop.permute.xlu0 %2859  ;;  %v6984_v22 = vpack.c.bf16 %v3992_v42, %v3991_v46  ;;  %v7044_v42 = vpack.c.bf16 %v4054_v45, %v4053_v44 }
 0x696   : > { %2864 = vst.msk [vmem:[#allocation5 + $0x38] sm:$0xff] %vm2465_vm4, %v2860_v47  ;;  %v9632_v55 = vld [vmem:[#allocation5 + $0x30] sm:$0xff] }
 0x697   : > { %v3993_v47 = vld [vmem:[%s10871_s5 + $0x3e0] sm:$0xff]  ;;  %v3551_v15 = vrot.slane %v9632_v55, 1 }
 0x698   : > { %v6988_v54 = vpack.c.bf16 %v3994_v61, %v3993_v47  ;;  %v7048_v61 = vpack.c.bf16 %v4056_v41, %v4055_v19  ;;  %v3939_v41 = vld [vmem:[%s10871_s5 + $0x230] sm:$0xff] }
 0x699   : > { %v2962_v4 = vpop.permute.xlu0 %2961 }
 0x69a   : > { %2966 = vst.msk [vmem:[#allocation5 + $0x38] sm:$0xff] %vm2569_vm5, %v2962_v4  ;;  %v6992_v4 = vpack.c.bf16 %v3996_v62, %v3995_v60  ;;  %v7052_v62 = vpack.c.bf16 %v4058_v57, %v4057_v56 }
 0x69b   : > { %v9592_v26 = vld [vmem:[#allocation5 + $0x8] sm:$0xff]  ;;  %v9594_v0 = vld [vmem:[#allocation5 + $0x18] sm:$0xff] }
 0x69c   : > { %v3498_v1 = vld [vmem:[#allocation5 + $0x10] sm:$0xff]  ;;  %4340 = vmatprep.mubr.f32.mxu1 %v9592_v26  ;;  %4415 = vmatprep.mubr.f32.mxu0 %v9594_v0  ;;  %v3593_v16 = vld [vmem:[#allocation5 + $0x8] sm:$0xfc] }
 0x69d   : > { %3420 = vrot.lane.b32.xlu1 %v9592_v26, %s10902_s19  ;;  %3411 = vrot.lane.b32.xlu0 %v9592_v26, %s10893_s14  ;;  %v3518_v12 = vld [vmem:[#allocation5 + $0x10] sm:$0xfe] }
 0x69e   : > { %4416 = vmatmul.mubr.f32.vlgmr.msra.gmra.mrb[16].mxu0 %v3498_v1  ;;  %v3553_v28 = vrot.slane %v3518_v12, 1  ;;  %v3517_v1 = vld [vmem:[#allocation5 + $0x8] sm:$0xfe] }
 0x69f   : > { %6967 = vmatpush3.bf16.msra.mxu0 %v6966_v2  ;;  %4420 = vmatprep.mubr.f32.mxu0 %v9617_v11  ;;  %v6994_v2 = vpack.c.bf16 %v3980_v48, %v3979_v35  ;;  %v3550_v8 = vrot.slane %v3517_v1, 1  ;;  %v4048_v12 = vld [vmem:[%s10871_s5 + $0x598] sm:$0xff]  ;;  %v4059_v35 = vld [vmem:[%s10871_s5 + $0x5f0] sm:$0xff] }
 0x6a0   : > { %6969 = vmatprep.subr.bf16.mxu0 %v6968_v10  ;;  %v7032_v18 = vpack.c.bf16 %v4048_v12, %v4047_v9  ;;  %v4060_v48 = vld [vmem:[%s10871_s5 + $0x5f8] sm:$0xff]  ;;  %v4043_v1 = vld [vmem:[%s10871_s5 + $0x570] sm:$0xff]  ;;  %v3933_v12 = vld [vmem:[%s10871_s5 + $0x200] sm:$0xff] }
 0x6a1   : > { %v3385_v34 = vld [vmem:[#allocation5 + $0x37] ss:$8 sm:$0x7]  ;;  %3429 = vrot.lane.b32.xlu0 %v9592_v26, %s10903_s16  ;;  %3413 = vrot.lane.b32.xlu1 %v9632_v55, %s10893_s14  ;;  %v7056_v20 = vpack.c.bf16 %v4060_v48, %v4059_v35 }
 0x6a2   : > { %v9644_v27 = vld [vmem:[#allocation5 + $0x38] sm:$0xff]  ;;  %v3394_v29 = vrot.slane %v3385_v34, %v9120_v51  ;;  %v3390_v30 = vrot.slane %v3385_v34, %v9117_v49  ;;  %v3398_v31 = vrot.slane %v3385_v34, %v9132_v59  ;;  %v6976_v51 = vpack.c.bf16 %v3988_v58, %v3987_v23  ;;  %v3972_v49 = vld [vmem:[%s10871_s5 + $0x338] sm:$0xff]  ;;  %v3989_v59 = vld [vmem:[%s10871_s5 + $0x3c0] sm:$0xff] }
 0x6a3   : > { %4421 = vmatmul.mubr.f32.gmra.mrb[18].mxu0 %v9644_v27  ;;  %v3554_v3 = vrot.slane %v9644_v27, 1  ;;  %v6978_v40 = vpack.c.bf16 %v3972_v49, %v3971_v37  ;;  %v6980_v43 = vpack.c.bf16 %v3990_v39, %v3989_v59  ;;  %v3552_v23 = vsel %vm3546_vm6, %v3550_v8, %v3551_v15  ;;  %v4049_v34 = vld [vmem:[%s10871_s5 + $0x5a0] sm:$0xff]  ;;  %v4052_v37 = vld [vmem:[%s10871_s5 + $0x5b8] sm:$0xff] }
 0x6a4   : > { %6971 = vmatpush3.bf16.msra.mxu0 %v6970_v14  ;;  %3403 = vst [vmem:[#allocation5 + $0x60] sm:$0xf] %v3394_v29  ;;  %3402 = vst [vmem:[#allocation5 + $0x58] sm:$0xf] %v3390_v30  ;;  %v3626_v29 = vrot.slane %v3593_v16, 2  ;;  %v3952_v16 = vld [vmem:[%s10871_s5 + $0x298] sm:$0xff] }
 0x6a5   : > { %6973 = vmatprep.subr.bf16.mxu0 %v6972_v24  ;;  %v3555_v33 = vsel %vm3546_vm6, %v3553_v28, %v3554_v3  ;;  %3404 = vst [vmem:[#allocation5 + $0x68] sm:$0xf] %v3398_v31  ;;  %3422 = vrot.lane.b32.xlu0 %v9632_v55, %s10902_s19  ;;  %v4031_v24 = vld [vmem:[%s10871_s5 + $0x510] sm:$0xff]  ;;  %v4050_v28 = vld [vmem:[%s10871_s5 + $0x5a8] sm:$0xff]  ;;  %v3627_v31 = vrot.slane %v9632_v55, 2 }
 0x6a6   : > { %3431 = vrot.lane.b32.xlu1 %v9632_v55, %s10903_s16  ;;  %4565 = vmatprep.mubr.f32.mxu0 %v3555_v33  ;;  %v7034_v30 = vpack.c.bf16 %v4032_v21, %v4031_v24  ;;  %v4033_v33 = vld [vmem:[%s10871_s5 + $0x520] sm:$0xff] }
 0x6a7   : > { %v3628_v49 = vsel %vm3622_vm8, %v3626_v29, %v3627_v31 }
 0x6a8   : > { %6975 = vmatpush3.bf16.msra.mxu0 %v6974_v32  ;;  %v7036_v32 = vpack.c.bf16 %v4050_v28, %v4049_v34  ;;  %v3953_v28 = vld [vmem:[%s10871_s5 + $0x2a0] sm:$0xff] }
 0x6a9   : > { %6977 = vmatprep.subr.bf16.mxu0 %v6976_v51  ;;  %3457 = vrot.lane.b32.xlu0 %v9594_v0, %s10893_s14  ;;  %v4034_v51 = vld [vmem:[%s10871_s5 + $0x528] sm:$0xff] }
 0x6aa   : > { %3466 = vrot.lane.b32.xlu1 %v9594_v0, %s10902_s19  ;;  %v7038_v59 = vpack.c.bf16 %v4034_v51, %v4033_v33 }
 0x6ab   : > { %v9689_v50 = vld [vmem:[#allocation5 + $0x58] sm:$0xf]  ;;  %v3528_v36 = vld [vmem:[#allocation5 + $0x60] sm:$0x1] }
 0x6ac   : > { %6979 = vmatpush3.bf16.msra.mxu0 %v6978_v40  ;;  %v9739_v10 = vld [vmem:[#allocation5 + $0x68] sm:$0xf]  ;;  %v3566_v13 = vrot.slane %v3528_v36, 1  ;;  %v3527_v14 = vld [vmem:[#allocation5 + $0x58] sm:$0x1]  ;;  %v4035_v40 = vld [vmem:[%s10871_s5 + $0x530] sm:$0xff] }
 0x6ad   : > { %6981 = vmatprep.subr.bf16.mxu0 %v6980_v43  ;;  %3475 = vrot.lane.b32.xlu0 %v9594_v0, %s10903_s16  ;;  %v3564_v25 = vrot.slane %v3527_v14, 1  ;;  %v4036_v43 = vld [vmem:[%s10871_s5 + $0x538] sm:$0xff]  ;;  %v4109_v36 = vld [vmem:[%s10871_s5 + $0x780] sm:$0xff]  ;;  %v3603_v44 = vld [vmem:[#allocation5 + $0x58] sm:$0x3] }
 0x6ae   : > { %3415 = vrot.lane.b32.xlu1 %v9689_v50, %s10893_s14  ;;  %v3567_v58 = vsel %vm3546_vm6, %v3554_v3, %v3566_v13  ;;  %v4051_v3 = vld [vmem:[%s10871_s5 + $0x5b0] sm:$0xff]  ;;  %v7042_v46 = vpack.c.bf16 %v4036_v43, %v4035_v40  ;;  %v3934_v13 = vld [vmem:[%s10871_s5 + $0x208] sm:$0xff]  ;;  %v4093_v40 = vld [vmem:[%s10871_s5 + $0x700] sm:$0xff]  ;;  %v3640_v57 = vrot.slane %v3603_v44, 2 }
 0x6af   : > { %v3565_v27 = vsel %vm3546_vm6, %v3551_v15, %v3564_v25  ;;  %v7040_v39 = vpack.c.bf16 %v4052_v37, %v4051_v3  ;;  %v3951_v15 = vld [vmem:[%s10871_s5 + $0x290] sm:$0xff]  ;;  %v3938_v3 = vld [vmem:[%s10871_s5 + $0x228] sm:$0xff] }
 0x6b0   : > { %6983 = vmatpush3.bf16.msra.mxu0 %v6982_v53  ;;  %v4037_v53 = vld [vmem:[%s10871_s5 + $0x540] sm:$0xff]  ;;  %v3935_v25 = vld [vmem:[%s10871_s5 + $0x210] sm:$0xff]  ;;  %v4094_v43 = vld [vmem:[%s10871_s5 + $0x708] sm:$0xff] }
 0x6b1   : > { %6985 = vmatprep.subr.bf16.mxu0 %v6984_v22  ;;  %3459 = vrot.lane.b32.xlu0 %v9617_v11, %s10893_s14  ;;  %v4038_v22 = vld [vmem:[%s10871_s5 + $0x548] sm:$0xff]  ;;  %v7094_v56 = vpack.c.bf16 %v4094_v43, %v4093_v40 }
 0x6b2   : > { %3433 = vrot.lane.b32.xlu1 %v9689_v50, %s10903_s16  ;;  %v7046_v47 = vpack.c.bf16 %v4038_v22, %v4037_v53 }
 0x6b4   : > { %6987 = vmatpush3.bf16.msra.mxu0 %v6986_v17  ;;  %v4039_v17 = vld [vmem:[%s10871_s5 + $0x550] sm:$0xff] }
 0x6b5   : > { %6989 = vmatprep.subr.bf16.mxu0 %v6988_v54  ;;  %3424 = vrot.lane.b32.xlu0 %v9689_v50, %s10902_s19  ;;  %v4040_v54 = vld [vmem:[%s10871_s5 + $0x558] sm:$0xff] }
 0x6b6   : > { %3468 = vrot.lane.b32.xlu1 %v9617_v11, %s10902_s19  ;;  %v7050_v60 = vpack.c.bf16 %v4040_v54, %v4039_v17 }
 0x6b8   : > { %6991 = vmatpush3.bf16.msra.mxu0 %v6990_v38  ;;  %v4041_v38 = vld [vmem:[%s10871_s5 + $0x560] sm:$0xff] }
 0x6b9   : > { %6993 = vmatprep.subr.bf16.mxu0 %v6992_v4  ;;  %3477 = vrot.lane.b32.xlu0 %v9617_v11, %s10903_s16  ;;  %v4042_v4 = vld [vmem:[%s10871_s5 + $0x568] sm:$0xff] }
 0x6ba   : > { %3461 = vrot.lane.b32.xlu1 %v9739_v10, %s10893_s14  ;;  %v7054_v63 = vpack.c.bf16 %v4042_v4, %v4041_v38  ;;  %s7322_s14 = smul.u32 768, %s7557_s28  ;;  %s10824_s28 = scalar_lea.sflag [#allocation8], %s269_s23 }
 0x6bc   : > { %6995 = vmatpush3.bf16.msra.mxu0 %v6994_v2  ;;  %v4044_v2 = vld [vmem:[%s10871_s5 + $0x578] sm:$0xff]  ;;  %s10820_s29 = scalar_lea.hbm %s10873_s7, %s7322_s14 }
 0x6bd   : > { %7029 = vmatprep.subr.bf16.mxu0 %v7028_v5  ;;  %3470 = vrot.lane.b32.xlu0 %v9739_v10, %s10902_s19  ;;  %v4110_v5 = vld [vmem:[%s10871_s5 + $0x788] sm:$0xff]  ;;  %v7058_v6 = vpack.c.bf16 %v4044_v2, %v4043_v1  ;;  %v4096_v1 = vld [vmem:[%s10871_s5 + $0x718] sm:$0xff]  ;;  %v4113_v2 = vld [vmem:[%s10871_s5 + $0x7a0] sm:$0xff] }
 0x6be   : > { %3479 = vrot.lane.b32.xlu1 %v9739_v10, %s10903_s16  ;;  %v7092_v7 = vpack.c.bf16 %v4110_v5, %v4109_v36 }
 0x6bf   : > { %4566 = vmatmul.mubr.f32.vlgmr.msra.gmra.mrb[20].mxu0 %v3552_v23  ;;  %v6936_v23 = vpack.c.bf16 %v3952_v16, %v3951_v15  ;;  %v3641_v16 = vsel %vm3622_vm8, %v3627_v31, %v3640_v57  ;;  %v4119_v57 = vld [vmem:[%s10871_s5 + $0x7d0] sm:$0xff] }
 0x6c0   : > { %4570 = vmatprep.mubr.f32.mxu0 %v3567_v58  ;;  %7031 = vmatpush3.bf16.msra.mxu0 %v7030_v52  ;;  %v6934_v52 = vpack.c.bf16 %v3934_v13, %v3933_v12  ;;  %v3954_v58 = vld [vmem:[%s10871_s5 + $0x2a8] sm:$0xff]  ;;  %v3941_v13 = vld [vmem:[%s10871_s5 + $0x240] sm:$0xff] }
 0x6c1   : > { %7033 = vmatprep.subr.bf16.mxu0 %v7032_v18  ;;  %v6940_v51 = vpack.c.bf16 %v3954_v58, %v3953_v28  ;;  %v4114_v12 = vld [vmem:[%s10871_s5 + $0x7a8] sm:$0xff]  ;;  %v4116_v58 = vld [vmem:[%s10871_s5 + $0x7b8] sm:$0xff] }
 0x6c3   : > { %4571 = vmatmul.mubr.f32.gmra.mrb[22].mxu0 %v3565_v27  ;;  %v3937_v27 = vld [vmem:[%s10871_s5 + $0x220] sm:$0xff] }
 0x6c4   : > { %4715 = vmatprep.mubr.f32.mxu0 %v3628_v49  ;;  %7035 = vmatpush3.bf16.msra.mxu0 %v7034_v30  ;;  %v3955_v49 = vld [vmem:[%s10871_s5 + $0x2b0] sm:$0xff]  ;;  %v6942_v45 = vpack.c.bf16 %v3938_v3, %v3937_v27 }
 0x6c5   : > { %7037 = vmatprep.subr.bf16.mxu0 %v7036_v32 }
 0x6c8   : > { %7039 = vmatpush3.bf16.msra.mxu0 %v7038_v59  ;;  %v3956_v59 = vld [vmem:[%s10871_s5 + $0x2b8] sm:$0xff] }
 0x6c9   : > { %7041 = vmatprep.subr.bf16.mxu0 %v7040_v39  ;;  %v6944_v19 = vpack.c.bf16 %v3956_v59, %v3955_v49  ;;  %v4100_v49 = vld [vmem:[%s10871_s5 + $0x738] sm:$0xff]  ;;  %v4117_v59 = vld [vmem:[%s10871_s5 + $0x7c0] sm:$0xff] }
 0x6cc   : > { %7043 = vmatpush3.bf16.msra.mxu0 %v7042_v46  ;;  %v4111_v46 = vld [vmem:[%s10871_s5 + $0x790] sm:$0xff] }
 0x6cd   : > { %7045 = vmatprep.subr.bf16.mxu0 %v7044_v42  ;;  %v4112_v42 = vld [vmem:[%s10871_s5 + $0x798] sm:$0xff] }
 0x6ce   : > { %v7096_v48 = vpack.c.bf16 %v4112_v42, %v4111_v46  ;;  %v4118_v46 = vld [vmem:[%s10871_s5 + $0x7c8] sm:$0xff]  ;;  %v3945_v42 = vld [vmem:[%s10871_s5 + $0x260] sm:$0xff] }
 0x6d0   : > { %7047 = vmatpush3.bf16.msra.mxu0 %v7046_v47  ;;  %v3940_v47 = vld [vmem:[%s10871_s5 + $0x238] sm:$0xff] }
 0x6d1   : > { %7049 = vmatprep.subr.bf16.mxu0 %v7048_v61  ;;  %v3957_v61 = vld [vmem:[%s10871_s5 + $0x2c0] sm:$0xff] }
 0x6d4   : > { %7051 = vmatpush3.bf16.msra.mxu0 %v7050_v60  ;;  %v3958_v60 = vld [vmem:[%s10871_s5 + $0x2c8] sm:$0xff] }
 0x6d5   : > { %7053 = vmatprep.subr.bf16.mxu0 %v7052_v62 }
 0x6d8   : > { %7055 = vmatpush3.bf16.msra.mxu0 %v7054_v63  ;;  %v6946_v63 = vpack.c.bf16 %v3940_v47, %v3939_v41 }
 0x6d9   : > { %7057 = vmatprep.subr.bf16.mxu0 %v7056_v20  ;;  %v4095_v20 = vld [vmem:[%s10871_s5 + $0x710] sm:$0xff] }
 0x6dc   : > { %7059 = vmatpush3.bf16.msra.mxu0 %v7058_v6 }
 0x6dd   : > { %7093 = vmatprep.subr.bf16.mxu0 %v7092_v7 }
 0x70f   : > { %v3421_v8 = vpop.permute.xlu1 %3420  ;;  %v3412_v9 = vpop.permute.xlu0 %3411 }
 0x710   : > { %v3438_v14 = vsel %vm2261_vm15, %v9592_v26, %v3412_v9  ;;  %v3936_v26 = vld [vmem:[%s10871_s5 + $0x218] sm:$0xff]  ;;  %v6948_v9 = vpack.c.bf16 %v3958_v60, %v3957_v61  ;;  %v7108_v61 = vpack.c.bf16 %v4118_v46, %v4117_v59  ;;  %v4123_v59 = vld [vmem:[%s10871_s5 + $0x7f0] sm:$0xff] }
 0x711   : > { %v3441_v18 = vsel %vm2168_vm9, %v3438_v14, %v3421_v8  ;;  %v6938_v29 = vpack.c.bf16 %v3936_v26, %v3935_v25  ;;  %v3942_v14 = vld [vmem:[%s10871_s5 + $0x248] sm:$0xff] }
 0x712   : > { %v6950_v31 = vpack.c.bf16 %v3942_v14, %v3941_v13  ;;  %v4098_v25 = vld [vmem:[%s10871_s5 + $0x728] sm:$0xff] }
 0x713   : > { %v3430_v24 = vpop.permute.xlu0 %3429  ;;  %v3414_v21 = vpop.permute.xlu1 %3413 }
 0x714   : > { %v3445_v34 = vsel %vm3444_vm10, %v3441_v18, %v3430_v24  ;;  %v3439_v30 = vsel %vm2261_vm15, %v9632_v55, %v3414_v21  ;;  %v3960_v18 = vld [vmem:[%s10871_s5 + $0x2d8] sm:$0xff]  ;;  %v7098_v21 = vpack.c.bf16 %v4096_v1, %v4095_v20  ;;  %v3947_v20 = vld [vmem:[%s10871_s5 + $0x270] sm:$0xff] }
 0x715   : > { %3448 = vst [vmem:[#allocation5] sm:$0xff] %v3445_v34  ;;  %4341 = vmatmul.mubr.f32.vlgmr.msra.gmra.mrb[24].mxu1 %v3445_v34  ;;  %v3948_v1 = vld [vmem:[%s10871_s5 + $0x278] sm:$0xff] }
 0x716   : > { %6935 = vmatpush3.bf16.msra.mxu1 %v6934_v52  ;;  %4345 = vmatprep.mubr.f32.mxu1 %v9632_v55  ;;  %v3959_v52 = vld [vmem:[%s10871_s5 + $0x2d0] sm:$0xff]  ;;  %v7100_v55 = vpack.c.bf16 %v4114_v12, %v4113_v2  ;;  %v6962_v12 = vpack.c.bf16 %v3948_v1, %v3947_v20 }
 0x717   : > { %v3423_v32 = vpop.permute.xlu0 %3422  ;;  %6937 = vmatprep.subr.bf16.mxu1 %v6936_v23  ;;  %v4097_v23 = vld [vmem:[%s10871_s5 + $0x720] sm:$0xff]  ;;  %v6952_v28 = vpack.c.bf16 %v3960_v18, %v3959_v52 }
 0x718   : > { %v3432_v33 = vpop.permute.xlu1 %3431  ;;  %v3442_v37 = vsel %vm2168_vm9, %v3439_v30, %v3423_v32  ;;  %v3944_v30 = vld [vmem:[%s10871_s5 + $0x258] sm:$0xff]  ;;  %v3961_v32 = vld [vmem:[%s10871_s5 + $0x2e0] sm:$0xff] }
 0x719   : > { %v9900_v39 = vsel %vm3444_vm10, %v3442_v37, %v3432_v33  ;;  %v3962_v33 = vld [vmem:[%s10871_s5 + $0x2e8] sm:$0xff]  ;;  %v4099_v37 = vld [vmem:[%s10871_s5 + $0x730] sm:$0xff]  ;;  %v4121_v18 = vld [vmem:[%s10871_s5 + $0x7e0] sm:$0xff] }
 0x71a   : > { %3449 = vst [vmem:[#allocation5 + $0x28] sm:$0xff] %v9900_v39  ;;  %6939 = vmatpush3.bf16.msra.mxu1 %v6938_v29  ;;  %v3548_v38 = vrot.slane %v9900_v39, 1  ;;  %v3624_v35 = vrot.slane %v9900_v39, 2  ;;  %v3943_v29 = vld [vmem:[%s10871_s5 + $0x250] sm:$0xff]  ;;  %v7106_v47 = vpack.c.bf16 %v4100_v49, %v4099_v37 }
 0x71b   : > { %v3458_v53 = vpop.permute.xlu0 %3457  ;;  %4346 = vmatmul.mubr.f32.gmra.mrb[26].mxu1 %v9900_v39  ;;  %6941 = vmatprep.subr.bf16.mxu1 %v6940_v51  ;;  %v7102_v51 = vpack.c.bf16 %v4098_v25, %v4097_v23  ;;  %v6954_v3 = vpack.c.bf16 %v3944_v30, %v3943_v29  ;;  %v4015_v30 = vld [vmem:[%s10871_s5 + $0x490] sm:$0xff] }
 0x71c   : > { %v3467_v22 = vpop.permute.xlu1 %3466  ;;  %v3516_v17 = vld [vmem:[#allocation5] sm:$0xfe] }
 0x71d   : > { %v3592_v54 = vld [vmem:[#allocation5] sm:$0xfc]  ;;  %v3547_v62 = vrot.slane %v3516_v17, 1  ;;  %v3484_v36 = vsel %vm2261_vm15, %v3458_v53, %v3467_v22  ;;  %v3946_v53 = vld [vmem:[%s10871_s5 + $0x268] sm:$0xff] }
 0x71e   : > { %v3623_v4 = vrot.slane %v3592_v54, 2  ;;  %6943 = vmatpush3.bf16.msra.mxu1 %v6942_v45  ;;  %v6956_v45 = vpack.c.bf16 %v3962_v33, %v3961_v32  ;;  %v6958_v17 = vpack.c.bf16 %v3946_v53, %v3945_v42  ;;  %v4101_v54 = vld [vmem:[%s10871_s5 + $0x740] sm:$0xff]  ;;  %v4016_v32 = vld [vmem:[%s10871_s5 + $0x498] sm:$0xff]  ;;  %v3700_v33 = vrot.slane %v9900_v39, 3  ;;  %v4023_v39 = vld [vmem:[%s10871_s5 + $0x4d0] sm:$0xff] }
 0x71f   : > { %v3476_v5 = vpop.permute.xlu0 %3475  ;;  %v3549_v7 = vsel %vm3546_vm6, %v3547_v62, %v3548_v38  ;;  %6945 = vmatprep.subr.bf16.mxu1 %v6944_v19  ;;  %v3964_v19 = vld [vmem:[%s10871_s5 + $0x2f8] sm:$0xff]  ;;  %v4017_v53 = vld [vmem:[%s10871_s5 + $0x4a0] sm:$0xff] }
 0x720   : > { %v3416_v6 = vpop.permute.xlu1 %3415  ;;  %v3625_v8 = vsel %vm3622_vm8, %v3623_v4, %v3624_v35  ;;  %v3487_v15 = vsel %vm2168_vm9, %v3484_v36, %v3476_v5  ;;  %4490 = vmatprep.mubr.f32.mxu1 %v3549_v7  ;;  %v4013_v36 = vld [vmem:[%s10871_s5 + $0x480] sm:$0xff]  ;;  %v4014_v5 = vld [vmem:[%s10871_s5 + $0x488] sm:$0xff] }
 0x721   : > { %4716 = vmatmul.mubr.f32.vlgmr.msra.gmra.mrb[24].mxu0 %v3625_v8  ;;  %v9967_v24 = vsel %vm3444_vm10, %v3487_v15, %v9594_v0  ;;  %v4115_v0 = vld [vmem:[%s10871_s5 + $0x7b0] sm:$0xff]  ;;  %v3440_v40 = vsel %vm2261_vm15, %v9689_v50, %v3416_v6 }
 0x722   : > { %7095 = vmatpush3.bf16.msra.mxu0 %v7094_v56  ;;  %4720 = vmatprep.mubr.f32.mxu0 %v3641_v16  ;;  %3493 = vst [vmem:[#allocation5 + $0x20] sm:$0xff] %v9967_v24  ;;  %v7104_v27 = vpack.c.bf16 %v4116_v58, %v4115_v0  ;;  %v3963_v50 = vld [vmem:[%s10871_s5 + $0x2f0] sm:$0xff]  ;;  %v4102_v56 = vld [vmem:[%s10871_s5 + $0x748] sm:$0xff]  ;;  %v6996_v16 = vpack.c.bf16 %v4014_v5, %v4013_v36 }
 0x723   : > { %7097 = vmatprep.subr.bf16.mxu0 %v7096_v48  ;;  %6947 = vmatpush3.bf16.msra.mxu1 %v6946_v63  ;;  %v3460_v26 = vpop.permute.xlu0 %3459  ;;  %v6960_v48 = vpack.c.bf16 %v3964_v19, %v3963_v50  ;;  %v4120_v63 = vld [vmem:[%s10871_s5 + $0x7d8] sm:$0xff]  ;;  %v7110_v7 = vpack.c.bf16 %v4102_v56, %v4101_v54  ;;  %v3668_v8 = vld [vmem:[#allocation5] sm:$0xf8]  ;;  %v4158_v36 = vld [vmem:[%s10871_s5 + $0x908] sm:$0xff] }
 0x724   : > { %v3434_v34 = vpop.permute.xlu1 %3433  ;;  %6949 = vmatprep.subr.bf16.mxu1 %v6948_v9  ;;  %v7112_v9 = vpack.c.bf16 %v4120_v63, %v4119_v57  ;;  %v4103_v15 = vld [vmem:[%s10871_s5 + $0x750] sm:$0xff]  ;;  %v3699_v25 = vrot.slane %v3668_v8, 3  ;;  %v4001_v57 = vld [vmem:[%s10871_s5 + $0x420] sm:$0xff]  ;;  %v4020_v63 = vld [vmem:[%s10871_s5 + $0x4b8] sm:$0xff] }
 0x725   : > { %v4107_v19 = vld [vmem:[%s10871_s5 + $0x770] sm:$0xff] }
 0x726   : > { %7099 = vmatpush3.bf16.msra.mxu0 %v7098_v21  ;;  %v4122_v21 = vld [vmem:[%s10871_s5 + $0x7e8] sm:$0xff]  ;;  %v4175_v8 = vld [vmem:[%s10871_s5 + $0x990] sm:$0xff] }
 0x727   : > { %7101 = vmatprep.subr.bf16.mxu0 %v7100_v55  ;;  %6951 = vmatpush3.bf16.msra.mxu1 %v6950_v31  ;;  %v3425_v43 = vpop.permute.xlu0 %3424  ;;  %v3997_v55 = vld [vmem:[%s10871_s5 + $0x400] sm:$0xff] }
 0x728   : > { %v3469_v44 = vpop.permute.xlu1 %3468  ;;  %6953 = vmatprep.subr.bf16.mxu1 %v6952_v28  ;;  %v3443_v22 = vsel %vm2168_vm9, %v3440_v40, %v3425_v43  ;;  %v4124_v40 = vld [vmem:[%s10871_s5 + $0x7f8] sm:$0xff] }
 0x729   : > { %v3447_v41 = vsel %vm3444_vm10, %v3443_v22, %v3434_v34  ;;  %v3485_v60 = vsel %vm2261_vm15, %v3460_v26, %v3469_v44  ;;  %v3998_v26 = vld [vmem:[%s10871_s5 + $0x408] sm:$0xff]  ;;  %v3520_v43 = vld [vmem:[#allocation5 + $0x20] sm:$0xfe]  ;;  %v7000_v44 = vpack.c.bf16 %v4016_v32, %v4015_v30  ;;  %v7120_v22 = vpack.c.bf16 %v4124_v40, %v4123_v59 }
 0x72a   : > { %7103 = vmatpush3.bf16.msra.mxu0 %v7102_v51  ;;  %3450 = vst [vmem:[#allocation5 + $0x50] sm:$0xf] %v3447_v41  ;;  %v7116_v51 = vpack.c.bf16 %v4122_v21, %v4121_v18  ;;  %v6998_v49 = vpack.c.bf16 %v3998_v26, %v3997_v55  ;;  %v3559_v50 = vrot.slane %v3520_v43, 1  ;;  %v4108_v41 = vld [vmem:[%s10871_s5 + $0x778] sm:$0xff]  ;;  %v3596_v20 = vld [vmem:[#allocation5 + $0x20] sm:$0xfc] }
 0x72b   : > { %7105 = vmatprep.subr.bf16.mxu0 %v7104_v27  ;;  %6955 = vmatpush3.bf16.msra.mxu1 %v6954_v3  ;;  %v3478_v62 = vpop.permute.xlu0 %3477  ;;  %v4106_v27 = vld [vmem:[%s10871_s5 + $0x768] sm:$0xff]  ;;  %v4021_v18 = vld [vmem:[%s10871_s5 + $0x4c0] sm:$0xff] }
 0x72c   : > { %v3462_v4 = vpop.permute.xlu1 %3461  ;;  %6957 = vmatprep.subr.bf16.mxu1 %v6956_v45  ;;  %v3488_v2 = vsel %vm2168_vm9, %v3485_v60, %v3478_v62  ;;  %v4000_v45 = vld [vmem:[%s10871_s5 + $0x418] sm:$0xff]  ;;  %v4002_v60 = vld [vmem:[%s10871_s5 + $0x428] sm:$0xff]  ;;  %v7122_v62 = vpack.c.bf16 %v4108_v41, %v4107_v19  ;;  %v4163_v41 = vld [vmem:[%s10871_s5 + $0x930] sm:$0xff] }
 0x72d   : > { %v10050_v6 = vsel %vm3444_vm10, %v3488_v2, %v9617_v11  ;;  %v4104_v11 = vld [vmem:[%s10871_s5 + $0x758] sm:$0xff]  ;;  %v4157_v2 = vld [vmem:[%s10871_s5 + $0x900] sm:$0xff]  ;;  %v4022_v21 = vld [vmem:[%s10871_s5 + $0x4c8] sm:$0xff] }
 0x72e   : > { %7107 = vmatpush3.bf16.msra.mxu0 %v7106_v47  ;;  %3494 = vst [vmem:[#allocation5 + $0x48] sm:$0xff] %v10050_v6  ;;  %v7114_v58 = vpack.c.bf16 %v4104_v11, %v4103_v15  ;;  %v3560_v46 = vrot.slane %v10050_v6, 1  ;;  %v3636_v5 = vrot.slane %v10050_v6, 2  ;;  %v4003_v15 = vld [vmem:[%s10871_s5 + $0x430] sm:$0xff]  ;;  %v4004_v11 = vld [vmem:[%s10871_s5 + $0x438] sm:$0xff]  ;;  %v3712_v30 = vrot.slane %v10050_v6, 3 }
 0x72f   : > { %7109 = vmatprep.subr.bf16.mxu0 %v7108_v61  ;;  %6959 = vmatpush3.bf16.msra.mxu1 %v6958_v17  ;;  %v3471_v13 = vpop.permute.xlu0 %3470  ;;  %v4173_v61 = vld [vmem:[%s10871_s5 + $0x980] sm:$0xff]  ;;  %v4174_v17 = vld [vmem:[%s10871_s5 + $0x988] sm:$0xff]  ;;  %v7010_v26 = vpack.c.bf16 %v4004_v11, %v4003_v15  ;;  %v7012_v32 = vpack.c.bf16 %v4022_v21, %v4021_v18  ;;  %v4167_v11 = vld [vmem:[%s10871_s5 + $0x950] sm:$0xff] }
 0x730   : > { %v3480_v14 = vpop.permute.xlu1 %3479  ;;  %6961 = vmatprep.subr.bf16.mxu1 %v6960_v48  ;;  %v3486_v52 = vsel %vm2261_vm15, %v3462_v4, %v3471_v13  ;;  %v3561_v54 = vsel %vm3546_vm6, %v3559_v50, %v3560_v46  ;;  %v4019_v48 = vld [vmem:[%s10871_s5 + $0x4b0] sm:$0xff]  ;;  %v7156_v1 = vpack.c.bf16 %v4174_v17, %v4173_v61  ;;  %v4162_v59 = vld [vmem:[%s10871_s5 + $0x928] sm:$0xff]  ;;  %v4181_v17 = vld [vmem:[%s10871_s5 + $0x9c0] sm:$0xff] }
 0x731   : > { %v3489_v31 = vsel %vm2168_vm9, %v3486_v52, %v3480_v14  ;;  %v3602_v23 = vld [vmem:[#allocation5 + $0x50] sm:$0x3]  ;;  %v7008_v13 = vpack.c.bf16 %v4020_v63, %v4019_v48  ;;  %v7158_v52 = vpack.c.bf16 %v4158_v36, %v4157_v2  ;;  %v4026_v50 = vld [vmem:[%s10871_s5 + $0x4e8] sm:$0xff]  ;;  %v4028_v48 = vld [vmem:[%s10871_s5 + $0x4f8] sm:$0xff] }
 0x732   : > { %7111 = vmatpush3.bf16.msra.mxu0 %v7110_v7  ;;  %v3526_v0 = vld [vmem:[#allocation5 + $0x50] sm:$0x1]  ;;  %v3492_v34 = vsel %vm3444_vm10, %v3489_v31, %v9739_v10  ;;  %v3638_v28 = vrot.slane %v3602_v23, 2  ;;  %v7006_v7 = vpack.c.bf16 %v4002_v60, %v4001_v57  ;;  %v4159_v31 = vld [vmem:[%s10871_s5 + $0x910] sm:$0xff]  ;;  %v4160_v23 = vld [vmem:[%s10871_s5 + $0x918] sm:$0xff] }
 0x733   : > { %7113 = vmatprep.subr.bf16.mxu0 %v7112_v9  ;;  %6963 = vmatpush3.bf16.msra.mxu1 %v6962_v12  ;;  %v3562_v29 = vrot.slane %v3526_v0, 1  ;;  %3495 = vst [vmem:[#allocation5 + $0x70] sm:$0xf] %v3492_v34  ;;  %v4105_v10 = vld [vmem:[%s10871_s5 + $0x760] sm:$0xff]  ;;  %v4176_v9 = vld [vmem:[%s10871_s5 + $0x998] sm:$0xff]  ;;  %v4010_v60 = vld [vmem:[%s10871_s5 + $0x468] sm:$0xff] }
 0x734   : > { %6997 = vmatprep.subr.bf16.mxu1 %v6996_v16  ;;  %v3639_v3 = vsel %vm3622_vm8, %v3624_v35, %v3638_v28  ;;  %v3701_v35 = vsel %vm3698_vm11, %v3699_v25, %v3700_v33  ;;  %v7118_v42 = vpack.c.bf16 %v4106_v27, %v4105_v10  ;;  %v3678_v4 = vld [vmem:[#allocation5 + $0x50] sm:$0x7]  ;;  %v3635_v16 = vrot.slane %v3596_v20, 2  ;;  %v3672_v34 = vld [vmem:[#allocation5 + $0x20] sm:$0xf8]  ;;  %v4006_v10 = vld [vmem:[%s10871_s5 + $0x448] sm:$0xff] }
 0x735   : > { %v3563_v37 = vsel %vm3546_vm6, %v3548_v38, %v3562_v29  ;;  %4721 = vmatmul.mubr.f32.gmra.mrb[26].mxu0 %v3639_v3  ;;  %v3999_v38 = vld [vmem:[%s10871_s5 + $0x410] sm:$0xff]  ;;  %v3714_v12 = vrot.slane %v3678_v4, 3  ;;  %v7160_v55 = vpack.c.bf16 %v4176_v9, %v4175_v8  ;;  %v4177_v28 = vld [vmem:[%s10871_s5 + $0x9a0] sm:$0xff]  ;;  %v7162_v27 = vpack.c.bf16 %v4160_v23, %v4159_v31  ;;  %v4012_v9 = vld [vmem:[%s10871_s5 + $0x478] sm:$0xff] }
 0x736   : > { %4491 = vmatmul.mubr.f32.vlgmr.msra.gmra.mrb[28].mxu1 %v9967_v24  ;;  %4865 = vmatprep.mubr.f32.mxu0 %v3701_v35  ;;  %v4018_v24 = vld [vmem:[%s10871_s5 + $0x4a8] sm:$0xff]  ;;  %v7002_v47 = vpack.c.bf16 %v4000_v45, %v3999_v38  ;;  %v3637_v25 = vsel %vm3622_vm8, %v3635_v16, %v3636_v5  ;;  %v3711_v3 = vrot.slane %v3672_v34, 3  ;;  %v4179_v35 = vld [vmem:[%s10871_s5 + $0x9b0] sm:$0xff]  ;;  %v4009_v57 = vld [vmem:[%s10871_s5 + $0x460] sm:$0xff] }
 0x737   : > { %7115 = vmatpush3.bf16.msra.mxu0 %v7114_v58  ;;  %4495 = vmatprep.mubr.f32.mxu1 %v3563_v37  ;;  %v7004_v56 = vpack.c.bf16 %v4018_v24, %v4017_v53  ;;  %v4178_v58 = vld [vmem:[%s10871_s5 + $0x9a8] sm:$0xff]  ;;  %v3715_v29 = vsel %vm3698_vm11, %v3700_v33, %v3714_v12  ;;  %v4024_v33 = vld [vmem:[%s10871_s5 + $0x4d8] sm:$0xff]  ;;  %v4027_v4 = vld [vmem:[%s10871_s5 + $0x4f0] sm:$0xff]  ;;  %v7022_v2 = vpack.c.bf16 %v4010_v60, %v4009_v57 }
 0x738   : > { %7117 = vmatprep.subr.bf16.mxu0 %v7116_v51  ;;  %6999 = vmatpush3.bf16.msra.mxu1 %v6998_v49  ;;  %v4005_v51 = vld [vmem:[%s10871_s5 + $0x440] sm:$0xff]  ;;  %v7164_v37 = vpack.c.bf16 %v4178_v58, %v4177_v28  ;;  %v3713_v38 = vsel %vm3698_vm11, %v3711_v3, %v3712_v30  ;;  %v7016_v45 = vpack.c.bf16 %v4024_v33, %v4023_v39  ;;  %v4008_v53 = vld [vmem:[%s10871_s5 + $0x458] sm:$0xff]  ;;  %v4183_v36 = vld [vmem:[%s10871_s5 + $0x9d0] sm:$0xff] }
 0x739   : > { %7001 = vmatprep.subr.bf16.mxu1 %v7000_v44  ;;  %v4161_v49 = vld [vmem:[%s10871_s5 + $0x920] sm:$0xff]  ;;  %v7014_v43 = vpack.c.bf16 %v4006_v10, %v4005_v51  ;;  %v4180_v44 = vld [vmem:[%s10871_s5 + $0x9b8] sm:$0xff]  ;;  %v4011_v8 = vld [vmem:[%s10871_s5 + $0x470] sm:$0xff] }
 0x73a   : > { %4496 = vmatmul.mubr.f32.gmra.mrb[30].mxu1 %v10050_v6  ;;  %v3606_v14 = vld [vmem:[#allocation5 + $0x70] sm:$0x3]  ;;  %v7166_v24 = vpack.c.bf16 %v4162_v59, %v4161_v49  ;;  %v7168_v19 = vpack.c.bf16 %v4180_v44, %v4179_v35  ;;  %v4168_v16 = vld [vmem:[%s10871_s5 + $0x958] sm:$0xff]  ;;  %v7026_v18 = vpack.c.bf16 %v4012_v9, %v4011_v8  ;;  %v10287_v23 = vld [vmem:[#allocation5 + $0x40] sm:$0xff] }
 0x73b   : > { %7119 = vmatpush3.bf16.msra.mxu0 %v7118_v42  ;;  %4640 = vmatprep.mubr.f32.mxu1 %v3561_v54  ;;  %v3646_v0 = vrot.slane %v3606_v14, 2  ;;  %v4007_v42 = vld [vmem:[%s10871_s5 + $0x450] sm:$0xff]  ;;  %v4182_v54 = vld [vmem:[%s10871_s5 + $0x9c8] sm:$0xff]  ;;  %v4165_v20 = vld [vmem:[%s10871_s5 + $0x940] sm:$0xff]  ;;  %v7178_v34 = vpack.c.bf16 %v4168_v16, %v4167_v11  ;;  %v3557_v33 = vrot.slane %v10287_v23, 1 }
 0x73c   : > { %7121 = vmatprep.subr.bf16.mxu0 %v7120_v22  ;;  %7003 = vmatpush3.bf16.msra.mxu1 %v7002_v47  ;;  %v4025_v22 = vld [vmem:[%s10871_s5 + $0x4e0] sm:$0xff]  ;;  %v4164_v47 = vld [vmem:[%s10871_s5 + $0x938] sm:$0xff]  ;;  %v7018_v61 = vpack.c.bf16 %v4008_v53, %v4007_v42  ;;  %v7172_v63 = vpack.c.bf16 %v4182_v54, %v4181_v17  ;;  %v4078_v14 = vld [vmem:[%s10871_s5 + $0x688] sm:$0xff]  ;;  %v3633_v17 = vrot.slane %v10287_v23, 2 }
 0x73d   : > { %7005 = vmatprep.subr.bf16.mxu1 %v7004_v56  ;;  %v3647_v40 = vsel %vm3622_vm8, %v3636_v5, %v3646_v0  ;;  %v7020_v56 = vpack.c.bf16 %v4026_v50, %v4025_v22  ;;  %v4184_v5 = vld [vmem:[%s10871_s5 + $0x9d8] sm:$0xff]  ;;  %v4185_v21 = vld [vmem:[%s10871_s5 + $0x9e0] sm:$0xff]  ;;  %v4079_v58 = vld [vmem:[%s10871_s5 + $0x690] sm:$0xff] }
 0x73e   : > { %v7176_v15 = vpack.c.bf16 %v4184_v5, %v4183_v36  ;;  %v3530_v31 = vld [vmem:[#allocation5 + $0x70] sm:$0x1]  ;;  %v3529_v39 = vld [vmem:[#allocation5 + $0x68] sm:$0x1]  ;;  %v3595_v59 = vld [vmem:[#allocation5 + $0x18] sm:$0xfc] }
 0x73f   : > { %7123 = vmatpush3.bf16.msra.mxu0 %v7122_v62  ;;  %v7170_v62 = vpack.c.bf16 %v4164_v47, %v4163_v41  ;;  %v4061_v0 = vld [vmem:[%s10871_s5 + $0x600] sm:$0xff]  ;;  %v3570_v51 = vrot.slane %v3530_v31, 1  ;;  %v4188_v49 = vld [vmem:[%s10871_s5 + $0x9f8] sm:$0xff]  ;;  %v4082_v53 = vld [vmem:[%s10871_s5 + $0x6a8] sm:$0xff]  ;;  %v3632_v50 = vrot.slane %v3595_v59, 2 }
 0x740   : > { %7157 = vmatprep.subr.bf16.mxu0 %v7156_v1  ;;  %7007 = vmatpush3.bf16.msra.mxu1 %v7006_v7  ;;  %v4166_v1 = vld [vmem:[%s10871_s5 + $0x948] sm:$0xff]  ;;  %v7024_v7 = vpack.c.bf16 %v4028_v48, %v4027_v4  ;;  %v4169_v10 = vld [vmem:[%s10871_s5 + $0x960] sm:$0xff]  ;;  %v4064_v35 = vld [vmem:[%s10871_s5 + $0x618] sm:$0xff] }
 0x741   : > { %7009 = vmatprep.subr.bf16.mxu1 %v7008_v13  ;;  %v7174_v12 = vpack.c.bf16 %v4166_v1, %v4165_v20  ;;  %v4077_v13 = vld [vmem:[%s10871_s5 + $0x680] sm:$0xff]  ;;  %v4172_v41 = vld [vmem:[%s10871_s5 + $0x978] sm:$0xff]  ;;  %v4066_v60 = vld [vmem:[%s10871_s5 + $0x628] sm:$0xff]  ;;  %v3634_v1 = vsel %vm3622_vm8, %v3632_v50, %v3633_v17 }
 0x742   : > { %4866 = vmatmul.mubr.f32.vlgmr.msra.gmra.mrb[28].mxu0 %v3637_v25  ;;  %v7060_v25 = vpack.c.bf16 %v4078_v14, %v4077_v13  ;;  %v4081_v42 = vld [vmem:[%s10871_s5 + $0x6a0] sm:$0xff]  ;;  %v4084_v20 = vld [vmem:[%s10871_s5 + $0x6b8] sm:$0xff]  ;;  %v4222_v5 = vld [vmem:[%s10871_s5 + $0xb08] sm:$0xff] }
 0x743   : > { %4870 = vmatprep.mubr.f32.mxu0 %v3715_v29  ;;  %7159 = vmatpush3.bf16.msra.mxu0 %v7158_v52  ;;  %v3519_v52 = vld [vmem:[#allocation5 + $0x18] sm:$0xfe]  ;;  %v4080_v29 = vld [vmem:[%s10871_s5 + $0x698] sm:$0xff]  ;;  %v7068_v54 = vpack.c.bf16 %v4082_v53, %v4081_v42  ;;  %v4065_v57 = vld [vmem:[%s10871_s5 + $0x620] sm:$0xff] }
 0x744   : > { %7161 = vmatprep.subr.bf16.mxu0 %v7160_v55  ;;  %7011 = vmatpush3.bf16.msra.mxu1 %v7010_v26  ;;  %v4186_v55 = vld [vmem:[%s10871_s5 + $0x9e8] sm:$0xff]  ;;  %v3556_v28 = vrot.slane %v3519_v52, 1  ;;  %v3682_v48 = vld [vmem:[#allocation5 + $0x70] sm:$0x7]  ;;  %v7070_v8 = vpack.c.bf16 %v4066_v60, %v4065_v57  ;;  %v4239_v9 = vld [vmem:[%s10871_s5 + $0xb90] sm:$0xff]  ;;  %v3709_v52 = vrot.slane %v10287_v23, 3 }
 0x745   : > { %7013 = vmatprep.subr.bf16.mxu1 %v7012_v32  ;;  %v4062_v26 = vld [vmem:[%s10871_s5 + $0x608] sm:$0xff]  ;;  %v7180_v32 = vpack.c.bf16 %v4186_v55, %v4185_v21  ;;  %v4221_v36 = vld [vmem:[%s10871_s5 + $0xb00] sm:$0xff]  ;;  %v3722_v13 = vrot.slane %v3682_v48, 3  ;;  %v4067_v11 = vld [vmem:[%s10871_s5 + $0x630] sm:$0xff] }
 0x746   : > { %4871 = vmatmul.mubr.f32.gmra.mrb[30].mxu0 %v3647_v40  ;;  %v7062_v3 = vpack.c.bf16 %v4062_v26, %v4061_v0  ;;  %v7064_v40 = vpack.c.bf16 %v4080_v29, %v4079_v58  ;;  %v3558_v44 = vsel %vm3546_vm6, %v3556_v28, %v3557_v33  ;;  %v4068_v16 = vld [vmem:[%s10871_s5 + $0x638] sm:$0xff]  ;;  %v3747_v21 = vld [vmem:[#allocation5 + $0x18] sm:$0xf0]  ;;  %v4085_v55 = vld [vmem:[%s10871_s5 + $0x6c0] sm:$0xff] }
 0x747   : > { %7163 = vmatpush3.bf16.msra.mxu0 %v7162_v27  ;;  %5015 = vmatprep.mubr.f32.mxu0 %v3713_v38  ;;  %v4170_v27 = vld [vmem:[%s10871_s5 + $0x968] sm:$0xff]  ;;  %v4223_v0 = vld [vmem:[%s10871_s5 + $0xb10] sm:$0xff]  ;;  %v4224_v26 = vld [vmem:[%s10871_s5 + $0xb18] sm:$0xff]  ;;  %v7074_v58 = vpack.c.bf16 %v4068_v16, %v4067_v11 }
 0x748   : > { %7165 = vmatprep.subr.bf16.mxu0 %v7164_v37  ;;  %7015 = vmatpush3.bf16.msra.mxu1 %v7014_v43  ;;  %v4187_v37 = vld [vmem:[%s10871_s5 + $0x9f0] sm:$0xff]  ;;  %v7182_v38 = vpack.c.bf16 %v4170_v27, %v4169_v10  ;;  %v4086_v31 = vld [vmem:[%s10871_s5 + $0x6c8] sm:$0xff]  ;;  %v4241_v29 = vld [vmem:[%s10871_s5 + $0xba0] sm:$0xff]  ;;  %v3783_v10 = vrot.slane %v3747_v21, 4  ;;  %v3784_v27 = vrot.slane %v10287_v23, 4 }
 0x749   : > { %7017 = vmatprep.subr.bf16.mxu1 %v7016_v45  ;;  %v4063_v43 = vld [vmem:[%s10871_s5 + $0x610] sm:$0xff]  ;;  %v3568_v45 = vrot.slane %v3529_v39, 1  ;;  %v7184_v22 = vpack.c.bf16 %v4188_v49, %v4187_v37  ;;  %v7076_v39 = vpack.c.bf16 %v4086_v31, %v4085_v55  ;;  %v7226_v37 = vpack.c.bf16 %v4224_v26, %v4223_v0  ;;  %v4225_v59 = vld [vmem:[%s10871_s5 + $0xb20] sm:$0xff]  ;;  %v4250_v31 = vld [vmem:[%s10871_s5 + $0xbe8] sm:$0xff] }
 0x74a   : > { %v7066_v47 = vpack.c.bf16 %v4064_v35, %v4063_v43  ;;  %v4087_v6 = vld [vmem:[%s10871_s5 + $0x6d0] sm:$0xff]  ;;  %v4089_v50 = vld [vmem:[%s10871_s5 + $0x6e0] sm:$0xff]  ;;  %v4152_v23 = vld [vmem:[%s10871_s5 + $0x8d8] sm:$0xff] }
 0x74b   : > { %7167 = vmatpush3.bf16.msra.mxu0 %v7166_v24  ;;  %v3571_v24 = vsel %vm3546_vm6, %v3560_v46, %v3570_v51  ;;  %v4238_v46 = vld [vmem:[%s10871_s5 + $0xb88] sm:$0xff]  ;;  %v3723_v51 = vsel %vm3698_vm11, %v3712_v30, %v3722_v13  ;;  %v4088_v30 = vld [vmem:[%s10871_s5 + $0x6d8] sm:$0xff]  ;;  %v4071_v53 = vld [vmem:[%s10871_s5 + $0x650] sm:$0xff] }
 0x74c   : > { %7169 = vmatprep.subr.bf16.mxu0 %v7168_v19  ;;  %7019 = vmatpush3.bf16.msra.mxu1 %v7018_v61  ;;  %v4171_v19 = vld [vmem:[%s10871_s5 + $0x970] sm:$0xff]  ;;  %v4237_v61 = vld [vmem:[%s10871_s5 + $0xb80] sm:$0xff]  ;;  %v7080_v42 = vpack.c.bf16 %v4088_v30, %v4087_v6  ;;  %v4234_v30 = vld [vmem:[%s10871_s5 + $0xb68] sm:$0xff] }
 0x74d   : > { %7021 = vmatprep.subr.bf16.mxu1 %v7020_v56  ;;  %v3671_v56 = vld [vmem:[#allocation5 + $0x18] sm:$0xf8]  ;;  %v7186_v4 = vpack.c.bf16 %v4172_v41, %v4171_v19  ;;  %v4073_v60 = vld [vmem:[%s10871_s5 + $0x660] sm:$0xff]  ;;  %v4091_v48 = vld [vmem:[%s10871_s5 + $0x6f0] sm:$0xff] }
 0x74e   : > { %v4090_v19 = vld [vmem:[%s10871_s5 + $0x6e8] sm:$0xff]  ;;  %v4231_v16 = vld [vmem:[%s10871_s5 + $0xb50] sm:$0xff]  ;;  %v4249_v55 = vld [vmem:[%s10871_s5 + $0xbe0] sm:$0xff] }
 0x74f   : > { %7171 = vmatpush3.bf16.msra.mxu0 %v7170_v62  ;;  %v3569_v62 = vsel %vm3546_vm6, %v3557_v33, %v3568_v45  ;;  %v4069_v33 = vld [vmem:[%s10871_s5 + $0x640] sm:$0xff]  ;;  %v3785_v45 = vsel %vm1415_vm7, %v3783_v10, %v3784_v27  ;;  %v7084_v57 = vpack.c.bf16 %v4090_v19, %v4089_v50  ;;  %v4143_v10 = vld [vmem:[%s10871_s5 + $0x890] sm:$0xff] }
 0x750   : > { %7173 = vmatprep.subr.bf16.mxu0 %v7172_v63  ;;  %7023 = vmatpush3.bf16.msra.mxu1 %v7022_v2  ;;  %v4083_v63 = vld [vmem:[%s10871_s5 + $0x6b0] sm:$0xff]  ;;  %v7220_v2 = vpack.c.bf16 %v4238_v46, %v4237_v61  ;;  %v4228_v61 = vld [vmem:[%s10871_s5 + $0xb38] sm:$0xff]  ;;  %v3594_v26 = vld [vmem:[#allocation5 + $0x10] sm:$0xfc] }
 0x751   : > { %7025 = vmatprep.subr.bf16.mxu1 %v7024_v7  ;;  %v3708_v7 = vrot.slane %v3671_v56, 3  ;;  %v7072_v14 = vpack.c.bf16 %v4084_v20, %v4083_v63  ;;  %v4246_v56 = vld [vmem:[%s10871_s5 + $0xbc8] sm:$0xff]  ;;  %v4092_v63 = vld [vmem:[%s10871_s5 + $0x6f8] sm:$0xff]  ;;  %v4233_v6 = vld [vmem:[%s10871_s5 + $0xb60] sm:$0xff] }
 0x752   : > { %v3670_v19 = vld [vmem:[#allocation5 + $0x10] sm:$0xf8] }
 0x753   : > { %7175 = vmatpush3.bf16.msra.mxu0 %v7174_v12  ;;  %v4240_v12 = vld [vmem:[%s10871_s5 + $0xb98] sm:$0xff] }
 0x754   : > { %7177 = vmatprep.subr.bf16.mxu0 %v7176_v15  ;;  %7027 = vmatpush3.bf16.msra.mxu1 %v7026_v18  ;;  %v3681_v15 = vld [vmem:[#allocation5 + $0x68] sm:$0x7]  ;;  %v7222_v18 = vpack.c.bf16 %v4222_v5, %v4221_v36  ;;  %v4247_v5 = vld [vmem:[%s10871_s5 + $0xbd0] sm:$0xff] }
 0x755   : > { %7061 = vmatprep.subr.bf16.mxu1 %v7060_v25  ;;  %v7224_v25 = vpack.c.bf16 %v4240_v12, %v4239_v9  ;;  %v3720_v28 = vrot.slane %v3681_v15, 3  ;;  %v4075_v9 = vld [vmem:[%s10871_s5 + $0x670] sm:$0xff]  ;;  %v4076_v12 = vld [vmem:[%s10871_s5 + $0x678] sm:$0xff]  ;;  %v4142_v15 = vld [vmem:[%s10871_s5 + $0x888] sm:$0xff] }
 0x756   : > { %v7090_v21 = vpack.c.bf16 %v4076_v12, %v4075_v9 }
 0x757   : > { %7179 = vmatpush3.bf16.msra.mxu0 %v7178_v34  ;;  %4641 = vmatmul.mubr.f32.vlgmr.msra.gmra.mrb[32].mxu1 %v3558_v44  ;;  %v3710_v34 = vsel %vm3698_vm11, %v3708_v7, %v3709_v52  ;;  %v3721_v43 = vsel %vm3698_vm11, %v3709_v52, %v3720_v28  ;;  %v4243_v44 = vld [vmem:[%s10871_s5 + $0xbb0] sm:$0xff]  ;;  %v4248_v7 = vld [vmem:[%s10871_s5 + $0xbd8] sm:$0xff]  ;;  %v4125_v28 = vld [vmem:[%s10871_s5 + $0x800] sm:$0xff] }
 0x758   : > { %7181 = vmatprep.subr.bf16.mxu0 %v7180_v32  ;;  %4645 = vmatprep.mubr.f32.mxu1 %v3571_v24  ;;  %v4242_v32 = vld [vmem:[%s10871_s5 + $0xba8] sm:$0xff]  ;;  %v4072_v24 = vld [vmem:[%s10871_s5 + $0x658] sm:$0xff]  ;;  %v7240_v11 = vpack.c.bf16 %v4248_v7, %v4247_v5 }
 0x759   : > { %7063 = vmatpush3.bf16.msra.mxu1 %v7062_v3  ;;  %v4070_v3 = vld [vmem:[%s10871_s5 + $0x648] sm:$0xff]  ;;  %v7228_v49 = vpack.c.bf16 %v4242_v32, %v4241_v29  ;;  %v7082_v46 = vpack.c.bf16 %v4072_v24, %v4071_v53  ;;  %v4232_v52 = vld [vmem:[%s10871_s5 + $0xb58] sm:$0xff] }
 0x75a   : > { %7065 = vmatprep.subr.bf16.mxu1 %v7064_v40  ;;  %v4226_v40 = vld [vmem:[%s10871_s5 + $0xb28] sm:$0xff]  ;;  %v7078_v35 = vpack.c.bf16 %v4070_v3, %v4069_v33  ;;  %v7242_v32 = vpack.c.bf16 %v4232_v52, %v4231_v16  ;;  %v7244_v3 = vpack.c.bf16 %v4250_v31, %v4249_v55  ;;  %v4148_v5 = vld [vmem:[%s10871_s5 + $0x8b8] sm:$0xff] }
 0x75b   : > { %7183 = vmatpush3.bf16.msra.mxu0 %v7182_v38  ;;  %4646 = vmatmul.mubr.f32.gmra.mrb[34].mxu1 %v3569_v62  ;;  %v4244_v38 = vld [vmem:[%s10871_s5 + $0xbb8] sm:$0xff]  ;;  %v4074_v62 = vld [vmem:[%s10871_s5 + $0x668] sm:$0xff] }
 0x75c   : > { %7185 = vmatprep.subr.bf16.mxu0 %v7184_v22  ;;  %4790 = vmatprep.mubr.f32.mxu1 %v3634_v1  ;;  %v7230_v22 = vpack.c.bf16 %v4226_v40, %v4225_v59  ;;  %v7232_v41 = vpack.c.bf16 %v4244_v38, %v4243_v44  ;;  %v4229_v1 = vld [vmem:[%s10871_s5 + $0xb40] sm:$0xff]  ;;  %v7086_v36 = vpack.c.bf16 %v4074_v62, %v4073_v60  ;;  %v3629_v59 = vrot.slane %v3594_v26, 2  ;;  %v4236_v60 = vld [vmem:[%s10871_s5 + $0xb78] sm:$0xff]  ;;  %v4150_v55 = vld [vmem:[%s10871_s5 + $0x8c8] sm:$0xff] }
 0x75d   : > { %7067 = vmatpush3.bf16.msra.mxu1 %v7066_v47  ;;  %v4227_v47 = vld [vmem:[%s10871_s5 + $0xb30] sm:$0xff]  ;;  %v4132_v16 = vld [vmem:[%s10871_s5 + $0x838] sm:$0xff] }
 0x75e   : > { %7069 = vmatprep.subr.bf16.mxu1 %v7068_v54  ;;  %v4245_v54 = vld [vmem:[%s10871_s5 + $0xbc0] sm:$0xff] }
 0x75f   : > { %7187 = vmatpush3.bf16.msra.mxu0 %v7186_v4  ;;  %v7234_v4 = vpack.c.bf16 %v4228_v61, %v4227_v47  ;;  %v7236_v20 = vpack.c.bf16 %v4246_v56, %v4245_v54  ;;  %v4146_v47 = vld [vmem:[%s10871_s5 + $0x8a8] sm:$0xff] }
 0x760   : > { %7221 = vmatprep.subr.bf16.mxu0 %v7220_v2  ;;  %v4230_v2 = vld [vmem:[%s10871_s5 + $0xb48] sm:$0xff] }
 0x761   : > { %7071 = vmatpush3.bf16.msra.mxu1 %v7070_v8  ;;  %v7088_v8 = vpack.c.bf16 %v4092_v63, %v4091_v48  ;;  %v7238_v13 = vpack.c.bf16 %v4230_v2, %v4229_v1  ;;  %v4130_v63 = vld [vmem:[%s10871_s5 + $0x828] sm:$0xff]  ;;  %v3757_v2 = vld [vmem:[#allocation5 + $0x68] sm:$0xf] }
 0x762   : > { %5016 = vmatmul.mubr.f32.vlgmr.msra.gmra.mrb[32].mxu0 %v3710_v34  ;;  %7073 = vmatprep.subr.bf16.mxu1 %v7072_v14  ;;  %v4141_v14 = vld [vmem:[%s10871_s5 + $0x880] sm:$0xff] }
 0x763   : > { %5020 = vmatprep.mubr.f32.mxu0 %v3723_v51  ;;  %7223 = vmatpush3.bf16.msra.mxu0 %v7222_v18  ;;  %v10495_v18 = vld [vmem:[#allocation5 + $0x38] sm:$0xff]  ;;  %v7124_v34 = vpack.c.bf16 %v4142_v15, %v4141_v14  ;;  %v3756_v15 = vld [vmem:[#allocation5 + $0x60] sm:$0xf] }
 0x764   : > { %7225 = vmatprep.subr.bf16.mxu0 %v7224_v25  ;;  %v3605_v25 = vld [vmem:[#allocation5 + $0x68] sm:$0x3]  ;;  %v3630_v51 = vrot.slane %v10495_v18, 2  ;;  %v3706_v56 = vrot.slane %v10495_v18, 3  ;;  %v3781_v9 = vrot.slane %v10495_v18, 4 }
 0x765   : > { %7075 = vmatpush3.bf16.msra.mxu1 %v7074_v58  ;;  %v4126_v58 = vld [vmem:[%s10871_s5 + $0x808] sm:$0xff] }
 0x766   : > { %5021 = vmatmul.mubr.f32.gmra.mrb[34].mxu0 %v3721_v43  ;;  %7077 = vmatprep.subr.bf16.mxu1 %v7076_v39  ;;  %v4144_v39 = vld [vmem:[%s10871_s5 + $0x898] sm:$0xff]  ;;  %v7126_v40 = vpack.c.bf16 %v4126_v58, %v4125_v28  ;;  %v4251_v43 = vld [vmem:[%s10871_s5 + $0xbf0] sm:$0xff]  ;;  %v3631_v24 = vsel %vm3622_vm8, %v3629_v59, %v3630_v51  ;;  %v4133_v28 = vld [vmem:[%s10871_s5 + $0x840] sm:$0xff] }
 0x767   : > { %7227 = vmatpush3.bf16.msra.mxu0 %v7226_v37  ;;  %5165 = vmatprep.mubr.f32.mxu0 %v3785_v45  ;;  %v3644_v37 = vrot.slane %v3605_v25, 2  ;;  %v7128_v38 = vpack.c.bf16 %v4144_v39, %v4143_v10  ;;  %v4127_v45 = vld [vmem:[%s10871_s5 + $0x810] sm:$0xff]  ;;  %v3793_v25 = vrot.slane %v3756_v15, 4  ;;  %v4134_v58 = vld [vmem:[%s10871_s5 + $0x848] sm:$0xff]  ;;  %v4136_v39 = vld [vmem:[%s10871_s5 + $0x858] sm:$0xff] }
 0x768   : > { %7229 = vmatprep.subr.bf16.mxu0 %v7228_v49  ;;  %v3604_v49 = vld [vmem:[#allocation5 + $0x60] sm:$0x3]  ;;  %v4138_v59 = vld [vmem:[%s10871_s5 + $0x868] sm:$0xff] }
 0x769   : > { %7079 = vmatpush3.bf16.msra.mxu1 %v7078_v35  ;;  %v4252_v35 = vld [vmem:[%s10871_s5 + $0xbf8] sm:$0xff]  ;;  %v3642_v50 = vrot.slane %v3604_v49, 2  ;;  %v4135_v10 = vld [vmem:[%s10871_s5 + $0x850] sm:$0xff]  ;;  %v4137_v49 = vld [vmem:[%s10871_s5 + $0x860] sm:$0xff] }
 0x76a   : > { %7081 = vmatprep.subr.bf16.mxu1 %v7080_v42  ;;  %v4128_v42 = vld [vmem:[%s10871_s5 + $0x818] sm:$0xff]  ;;  %v7248_v54 = vpack.c.bf16 %v4252_v35, %v4251_v43  ;;  %v7150_v35 = vpack.c.bf16 %v4138_v59, %v4137_v49  ;;  %v4210_v15 = vld [vmem:[%s10871_s5 + $0xaa8] sm:$0xff]  ;;  %v4199_v59 = vld [vmem:[%s10871_s5 + $0xa50] sm:$0xff] }
 0x76b   : > { %7231 = vmatpush3.bf16.msra.mxu0 %v7230_v22  ;;  %v7246_v22 = vpack.c.bf16 %v4234_v30, %v4233_v6  ;;  %v7130_v62 = vpack.c.bf16 %v4128_v42, %v4127_v45  ;;  %v7146_v6 = vpack.c.bf16 %v4136_v39, %v4135_v10  ;;  %v4156_v43 = vld [vmem:[%s10871_s5 + $0x8f8] sm:$0xff]  ;;  %v4205_v42 = vld [vmem:[%s10871_s5 + $0xa80] sm:$0xff] }
 0x76c   : > { %7233 = vmatprep.subr.bf16.mxu0 %v7232_v41  ;;  %v4145_v41 = vld [vmem:[%s10871_s5 + $0x8a0] sm:$0xff]  ;;  %v4140_v45 = vld [vmem:[%s10871_s5 + $0x878] sm:$0xff] }
 0x76d   : > { %7083 = vmatpush3.bf16.msra.mxu1 %v7082_v46  ;;  %v3645_v46 = vsel %vm3622_vm8, %v3633_v17, %v3644_v37  ;;  %v7132_v48 = vpack.c.bf16 %v4146_v47, %v4145_v41  ;;  %v4129_v17 = vld [vmem:[%s10871_s5 + $0x820] sm:$0xff]  ;;  %v4154_v37 = vld [vmem:[%s10871_s5 + $0x8e8] sm:$0xff] }
 0x76e   : > { %7085 = vmatprep.subr.bf16.mxu1 %v7084_v57  ;;  %v4235_v57 = vld [vmem:[%s10871_s5 + $0xb70] sm:$0xff]  ;;  %v7134_v12 = vpack.c.bf16 %v4130_v63, %v4129_v17  ;;  %v10637_v41 = vld [vmem:[#allocation5 + $0x30] sm:$0xff]  ;;  %v3679_v63 = vld [vmem:[#allocation5 + $0x58] sm:$0x7] }
 0x76f   : > { %7235 = vmatpush3.bf16.msra.mxu0 %v7234_v4  ;;  %v3705_v4 = vrot.slane %v3670_v19, 3  ;;  %v7250_v1 = vpack.c.bf16 %v4236_v60, %v4235_v57  ;;  %v4197_v39 = vld [vmem:[%s10871_s5 + $0xa40] sm:$0xff] }
 0x770   : > { %7237 = vmatprep.subr.bf16.mxu0 %v7236_v20  ;;  %v3643_v20 = vsel %vm3622_vm8, %v3630_v51, %v3642_v50  ;;  %v3680_v50 = vld [vmem:[#allocation5 + $0x60] sm:$0x7] }
 0x771   : > { %7087 = vmatpush3.bf16.msra.mxu1 %v7086_v36  ;;  %v5595_v0 = vpop.f32.mrb[16].mxu0  ;;  %v4147_v36 = vld [vmem:[%s10871_s5 + $0x8b0] sm:$0xff]  ;;  %v3707_v7 = vsel %vm3698_vm11, %v3705_v4, %v3706_v56  ;;  %v4208_v4 = vld [vmem:[%s10871_s5 + $0xa98] sm:$0xff]  ;;  %v3718_v17 = vrot.slane %v3680_v50, 3 }
 0x772   : > { %7089 = vmatprep.subr.bf16.mxu1 %v7088_v8  ;;  %v5596_v29 = vpop.f32.mrb[17].mxu0  ;;  %v3746_v8 = vld [vmem:[#allocation5 + $0x10] sm:$0xf0]  ;;  %v7136_v14 = vpack.c.bf16 %v4148_v5, %v4147_v36  ;;  %v4191_v5 = vld [vmem:[%s10871_s5 + $0xa10] sm:$0xff] }
 0x773   : > { %7239 = vmatpush3.bf16.msra.mxu0 %v7238_v13  ;;  %v10516_v33 = vadd.f32 %v5596_v29, %v5595_v0  ;;  %v3795_v13 = vrot.slane %v3757_v2, 4  ;;  %v3780_v52 = vrot.slane %v3746_v8, 4  ;;  %v4151_v29 = vld [vmem:[%s10871_s5 + $0x8d0] sm:$0xff] }
 0x774   : > { %7241 = vmatprep.subr.bf16.mxu0 %v7240_v11  ;;  %v4131_v11 = vld [vmem:[%s10871_s5 + $0x830] sm:$0xff]  ;;  %v7144_v51 = vpack.c.bf16 %v4152_v23, %v4151_v29  ;;  %v4196_v23 = vld [vmem:[%s10871_s5 + $0xa38] sm:$0xff] }
 0x775   : > { %7091 = vmatpush3.bf16.msra.mxu1 %v7090_v21  ;;  %v4149_v21 = vld [vmem:[%s10871_s5 + $0x8c0] sm:$0xff]  ;;  %v3782_v31 = vsel %vm1415_vm7, %v3780_v52, %v3781_v9  ;;  %v7138_v0 = vpack.c.bf16 %v4132_v16, %v4131_v11  ;;  %v3796_v26 = vsel %vm1415_vm7, %v3784_v27, %v3795_v13  ;;  %v3794_v27 = vsel %vm1415_vm7, %v3781_v9, %v3793_v25  ;;  %v3745_v13 = vld [vmem:[#allocation5 + $0x8] sm:$0xf0]  ;;  %v4195_v29 = vld [vmem:[%s10871_s5 + $0xa30] sm:$0xff] }
 0x776   : > { %v5598_v44 = vpop.f32.mrb[18].mxu0  ;;  %7125 = vmatprep.subr.bf16.mxu1 %v7124_v34  ;;  %v7140_v34 = vpack.c.bf16 %v4150_v55, %v4149_v21  ;;  %v3719_v16 = vsel %vm3698_vm11, %v3706_v56, %v3718_v17  ;;  %v3778_v52 = vrot.slane %v10637_v41, 4  ;;  %v3777_v55 = vrot.slane %v3745_v13, 4  ;;  %v4193_v25 = vld [vmem:[%s10871_s5 + $0xa20] sm:$0xff]  ;;  %v4211_v56 = vld [vmem:[%s10871_s5 + $0xab0] sm:$0xff] }
 0x777   : > { %v5599_v53 = vpop.f32.mrb[19].mxu0  ;;  %7243 = vmatpush3.bf16.msra.mxu0 %v7242_v32  ;;  %v7142_v32 = vpack.c.bf16 %v4134_v58, %v4133_v28  ;;  %v3748_v13 = vld [vmem:[#allocation5 + $0x20] sm:$0xf0] }
 0x778   : > { %v10543_v61 = vadd.f32 %v5599_v53, %v5598_v44  ;;  %4791 = vmatmul.mubr.f32.vlgmr.msra.gmra.mrb[36].mxu1 %v3631_v24  ;;  %7245 = vmatprep.subr.bf16.mxu0 %v7244_v3  ;;  %v4153_v3 = vld [vmem:[%s10871_s5 + $0x8e0] sm:$0xff]  ;;  %v4206_v53 = vld [vmem:[%s10871_s5 + $0xa88] sm:$0xff]  ;;  %v3669_v24 = vld [vmem:[#allocation5 + $0x8] sm:$0xf8] }
 0x779   : > { %4795 = vmatprep.mubr.f32.mxu1 %v3645_v46  ;;  %7127 = vmatpush3.bf16.msra.mxu1 %v7126_v40  ;;  %v7148_v30 = vpack.c.bf16 %v4154_v37, %v4153_v3  ;;  %v4155_v40 = vld [vmem:[%s10871_s5 + $0x8f0] sm:$0xff]  ;;  %v7188_v47 = vpack.c.bf16 %v4206_v53, %v4205_v42  ;;  %v4189_v46 = vld [vmem:[%s10871_s5 + $0xa00] sm:$0xff]  ;;  %v3702_v60 = vrot.slane %v3669_v24, 3  ;;  %v4198_v3 = vld [vmem:[%s10871_s5 + $0xa48] sm:$0xff] }
 0x77a   : > { %7129 = vmatprep.subr.bf16.mxu1 %v7128_v38  ;;  %v7152_v44 = vpack.c.bf16 %v4156_v43, %v4155_v40  ;;  %v4139_v38 = vld [vmem:[%s10871_s5 + $0x870] sm:$0xff]  ;;  %v4200_v40 = vld [vmem:[%s10871_s5 + $0xa58] sm:$0xff]  ;;  %v4217_v43 = vld [vmem:[%s10871_s5 + $0xae0] sm:$0xff] }
 0x77b   : > { %7247 = vmatpush3.bf16.msra.mxu0 %v7246_v22  ;;  %v7154_v22 = vpack.c.bf16 %v4140_v45, %v4139_v38  ;;  %v4215_v37 = vld [vmem:[%s10871_s5 + $0xad0] sm:$0xff]  ;;  %v4201_v45 = vld [vmem:[%s10871_s5 + $0xa60] sm:$0xff]  ;;  %v4202_v42 = vld [vmem:[%s10871_s5 + $0xa68] sm:$0xff] }
 0x77c   : > { %4796 = vmatmul.mubr.f32.gmra.mrb[38].mxu1 %v3643_v20  ;;  %7249 = vmatprep.subr.bf16.mxu0 %v7248_v54  ;;  %v4190_v54 = vld [vmem:[%s10871_s5 + $0xa08] sm:$0xff]  ;;  %v3703_v20 = vrot.slane %v10637_v41, 3  ;;  %v4219_v53 = vld [vmem:[%s10871_s5 + $0xaf0] sm:$0xff]  ;;  %v4220_v24 = vld [vmem:[%s10871_s5 + $0xaf8] sm:$0xff] }
 0x77d   : > { %7131 = vmatpush3.bf16.msra.mxu1 %v7130_v62  ;;  %4940 = vmatprep.mubr.f32.mxu1 %v3707_v7  ;;  %v4207_v62 = vld [vmem:[%s10871_s5 + $0xa90] sm:$0xff]  ;;  %v4192_v7 = vld [vmem:[%s10871_s5 + $0xa18] sm:$0xff]  ;;  %v7216_v50 = vpack.c.bf16 %v4220_v24, %v4219_v53 }
 0x77e   : > { %7133 = vmatprep.subr.bf16.mxu1 %v7132_v48  ;;  %v7192_v36 = vpack.c.bf16 %v4208_v4, %v4207_v62  ;;  %v3704_v9 = vsel %vm3698_vm11, %v3702_v60, %v3703_v20  ;;  %v7194_v21 = vpack.c.bf16 %v4192_v7, %v4191_v5  ;;  %v3755_v62 = vld [vmem:[#allocation5 + $0x58] sm:$0xf]  ;;  %v3744_v4 = vld [vmem:[#allocation5] sm:$0xf0]  ;;  %v3753_v7 = vld [vmem:[#allocation5 + $0x48] sm:$0xff] }
 0x77f   : > { %7251 = vmatpush3.bf16.msra.mxu0 %v7250_v1  ;;  %v7190_v1 = vpack.c.bf16 %v4190_v54, %v4189_v46  ;;  %v4253_v46 = vld [vmem:[%s10871_s5 + $0xc00] sm:$0xff]  ;;  %v4254_v54 = vld [vmem:[%s10871_s5 + $0xc08] sm:$0xff]  ;;  %v3774_v5 = vrot.slane %v3744_v4, 4 }
 0x780   : > { %v7252_v17 = vpack.c.bf16 %v4254_v54, %v4253_v46 }
 0x781   : > { %7135 = vmatpush3.bf16.msra.mxu1 %v7134_v12  ;;  %v3716_v12 = vrot.slane %v3679_v63, 3 }
 0x782   : > { %5166 = vmatmul.mubr.f32.vlgmr.msra.gmra.mrb[36].mxu0 %v3782_v31  ;;  %7137 = vmatprep.subr.bf16.mxu1 %v7136_v14  ;;  %v4209_v14 = vld [vmem:[%s10871_s5 + $0xaa0] sm:$0xff] }
 0x783   : > { %5170 = vmatprep.mubr.f32.mxu0 %v3796_v26  ;;  %v7196_v31 = vpack.c.bf16 %v4210_v15, %v4209_v14  ;;  %v3717_v18 = vsel %vm3698_vm11, %v3703_v20, %v3716_v12  ;;  %v4212_v26 = vld [vmem:[%s10871_s5 + $0xab8] sm:$0xff]  ;;  %v4255_v20 = vld [vmem:[%s10871_s5 + $0xc10] sm:$0xff]  ;;  %v4257_v14 = vld [vmem:[%s10871_s5 + $0xc20] sm:$0xff] }
 0x784   : > { %v7200_v58 = vpack.c.bf16 %v4212_v26, %v4211_v56  ;;  %v4258_v15 = vld [vmem:[%s10871_s5 + $0xc28] sm:$0xff]  ;;  %v4261_v56 = vld [vmem:[%s10871_s5 + $0xc40] sm:$0xff] }
 0x785   : > { %7139 = vmatpush3.bf16.msra.mxu1 %v7138_v0  ;;  %v4194_v0 = vld [vmem:[%s10871_s5 + $0xa28] sm:$0xff] }
 0x786   : > { %5171 = vmatmul.mubr.f32.gmra.mrb[38].mxu0 %v3794_v27  ;;  %7141 = vmatprep.subr.bf16.mxu1 %v7140_v34  ;;  %v3779_v34 = vsel %vm1415_vm7, %v3777_v55, %v3778_v52  ;;  %v7198_v28 = vpack.c.bf16 %v4194_v0, %v4193_v25  ;;  %v4213_v27 = vld [vmem:[%s10871_s5 + $0xac0] sm:$0xff]  ;;  %v3786_v55 = vrot.slane %v3748_v13, 4  ;;  %v4259_v0 = vld [vmem:[%s10871_s5 + $0xc30] sm:$0xff]  ;;  %v4262_v26 = vld [vmem:[%s10871_s5 + $0xc48] sm:$0xff] }
 0x789   : > { %7143 = vmatpush3.bf16.msra.mxu1 %v7142_v32  ;;  %v4214_v32 = vld [vmem:[%s10871_s5 + $0xac8] sm:$0xff] }
 0x78a   : > { %7145 = vmatprep.subr.bf16.mxu1 %v7144_v51  ;;  %v7202_v51 = vpack.c.bf16 %v4196_v23, %v4195_v29  ;;  %v7204_v10 = vpack.c.bf16 %v4214_v32, %v4213_v27  ;;  %v4265_v23 = vld [vmem:[%s10871_s5 + $0xc60] sm:$0xff]  ;;  %v4266_v27 = vld [vmem:[%s10871_s5 + $0xc68] sm:$0xff] }
 0x78b   : > { %v7276_v32 = vpack.c.bf16 %v4266_v27, %v4265_v23 }
 0x78d   : > { %7147 = vmatpush3.bf16.msra.mxu1 %v7146_v6  ;;  %v4216_v6 = vld [vmem:[%s10871_s5 + $0xad8] sm:$0xff] }
 0x78e   : > { %7149 = vmatprep.subr.bf16.mxu1 %v7148_v30  ;;  %v7206_v30 = vpack.c.bf16 %v4198_v3, %v4197_v39  ;;  %v7208_v49 = vpack.c.bf16 %v4216_v6, %v4215_v37  ;;  %v3758_v3 = vld [vmem:[#allocation5 + $0x70] sm:$0xf] }
 0x78f   : > { %v3797_v37 = vrot.slane %v3758_v3, 4 }
 0x791   : > { %7151 = vmatpush3.bf16.msra.mxu1 %v7150_v35  ;;  %v4218_v35 = vld [vmem:[%s10871_s5 + $0xae8] sm:$0xff] }
 0x792   : > { %v5671_v19 = vpop.f32.mrb[20].mxu0  ;;  %7153 = vmatprep.subr.bf16.mxu1 %v7152_v44  ;;  %v7210_v44 = vpack.c.bf16 %v4200_v40, %v4199_v59  ;;  %v7212_v38 = vpack.c.bf16 %v4218_v35, %v4217_v43 }
 0x793   : > { %v5672_v57 = vpop.f32.mrb[21].mxu0 }
 0x794   : > { %v10651_v48 = vadd.f32 %v5672_v57, %v5671_v19  ;;  %v4203_v19 = vld [vmem:[%s10871_s5 + $0xa70] sm:$0xff]  ;;  %v3749_v57 = vld [vmem:[#allocation5 + $0x28] sm:$0xff] }
 0x795   : > { %7155 = vmatpush3.bf16.msra.mxu1 %v7154_v22  ;;  %v7214_v22 = vpack.c.bf16 %v4202_v42, %v4201_v45  ;;  %v3775_v63 = vrot.slane %v3749_v57, 4 }
 0x796   : > { %v5674_v2 = vpop.f32.mrb[22].mxu0  ;;  %7189 = vmatprep.subr.bf16.mxu1 %v7188_v47  ;;  %v4204_v47 = vld [vmem:[%s10871_s5 + $0xa78] sm:$0xff] }
 0x797   : > { %v5675_v8 = vpop.f32.mrb[23].mxu0  ;;  %v7218_v60 = vpack.c.bf16 %v4204_v47, %v4203_v19 }
 0x798   : > { %v10667_v11 = vadd.f32 %v5675_v8, %v5674_v2  ;;  %4941 = vmatmul.mubr.f32.vlgmr.msra.gmra.mrb[40].mxu1 %v3704_v9  ;;  %v3791_v2 = vrot.slane %v3755_v62, 4  ;;  %v3776_v9 = vsel %vm1415_vm7, %v3774_v5, %v3775_v63 }
 0x799   : > { %4945 = vmatprep.mubr.f32.mxu1 %v3719_v16  ;;  %7191 = vmatpush3.bf16.msra.mxu1 %v7190_v1  ;;  %v4256_v1 = vld [vmem:[%s10871_s5 + $0xc18] sm:$0xff] }
 0x79a   : > { %7193 = vmatprep.subr.bf16.mxu1 %v7192_v36  ;;  %v3754_v36 = vld [vmem:[#allocation5 + $0x50] sm:$0xf]  ;;  %v7256_v8 = vpack.c.bf16 %v4256_v1, %v4255_v20  ;;  %v3792_v16 = vsel %vm1415_vm7, %v3778_v52, %v3791_v2 }
 0x79b   : > { %v3789_v12 = vrot.slane %v3754_v36, 4 }
 0x79c   : > { %4946 = vmatmul.mubr.f32.gmra.mrb[42].mxu1 %v3717_v18  ;;  %v4260_v18 = vld [vmem:[%s10871_s5 + $0xc38] sm:$0xff] }
 0x79d   : > { %7195 = vmatpush3.bf16.msra.mxu1 %v7194_v21  ;;  %5090 = vmatprep.mubr.f32.mxu1 %v3779_v34  ;;  %v3787_v21 = vrot.slane %v3753_v7, 4  ;;  %v3790_v25 = vsel %vm1415_vm7, %v3775_v63, %v3789_v12  ;;  %v7264_v52 = vpack.c.bf16 %v4260_v18, %v4259_v0  ;;  %v7268_v34 = vpack.c.bf16 %v4262_v26, %v4261_v56 }
 0x79e   : > { %7197 = vmatprep.subr.bf16.mxu1 %v7196_v31  ;;  %v7260_v31 = vpack.c.bf16 %v4258_v15, %v4257_v14 }
 0x79f   : > { %v3788_v41 = vsel %vm1415_vm7, %v3786_v55, %v3787_v21  ;;  %v3798_v6 = vsel %vm1415_vm7, %v3787_v21, %v3797_v37 }
 0x7a1   : > { %7199 = vmatpush3.bf16.msra.mxu1 %v7198_v28  ;;  %v4263_v28 = vld [vmem:[%s10871_s5 + $0xc50] sm:$0xff] }
 0x7a2   : > { %7201 = vmatprep.subr.bf16.mxu1 %v7200_v58  ;;  %v4264_v58 = vld [vmem:[%s10871_s5 + $0xc58] sm:$0xff] }
 0x7a3   : > { %v7272_v29 = vpack.c.bf16 %v4264_v58, %v4263_v28 }
 0x7a5   : > { %7203 = vmatpush3.bf16.msra.mxu1 %v7202_v51  ;;  %v4267_v51 = vld [vmem:[%s10871_s5 + $0xc70] sm:$0xff] }
 0x7a6   : > { %7205 = vmatprep.subr.bf16.mxu1 %v7204_v10  ;;  %v4268_v10 = vld [vmem:[%s10871_s5 + $0xc78] sm:$0xff] }
 0x7a7   : > { %v7280_v39 = vpack.c.bf16 %v4268_v10, %v4267_v51 }
 0x7a9   : > { %7207 = vmatpush3.bf16.msra.mxu1 %v7206_v30 }
 0x7aa   : > { %7209 = vmatprep.subr.bf16.mxu1 %v7208_v49  ;;  %v5397_v49 = vld [vmem:[%s10872_s6] ss:$0 sm:$0xff] }
 0x7ad   : > { %7211 = vmatpush3.bf16.msra.mxu1 %v7210_v44 }
 0x7ae   : > { %7213 = vmatprep.subr.bf16.mxu1 %v7212_v38 }
 0x7b1   : > { %7215 = vmatpush3.bf16.msra.mxu1 %v7214_v22 }
 0x7b2   : > { %7217 = vmatprep.subr.bf16.mxu1 %v7216_v50 }
 0x7b5   : > { %7219 = vmatpush3.bf16.msra.mxu1 %v7218_v60 }
 0x7b6   : > { %7253 = vmatprep.subr.bf16.mxu1 %v7252_v17 }
 0x7b8   : > { %5091 = vmatmul.mubr.f32.vlgmr.msra.gmra.mrb[44].mxu1 %v3776_v9 }
 0x7b9   : > { %5095 = vmatprep.mubr.f32.mxu1 %v3792_v16  ;;  %7255 = vmatpush3.bf16.msra.mxu1 %v7252_v17 }
 0x7ba   : > { %7257 = vmatprep.subr.bf16.mxu1 %v7256_v8 }
 0x7bc   : > { %5096 = vmatmul.mubr.f32.gmra.mrb[46].mxu1 %v3790_v25 }
 0x7bd   : > { %7259 = vmatpush3.bf16.msra.mxu1 %v7256_v8  ;;  %6259 = vmatprep.mubr.f32.mxu1 %v3788_v41 }
 0x7be   : > { %7261 = vmatprep.subr.bf16.mxu1 %v7260_v31 }
 0x7c1   : > { %7263 = vmatpush3.bf16.msra.mxu1 %v7260_v31 }
 0x7c2   : > { %7265 = vmatprep.subr.bf16.mxu1 %v7264_v52 }
 0x7c5   : > { %7267 = vmatpush3.bf16.msra.mxu1 %v7264_v52 }
 0x7c6   : > { %7269 = vmatprep.subr.bf16.mxu1 %v7268_v34 }
 0x7c9   : > { %7271 = vmatpush3.bf16.msra.mxu1 %v7268_v34 }
 0x7ca   : > { %7273 = vmatprep.subr.bf16.mxu1 %v7272_v29 }
 0x7cd   : > { %7275 = vmatpush3.bf16.msra.mxu1 %v7272_v29 }
 0x7ce   : > { %7277 = vmatprep.subr.bf16.mxu1 %v7276_v32 }
 0x7d1   : > { %7279 = vmatpush3.bf16.msra.mxu1 %v7276_v32 }
 0x7d2   : > { %7281 = vmatprep.subr.bf16.mxu1 %v7280_v39 }
 0x7d5   : > { %7283 = vmatpush3.bf16.msra.mxu1 %v7280_v39 }
 0x7d8   : > { %6260 = vmatmul.mubr.f32.vlgmr.msra.gmra.mrb[48].mxu1 %v3798_v6 }
 0x7e8   : > { %v5557_v30 = vpop.f32.mrb[24].mxu1 }
 0x7e9   : > { %v5558_v59 = vpop.f32.mrb[25].mxu1 }
 0x7ea   : > { %v5559_v40 = vadd.f32 %v5558_v59, %v5557_v30 }
 0x7ec   : > { %v4343_v43 = vadd.f32 %v5559_v40, %v5397_v49 }
 0x7ee   : > { %v5560_v35 = vpop.f32.mrb[26].mxu1  ;;  %v4418_v44 = vadd.f32 %v10516_v33, %v4343_v43 }
 0x7ef   : > { %v5561_v38 = vpop.f32.mrb[27].mxu1 }
 0x7f0   : > { %v5562_v45 = vadd.f32 %v5561_v38, %v5560_v35 }
 0x7f2   : > { %v4348_v42 = vadd.f32 %v5562_v45, %v5397_v49 }
 0x7f4   : > { %v5747_v53 = vpop.f32.mrb[24].mxu0  ;;  %v4423_v22 = vadd.f32 %v10543_v61, %v4348_v42 }
 0x7f5   : > { %v5748_v24 = vpop.f32.mrb[25].mxu0 }
 0x7f6   : > { %v5749_v50 = vadd.f32 %v5748_v24, %v5747_v53 }
 0x808   : > { %v5750_v19 = vpop.f32.mrb[26].mxu0 }
 0x809   : > { %v5633_v47 = vpop.f32.mrb[28].mxu1  ;;  %v5751_v46 = vpop.f32.mrb[27].mxu0 }
 0x80a   : > { %v5634_v54 = vpop.f32.mrb[29].mxu1  ;;  %v5752_v57 = vadd.f32 %v5751_v46, %v5750_v19 }
 0x80b   : > { %v5635_v60 = vadd.f32 %v5634_v54, %v5633_v47 }
 0x80d   : > { %v4493_v62 = vadd.f32 %v5635_v60, %v4418_v44  ;;  %v5636_v4 = vpop.f32.mrb[30].mxu1 }
 0x80e   : > { %v5637_v17 = vpop.f32.mrb[31].mxu1 }
 0x80f   : > { %v5638_v63 = vadd.f32 %v5637_v17, %v5636_v4  ;;  %v4568_v33 = vadd.f32 %v10651_v48, %v4493_v62 }
 0x811   : > { %v4498_v20 = vadd.f32 %v5638_v63, %v4423_v22 }
 0x813   : > { %v4573_v1 = vadd.f32 %v10667_v11, %v4498_v20 }
 0x815   : > { %v5823_v2 = vpop.f32.mrb[28].mxu0 }
 0x816   : > { %v5824_v36 = vpop.f32.mrb[29].mxu0 }
 0x817   : > { %v5825_v5 = vadd.f32 %v5824_v36, %v5823_v2 }
 0x819   : > { %v5826_v61 = vpop.f32.mrb[30].mxu0 }
 0x81a   : > { %v5827_v7 = vpop.f32.mrb[31].mxu0 }
 0x81b   : > { %v5828_v8 = vadd.f32 %v5827_v7, %v5826_v61 }
 0x82a   : > { %v5709_v9 = vpop.f32.mrb[32].mxu1 }
 0x82b   : > { %v5710_v12 = vpop.f32.mrb[33].mxu1 }
 0x82c   : > { %v5711_v13 = vadd.f32 %v5710_v12, %v5709_v9 }
 0x82e   : > { %v4643_v14 = vadd.f32 %v5711_v13, %v4568_v33  ;;  %v5712_v15 = vpop.f32.mrb[34].mxu1 }
 0x82f   : > { %v5713_v16 = vpop.f32.mrb[35].mxu1 }
 0x830   : > { %v5714_v21 = vadd.f32 %v5713_v16, %v5712_v15  ;;  %v4718_v55 = vadd.f32 %v5749_v50, %v4643_v14 }
 0x832   : > { %v4648_v31 = vadd.f32 %v5714_v21, %v4573_v1 }
 0x834   : > { %v4723_v48 = vadd.f32 %v5752_v57, %v4648_v31 }
 0x835   : > { %v5899_v25 = vpop.f32.mrb[32].mxu0 }
 0x836   : > { %v5900_v0 = vpop.f32.mrb[33].mxu0 }
 0x837   : > { %v5901_v18 = vadd.f32 %v5900_v0, %v5899_v25 }
 0x839   : > { %v5902_v11 = vpop.f32.mrb[34].mxu0 }
 0x83a   : > { %v5903_v41 = vpop.f32.mrb[35].mxu0 }
 0x83b   : > { %v5904_v52 = vadd.f32 %v5903_v41, %v5902_v11 }
 0x84b   : > { %v5785_v56 = vpop.f32.mrb[36].mxu1 }
 0x84c   : > { %v5786_v26 = vpop.f32.mrb[37].mxu1 }
 0x84d   : > { %v5787_v34 = vadd.f32 %v5786_v26, %v5785_v56 }
 0x84f   : > { %v4793_v28 = vadd.f32 %v5787_v34, %v4718_v55  ;;  %v5788_v58 = vpop.f32.mrb[38].mxu1 }
 0x850   : > { %v5789_v29 = vpop.f32.mrb[39].mxu1 }
 0x851   : > { %v5790_v23 = vadd.f32 %v5789_v29, %v5788_v58  ;;  %v4868_v27 = vadd.f32 %v5825_v5, %v4793_v28 }
 0x853   : > { %v4798_v32 = vadd.f32 %v5790_v23, %v4723_v48 }
 0x855   : > { %v5975_v51 = vpop.f32.mrb[36].mxu0  ;;  %v4873_v10 = vadd.f32 %v5828_v8, %v4798_v32 }
 0x856   : > { %v5976_v39 = vpop.f32.mrb[37].mxu0 }
 0x857   : > { %v5977_v3 = vadd.f32 %v5976_v39, %v5975_v51 }
 0x859   : > { %v5978_v37 = vpop.f32.mrb[38].mxu0 }
 0x85a   : > { %v5979_v6 = vpop.f32.mrb[39].mxu0 }
 0x85b   : > { %v5980_v30 = vadd.f32 %v5979_v6, %v5978_v37 }
 0x86b   : > { %v5861_v49 = vpop.f32.mrb[40].mxu1 }
 0x86c   : > { %v5862_v59 = vpop.f32.mrb[41].mxu1 }
 0x86d   : > { %v5863_v40 = vadd.f32 %v5862_v59, %v5861_v49 }
 0x86f   : > { %v4943_v43 = vadd.f32 %v5863_v40, %v4868_v27  ;;  %v5864_v35 = vpop.f32.mrb[42].mxu1 }
 0x870   : > { %v5865_v44 = vpop.f32.mrb[43].mxu1 }
 0x871   : > { %v5866_v38 = vadd.f32 %v5865_v44, %v5864_v35  ;;  %v5018_v45 = vadd.f32 %v5901_v18, %v4943_v43 }
 0x873   : > { %v4948_v42 = vadd.f32 %v5866_v38, %v4873_v10 }
 0x875   : > { %v5023_v53 = vadd.f32 %v5904_v52, %v4948_v42 }
 0x88b   : > { %v5937_v24 = vpop.f32.mrb[44].mxu1 }
 0x88c   : > { %v5938_v22 = vpop.f32.mrb[45].mxu1 }
 0x88d   : > { %v5939_v50 = vadd.f32 %v5938_v22, %v5937_v24 }
 0x88f   : > { %v5093_v19 = vadd.f32 %v5939_v50, %v5018_v45  ;;  %v5940_v47 = vpop.f32.mrb[46].mxu1 }
 0x890   : > { %v5941_v46 = vpop.f32.mrb[47].mxu1 }
 0x891   : > { %v5942_v54 = vadd.f32 %v5941_v46, %v5940_v47  ;;  %v5168_v57 = vadd.f32 %v5977_v3, %v5093_v19 }
 0x893   : > { %v5098_v60 = vadd.f32 %v5942_v54, %v5023_v53 }
 0x895   : > { %v5173_v62 = vadd.f32 %v5980_v30, %v5098_v60 }
 0x8ab   : > { %v6261_v4 = vpop.f32.mrb[48].mxu1 }
 0x8ac   : > { %v5248_v17 = vadd.f32 %v6261_v4, %v5173_v62  ;;  %v5242_v63 = vpop.f32.mrb[49].mxu1 }
 0x8ad   : > { %v5243_v33 = vadd.f32 %v5242_v63, %v5168_v57 }
 0x8ae   : > { %5252 = vst.msk [vmem:[%s271_s21 + $0x8] sm:$0xff] %vm850_vm14, %v5248_v17  ;;  %5257 = vrot.lane.b32.xlu1 %v5248_v17, %s10904_s22 }
 0x8af   : > { %5251 = vst.msk [vmem:[%s271_s21] sm:$0xff] %vm850_vm14, %v5243_v33  ;;  %5255 = vrot.lane.b32.xlu0 %v5243_v33, %s10904_s22 }
 0x8b2   : > { %5266 = vrot.lane.b32.xlu1 %v5248_v17, %s10903_s16 }
 0x8b3   : > { %5264 = vrot.lane.b32.xlu0 %v5243_v33, %s10903_s16  ;;  %s7397_s16 = scalar_lea.vmem %s10815_s18, 768 }
 0x8b4   : > { %p7398_p11 = scmp.ne.s32.totalorder %s10815_s18, %s7397_s16  ;;  %p7405_p1 = scmp.lt.s32.totalorder %s7403_s13, %s7397_s16 }
 0x8b6   : > { %p7399_p12 = pnand %p7398_p11, %p7574_p5  ;;  %p7406_p2 = por %p7405_p1, %p7404_p0 }
 0x8b8   : > { %p7400_p13 = pneg %p7399_p12 }
 0x8ba   : > { %p7407_p3 = pnand %p7406_p2, %p7400_p13 }
 0x920   : > { %v5258_v20 = vpop.permute.xlu1 %5257 }
 0x921   : > { %5399 = vst.msk [vmem:[%s271_s21 + $0x18] sm:$0xff] %vm850_vm14, %v5258_v20  ;;  %v5256_v1 = vpop.permute.xlu0 %5255 }
 0x922   : > { %5398 = vst.msk [vmem:[%s271_s21 + $0x10] sm:$0xff] %vm850_vm14, %v5256_v1 }
 0x924   : > { %v5267_v2 = vpop.permute.xlu1 %5266 }
 0x925   : > { %5401 = vst.msk [vmem:[%s271_s21 + $0x28] sm:$0xff] %vm850_vm14, %v5267_v2  ;;  %v5265_v36 = vpop.permute.xlu0 %5264 }
 0x926   : > { %5400 = vst.msk [vmem:[%s271_s21 + $0x20] sm:$0xff] %vm850_vm14, %v5265_v36 }
 0x927   : > { %7410 = shalt.err (!%p7407_p3)
}
 0x928   : > { %s7411_s19 = scalar_lea.hbm %s10820_s29, 768  ;;  %s7415_s21 = scalar_lea.hbm %s10873_s7, 1536 }
 0x929   : > { %p7412_p4 = scmp.ne.s32.totalorder %s10820_s29, %s7411_s19  ;;  %p7416_p9 = scmp.lt.u32.totalorder %s10820_s29, %s10873_s7 }
 0x92a   : > { %p7417_p10 = scmp.lt.u32.totalorder %s7415_s21, %s7411_s19  ;;  %p7419_p12 = scmp.lt.u32.totalorder %s7411_s19, %s10820_s29 }
 0x92b   : > { %p7413_p7 = pnand %p7412_p4, %p7574_p5 }
 0x92c   : > { %p7418_p11 = por %p7417_p10, %p7416_p9 }
 0x92d   : > { %p7414_p8 = pneg %p7413_p7 }
 0x92e   : > { %p7420_p13 = por %p7419_p12, %p7418_p11 }
 0x930   : > { %p7421_p0 = pnand %p7420_p13, %p7414_p8 }
 0x932   : > { %7424 = shalt.err (!%p7421_p0)
}
 0x933   : > { %s7495_s9 = smov 128   ;;  %s10905_s17 = smov 8  }
 0x934   : > { %7323 = dma.vmem_to_hbm [thread:$0]  (%p7574_p5), %s10815_s18, 768, %s10820_s29, %s10824_s28, %s7495_s9, %s7495_s9, %s10905_s17  }
 0x935 PF: > { %p7329_p1 = scmp.ge.s32.totalorder %s7459_s27, 2  ;;  %s5302_s16 = sand.u32 1, %s7447_s24  }
 0x936   : > { %s5303_s15 = scalar_lea.sflag [#allocation8], %s5302_s16 }
 0x937   : > { %p7326_p2 = pnand %p7329_p1, %p7578_p6 }
 0x939   : > { %7442 = dma.done.wait (!%p7326_p2), %s5303_s15, 768  }
 0x93a   : > { %7444 = vsyncadd (!%p7326_p2), %s5303_s15, 4294966528  ;;  %p17_p3 = scmp.ge.s32.totalorder %s7561_s30, 4   ;;  %s10906_s24 = smov %s7451_s25 }
 0x93b   : > { %s10907_s25 = smov %s7455_s26  ;;  %s10908_s26 = smov %s7572_s10 }
 0x93c   : > { %s10909_s27 = smov %s7561_s30  ;;  %19 = sbr.rel (!%p17_p3) target bundleno = 3 (0x3), region = 87 }
 0x943   :  { %5308 = vsyncpa [#allocation8], 1 }
 0x944   :  { %5310 = vsyncpa [#allocation8 + $0x1], 1 }

</bundles_post_ra>
